<compile_context>
chip_gen: v6e
topology: v6e:2x2x1
jax: 0.10.0
libtpu: 0.0.40
codegen_flags: <defaults>
</compile_context>

<pallas_src>
import functools
import math

import jax
import jax.numpy as jnp
from jax.experimental import pallas as pl
from jax.experimental.pallas import tpu as pltpu

# ----------------------------- small config ---------------------------------
B = 2
VOCAB = 16            # vocabs_size
T_TEXT = 16           # pad_length
PAD_TOKEN_ID = 0
C = 32                # output_size == hidden_channels
FILTER = 64           # text-encoder FFN filter_channels
N_HEADS = 2
N_LAYERS = 2          # (6 in the reference; reduced for the small demo)
VP_FILTER = 32        # variance-predictor filter channels
N_BINS = 16           # pitch / energy quantization bins
MAX_MEL_LEN = 40      # mel_mask.size(1)
LATENT_T = 24         # latent_t_size
LATENT_F = 8          # latent_f_size
LN_EPS = 1e-5

_VMEM_LIMIT = 32 * 1024 * 1024   # explicit, safe on v5e/v6e/v7x


# --------------------------- in-kernel helpers --------------------------------
def _ln(x, g, b, eps=LN_EPS):
    mu = jnp.mean(x, axis=-1, keepdims=True)
    var = jnp.mean(jnp.square(x - mu), axis=-1, keepdims=True)
    return (x - mu) * jax.lax.rsqrt(var + eps) * g + b


def _shift_mats(t):
    # out[t] <- in[t-1]  (sd)  and  out[t] <- in[t+1]  (su), zero at the boundary.
    row = jax.lax.broadcasted_iota(jnp.int32, (t, t), 0)
    col = jax.lax.broadcasted_iota(jnp.int32, (t, t), 1)
    sd = (row == col + 1).astype(jnp.float32)
    su = (row == col - 1).astype(jnp.float32)
    return sd, su


def _conv3(y, sd, su, w_bf16, bias):
    # k=3 "same" conv over time as ONE (T, 3*Cin) @ (3*Cin, Cout) bf16 matmul (f32 acc).
    ycat = jnp.concatenate(
        [jnp.dot(sd, y, preferred_element_type=jnp.float32),
         y,
         jnp.dot(su, y, preferred_element_type=jnp.float32)],
        axis=-1)
    return jnp.dot(ycat.astype(jnp.bfloat16), w_bf16,
                   preferred_element_type=jnp.float32) + bias


# ---------------------------- block-spec helpers -------------------------------
def _bspec(shape):
    nd = len(shape)
    return pl.BlockSpec((1,) + tuple(shape[1:]),
                        lambda i, _nd=nd: (i,) + (0,) * (_nd - 1))


def _wspec(a):
    nd = a.ndim
    return pl.BlockSpec(tuple(a.shape), lambda i, _nd=nd: (0,) * _nd)


# ------------------------ fused text-encoder kernel ----------------------------
def _encoder_kernel(h_ref, mrow_ref, mcol_ref, pos_ref,
                    wqkv_ref, bqkv_ref, wo_ref, bo_ref,
                    g1_ref, bn1_ref, fw1_ref, fb1_ref,
                    fw2_ref, fb2_ref, g2_ref, bn2_ref,
                    o_ref, *, n_heads, n_layers):
    mrow = mrow_ref[0]                       # (1, T)  valid (1.0 = valid key)
    mcol = mcol_ref[0]                       # (T, 1)
    x = h_ref[0] * mcol                      # encoder input masking
    t, cc = x.shape
    dh = cc // n_heads
    scale = 1.0 / math.sqrt(dh)
    kbias = (mrow - 1.0) * 1e9               # 0 at valid, -1e9 at pad keys
    sd, su = _shift_mats(t)

    for l in range(n_layers):
        # ---- multi-head self-attention (packed QKV) ----
        qkv = jnp.dot(x.astype(jnp.bfloat16), wqkv_ref[l],
                      preferred_element_type=jnp.float32) + bqkv_ref[l]    # (T, 3C)
        heads = []
        for hi in range(n_heads):
            q = qkv[:, hi * dh:(hi + 1) * dh].astype(jnp.bfloat16)
            k = qkv[:, cc + hi * dh:cc + (hi + 1) * dh].astype(jnp.bfloat16)
            v = qkv[:, 2 * cc + hi * dh:2 * cc + (hi + 1) * dh].astype(jnp.bfloat16)
            s = jax.lax.dot_general(q, k, (((1,), (1,)), ((), ())),
                                    preferred_element_type=jnp.float32) * scale + kbias
            s = s - jnp.max(s, axis=-1, keepdims=True)
            p = jnp.exp(s)
            p = p * pl.reciprocal(jnp.sum(p, axis=-1, keepdims=True), approx=True)
            heads.append(jnp.dot(p.astype(jnp.bfloat16), v,
                                 preferred_element_type=jnp.float32))
        attn = jnp.concatenate(heads, axis=-1)                             # (T, C)
        attn = jnp.dot(attn.astype(jnp.bfloat16), wo_ref[l],
                       preferred_element_type=jnp.float32) + bo_ref[l]
        x1 = _ln(x + attn, g1_ref[l], bn1_ref[l])

        # ---- conv(k=3) FFN with VITS masking ----
        y = x1 * mcol
        y = jnp.maximum(_conv3(y, sd, su, fw1_ref[l], fb1_ref[l]), 0.0)
        y = y * mcol
        y = _conv3(y, sd, su, fw2_ref[l], fb2_ref[l])
        y = y * mcol
        x = _ln(x1 + y, g2_ref[l], bn2_ref[l])

    o_ref[0] = x * mcol + pos_ref[0]         # final mask + learnable positional emb


def fused_text_encoder(h, mrow, mcol, te):
    bn, t, cc = h.shape
    n_layers = te["wqkv"].shape[0]
    weights = [te["pos_emb"], te["wqkv"], te["bqkv"], te["wo"], te["bo"],
               te["g1"], te["bn1"], te["fw1"], te["fb1"],
               te["fw2"], te["fb2"], te["g2"], te["bn2"]]
    return pl.pallas_call(
        functools.partial(_encoder_kernel, n_heads=N_HEADS, n_layers=n_layers),
        out_shape=jax.ShapeDtypeStruct((bn, t, cc), jnp.float32),
        grid=(bn,),
        in_specs=[_bspec(h.shape), _bspec(mrow.shape), _bspec(mcol.shape)]
                 + [_wspec(w) for w in weights],
        out_specs=_bspec((bn, t, cc)),
        compiler_params=pltpu.CompilerParams(
            dimension_semantics=("parallel",), vmem_limit_bytes=_VMEM_LIMIT),
    )(h, mrow, mcol, *weights)


# --------------------- fused variance-adaptor kernel ---------------------------
def _va_kernel(x_ref, mrow_ref, mcol_ref,
               vw1_ref, vb1_ref, vg1_ref, vbe1_ref,
               vw2_ref, vb2_ref, vg2_ref, vbe2_ref,
               wld_ref, bld_ref, wlpe_ref, blpe_ref,
               plo_ref, phi_ref, ptab_ref,
               elo_ref, ehi_ref, etab_ref,
               mi_ref, cw_ref, cb_ref,
               oc_ref, pp_ref, ep_ref, mv_ref, *, max_mel):
    x = x_ref[0]                               # (T, C)
    mrow = mrow_ref[0]                         # (1, T)
    mcol = mcol_ref[0]                         # (T, 1)
    t = x.shape[0]
    sd, su = _shift_mats(t)

    def vp_trunk(inp, v):                      # VariancePredictor conv/LN trunk
        hh = jnp.maximum(_conv3(inp, sd, su, vw1_ref[v], vb1_ref[v]), 0.0)
        hh = _ln(hh, vg1_ref[v], vbe1_ref[v])
        hh = jnp.maximum(_conv3(hh, sd, su, vw2_ref[v], vb2_ref[v]), 0.0)
        hh = _ln(hh, vg2_ref[v], vbe2_ref[v])
        return hh                              # (T, VP_FILTER)

    # ---- duration predictor (row orientation keeps cum/start lane-major) ----
    hd = vp_trunk(x, 0)
    log_d = (jax.lax.dot_general(wld_ref[...], hd.astype(jnp.bfloat16),
                                 (((1,), (1,)), ((), ())),
                                 preferred_element_type=jnp.float32)
             + bld_ref[...]) * mrow                                       # (1, T)
    d_row = jnp.maximum(jnp.round(jnp.exp(log_d) - 1.0), 0.0) * mrow      # frames
    r_i = jax.lax.broadcasted_iota(jnp.int32, (t, t), 0)
    c_i = jax.lax.broadcasted_iota(jnp.int32, (t, t), 1)
    cum_mat = (r_i <= c_i).astype(jnp.float32)          # inclusive prefix-sum matrix
    cum = jnp.dot(d_row, cum_mat, preferred_element_type=jnp.float32)     # (1, T)
    start = cum - d_row

    # ---- pitch predictor + bucketize + embedding add ----
    hp = vp_trunk(x, 1)
    p_col = (jnp.sum(hp * wlpe_ref[0], axis=-1, keepdims=True)
             + blpe_ref[0]) * mcol                                        # (T, 1)
    p_oh = jnp.where(jnp.logical_and(p_col > plo_ref[...], p_col <= phi_ref[...]),
                     1.0, 0.0)                                            # (T, N_BINS)
    x = x + jnp.dot(p_oh, ptab_ref[...], preferred_element_type=jnp.float32)

    # ---- energy predictor + bucketize + embedding add ----
    he = vp_trunk(x, 2)
    e_col = (jnp.sum(he * wlpe_ref[1], axis=-1, keepdims=True)
             + blpe_ref[1]) * mcol                                        # (T, 1)
    e_oh = jnp.where(jnp.logical_and(e_col > elo_ref[...], e_col <= ehi_ref[...]),
                     1.0, 0.0)
    x = x + jnp.dot(e_oh, etab_ref[...], preferred_element_type=jnp.float32)

    # ---- length regulator -> (max_mel, C); linear interp -> (Lt, C); conv-k3 ----
    frames = jax.lax.broadcasted_iota(jnp.int32, (max_mel, t), 0).astype(jnp.float32)
    sel = jnp.where(jnp.logical_and(frames >= start, frames < cum), 1.0, 0.0)
    expanded = jnp.dot(sel, x, preferred_element_type=jnp.float32)         # (max_mel, C)
    out_i = jnp.dot(mi_ref[...], expanded, preferred_element_type=jnp.float32)  # (Lt, C)
    lt = out_i.shape[0]
    sdl, sul = _shift_mats(lt)
    oc_ref[0] = _conv3(out_i, sdl, sul, cw_ref[...], cb_ref[...])          # (Lt, F)

    # ---- auxiliary outputs ----
    pp_ref[0] = p_col
    ep_ref[0] = e_col
    mel_pos = jax.lax.broadcasted_iota(jnp.int32, (1, max_mel), 1).astype(jnp.float32)
    mel_len = jnp.minimum(jnp.sum(d_row, axis=-1, keepdims=True), float(max_mel))
    mv_ref[0] = jnp.where(mel_pos < mel_len, 1.0, 0.0)


def fused_variance_adaptor(va, x, mrow, mcol, mi, cw, cb):
    bn, t, cc = x.shape
    lt, max_mel = mi.shape
    lf = cw.shape[1]
    weights = [va["vw1"], va["vb1"], va["vg1"], va["vbe1"],
               va["vw2"], va["vb2"], va["vg2"], va["vbe2"],
               va["wld"], va["bld"], va["wlpe"], va["blpe"],
               va["plo"], va["phi"], va["ptab"],
               va["elo"], va["ehi"], va["etab"],
               mi, cw, cb]
    out_shape = (
        jax.ShapeDtypeStruct((bn, lt, lf), jnp.float32),      # latent output
        jax.ShapeDtypeStruct((bn, t, 1), jnp.float32),        # pitch predictions
        jax.ShapeDtypeStruct((bn, t, 1), jnp.float32),        # energy predictions
        jax.ShapeDtypeStruct((bn, 1, max_mel), jnp.float32),  # mel-valid mask (f32)
    )
    out_specs = (_bspec((bn, lt, lf)), _bspec((bn, t, 1)),
                 _bspec((bn, t, 1)), _bspec((bn, 1, max_mel)))
    return pl.pallas_call(
        functools.partial(_va_kernel, max_mel=max_mel),
        out_shape=out_shape,
        grid=(bn,),
        in_specs=[_bspec(x.shape), _bspec(mrow.shape), _bspec(mcol.shape)]
                 + [_wspec(w) for w in weights],
        out_specs=out_specs,
        compiler_params=pltpu.CompilerParams(
            dimension_semantics=("parallel",), vmem_limit_bytes=_VMEM_LIMIT),
    )(x, mrow, mcol, *weights)


# ------------------------------ glue helpers ----------------------------------
def make_interp_matrix(l_in, l_out):
    # F.interpolate(mode='linear', align_corners=True) as a dense (l_out, l_in) matrix.
    pos = jnp.arange(l_out, dtype=jnp.float32) * (l_in - 1) / (l_out - 1)
    i0 = jnp.clip(jnp.floor(pos).astype(jnp.int32), 0, l_in - 2)
    w = pos - i0.astype(jnp.float32)
    return (jax.nn.one_hot(i0, l_in) * (1.0 - w)[:, None]
            + jax.nn.one_hot(i0 + 1, l_in) * w[:, None])


# ------------------------------ full forward ----------------------------------
def forward(params, phoneme_idx, mel_mask):
    bn, t = phoneme_idx.shape
    max_mel_len = mel_mask.shape[1]

    # ---- PhonemeEncoder masks ----
    src_valid = phoneme_idx != PAD_TOKEN_ID
    src_len = jnp.sum(src_valid, axis=-1)
    seq_mask = jnp.arange(t)[None, :] < src_len[:, None]       # (B, T) bool, valid
    mask_f = seq_mask.astype(jnp.float32)
    mrow = mask_f[:, None, :]                                   # (B, 1, T)
    mcol = mask_f[:, :, None]                                   # (B, T, 1)

    te = params["te"]
    h = jnp.take(te["emb"], phoneme_idx, axis=0) * math.sqrt(C)  # gather, no one-hot
    text_emb = fused_text_encoder(h, mrow, mcol, te)             # (B, T, C)
    # NOTE: VITS proj -> (m, logs) is dead compute for this module's outputs; skipped.
    curve_mask = seq_mask                                        # phoneme_level

    # ---- VarianceAdaptor + length-regulate + interpolate + conv (one kernel) ----
    va = params["va"]
    mi = make_interp_matrix(max_mel_len, LATENT_T)
    out_c, p_col, e_col, mv = fused_variance_adaptor(
        va, text_emb, mrow, mcol, mi, params["cw"], params["cb"])

    p_pred = p_col[:, :, 0]                                      # (B, T)
    e_pred = e_col[:, :, 0]
    mel_valid = mv[:, 0, :] > 0.5                                # (B, max_mel) bool

    zero = jnp.float32(0.0)
    return {
        "noncond_loss_pitch_loss": zero,
        "noncond_loss_energy_loss": zero,
        "noncond_loss_duration_loss": zero,
        "noncond_loss_detailed_pitch_loss": zero,
        "noncond_loss_detailed_energy_loss": zero,
        "concat_text_encoder_with_varianceadaptor": out_c,
        "noncond_predicted_pitch": [p_pred, curve_mask],
        "noncond_predicted_energy": [e_pred, curve_mask],
        "noncond_mel_mask": mel_valid,
    }


# ------------------------------ parameter init --------------------------------
def init_params(key):
    keys = iter(jax.random.split(key, 64))
    bf = jnp.bfloat16

    def nrm(shape, scale=0.05, dtype=jnp.float32):
        return (scale * jax.random.normal(next(keys), shape, jnp.float32)).astype(dtype)

    def zeros(shape):
        return jnp.zeros(shape, jnp.float32)

    def ones(shape):
        return jnp.ones(shape, jnp.float32)

    L = N_LAYERS
    te = dict(
        emb=nrm((VOCAB, C), scale=C ** -0.5),
        pos_emb=jnp.zeros((1, T_TEXT, C), jnp.float32),          # torch.zeros init
        wqkv=nrm((L, C, 3 * C), dtype=bf), bqkv=zeros((L, 1, 3 * C)),
        wo=nrm((L, C, C), dtype=bf), bo=zeros((L, 1, C)),
        g1=ones((L, 1, C)), bn1=zeros((L, 1, C)),
        fw1=nrm((L, 3 * C, FILTER), dtype=bf), fb1=zeros((L, 1, FILTER)),
        fw2=nrm((L, 3 * FILTER, C), dtype=bf), fb2=zeros((L, 1, C)),
        g2=ones((L, 1, C)), bn2=zeros((L, 1, C)),
    )

    # bucket edges for torch.bucketize(pred, bins): bucket k = (lo[k], hi[k]]
    bins_p = jnp.linspace(-1.0, 1.0, N_BINS - 1, dtype=jnp.float32)
    bins_e = jnp.linspace(-1.0, 1.0, N_BINS - 1, dtype=jnp.float32)
    big = jnp.array([1e30], jnp.float32)
    plo = jnp.concatenate([-big, bins_p])[None, :]
    phi = jnp.concatenate([bins_p, big])[None, :]
    elo = jnp.concatenate([-big, bins_e])[None, :]
    ehi = jnp.concatenate([bins_e, big])[None, :]

    va = dict(
        # stacked VariancePredictor trunks: index 0=duration, 1=pitch, 2=energy
        vw1=nrm((3, 3 * C, VP_FILTER), dtype=bf), vb1=zeros((3, 1, VP_FILTER)),
        vg1=ones((3, 1, VP_FILTER)), vbe1=zeros((3, 1, VP_FILTER)),
        vw2=nrm((3, 3 * VP_FILTER, VP_FILTER), dtype=bf), vb2=zeros((3, 1, VP_FILTER)),
        vg2=ones((3, 1, VP_FILTER)), vbe2=zeros((3, 1, VP_FILTER)),
        # duration head (row orientation); exp(0.7)-1 ~ 1 frame / phoneme for the demo
        wld=nrm((1, VP_FILTER), dtype=bf), bld=jnp.full((1, 1), 0.7, jnp.float32),
        # pitch / energy heads (column orientation, stacked)
        wlpe=nrm((2, 1, VP_FILTER)), blpe=zeros((2, 1, 1)),
        plo=plo, phi=phi, ptab=nrm((N_BINS, C)),
        elo=elo, ehi=ehi, etab=nrm((N_BINS, C)),
    )

    return dict(te=te, va=va,
                cw=nrm((3 * C, LATENT_F), dtype=bf),
                cb=jnp.zeros((1, LATENT_F), jnp.float32))


# ---------------------------------- main --------------------------------------
if __name__ == "__main__":
    key = jax.random.PRNGKey(0)
    pkey, tkey = jax.random.split(key)
    params = init_params(pkey)

    # phoneme indices with trailing PAD tokens
    lengths = jnp.array([12, 9], dtype=jnp.int32)
    tok = jax.random.randint(tkey, (B, T_TEXT), 1, VOCAB)
    valid = jnp.arange(T_TEXT)[None, :] < lengths[:, None]
    phoneme_idx = jnp.where(valid, tok, PAD_TOKEN_ID).astype(jnp.int32)
    mel_mask = jnp.ones((B, MAX_MEL_LEN), dtype=jnp.bool_)   # only its length is used in eval

    fwd = jax.jit(forward)
    out = fwd(params, phoneme_idx, mel_mask)
    out = jax.block_until_ready(out)

    latent = out["concat_text_encoder_with_varianceadaptor"]
    assert latent.shape == (B, LATENT_T, LATENT_F)
    assert out["noncond_mel_mask"].shape == (B, MAX_MEL_LEN)
    assert out["noncond_predicted_pitch"][0].shape == (B, T_TEXT)
    assert bool(jnp.all(jnp.isfinite(latent)))
    print("KERNEL_OK")
</pallas_src>

<mosaic_0001>
module attributes {stable_mosaic.version = 11 : i64} {
  func.func @_encoder_kernel(%arg0: i32, %arg1: memref<1x16x32xf32, #tpu.memory_space<vmem>>, %arg2: memref<1x1x16xf32, #tpu.memory_space<vmem>>, %arg3: memref<1x16x1xf32, #tpu.memory_space<vmem>>, %arg4: memref<1x16x32xf32, #tpu.memory_space<vmem>>, %arg5: memref<2x32x96xbf16, #tpu.memory_space<vmem>>, %arg6: memref<2x1x96xf32, #tpu.memory_space<vmem>>, %arg7: memref<2x32x32xbf16, #tpu.memory_space<vmem>>, %arg8: memref<2x1x32xf32, #tpu.memory_space<vmem>>, %arg9: memref<2x1x32xf32, #tpu.memory_space<vmem>>, %arg10: memref<2x1x32xf32, #tpu.memory_space<vmem>>, %arg11: memref<2x96x64xbf16, #tpu.memory_space<vmem>>, %arg12: memref<2x1x64xf32, #tpu.memory_space<vmem>>, %arg13: memref<2x192x32xbf16, #tpu.memory_space<vmem>>, %arg14: memref<2x1x32xf32, #tpu.memory_space<vmem>>, %arg15: memref<2x1x32xf32, #tpu.memory_space<vmem>>, %arg16: memref<2x1x32xf32, #tpu.memory_space<vmem>>, %arg17: memref<1x16x32xf32, #tpu.memory_space<vmem>>) attributes {dimension_semantics = [#tpu.dimension_semantics<parallel>], iteration_bounds = array<i64: 2>, scalar_prefetch = 0 : i64, scratch_operands = 0 : i64, tpu.core_type = #tpu.core_type<tc>, window_params = [{transform_indices = @transform_0, window_bounds = array<i64: 1, 16, 32>}, {transform_indices = @transform_1, window_bounds = array<i64: 1, 1, 16>}, {transform_indices = @transform_2, window_bounds = array<i64: 1, 16, 1>}, {pipeline_mode = #tpu.pipeline_mode<synchronous>, transform_indices = @transform_3, window_bounds = array<i64: 1, 16, 32>}, {pipeline_mode = #tpu.pipeline_mode<synchronous>, transform_indices = @transform_4, window_bounds = array<i64: 2, 32, 96>}, {pipeline_mode = #tpu.pipeline_mode<synchronous>, transform_indices = @transform_5, window_bounds = array<i64: 2, 1, 96>}, {pipeline_mode = #tpu.pipeline_mode<synchronous>, transform_indices = @transform_6, window_bounds = array<i64: 2, 32, 32>}, {pipeline_mode = #tpu.pipeline_mode<synchronous>, transform_indices = @transform_7, window_bounds = array<i64: 2, 1, 32>}, {pipeline_mode = #tpu.pipeline_mode<synchronous>, transform_indices = @transform_8, window_bounds = array<i64: 2, 1, 32>}, {pipeline_mode = #tpu.pipeline_mode<synchronous>, transform_indices = @transform_9, window_bounds = array<i64: 2, 1, 32>}, {pipeline_mode = #tpu.pipeline_mode<synchronous>, transform_indices = @transform_10, window_bounds = array<i64: 2, 96, 64>}, {pipeline_mode = #tpu.pipeline_mode<synchronous>, transform_indices = @transform_11, window_bounds = array<i64: 2, 1, 64>}, {pipeline_mode = #tpu.pipeline_mode<synchronous>, transform_indices = @transform_12, window_bounds = array<i64: 2, 192, 32>}, {pipeline_mode = #tpu.pipeline_mode<synchronous>, transform_indices = @transform_13, window_bounds = array<i64: 2, 1, 32>}, {pipeline_mode = #tpu.pipeline_mode<synchronous>, transform_indices = @transform_14, window_bounds = array<i64: 2, 1, 32>}, {pipeline_mode = #tpu.pipeline_mode<synchronous>, transform_indices = @transform_15, window_bounds = array<i64: 2, 1, 32>}, {transform_indices = @transform_16, window_bounds = array<i64: 1, 16, 32>}]} {
    %c0 = arith.constant 0 : index
    %c0_0 = arith.constant 0 : index
    %c0_1 = arith.constant 0 : index
    %0 = vector.load %arg2[%c0, %c0_0, %c0_1] : memref<1x1x16xf32, #tpu.memory_space<vmem>>, vector<1x1x16xf32>
    %1 = vector.shape_cast %0 : vector<1x1x16xf32> to vector<1x16xf32>
    %c0_2 = arith.constant 0 : index
    %c0_3 = arith.constant 0 : index
    %c0_4 = arith.constant 0 : index
    %2 = vector.load %arg3[%c0_2, %c0_3, %c0_4] : memref<1x16x1xf32, #tpu.memory_space<vmem>>, vector<1x16x1xf32>
    %3 = vector.shape_cast %2 : vector<1x16x1xf32> to vector<16x1xf32>
    %c0_5 = arith.constant 0 : index
    %c0_6 = arith.constant 0 : index
    %c0_7 = arith.constant 0 : index
    %4 = vector.load %arg1[%c0_5, %c0_6, %c0_7] : memref<1x16x32xf32, #tpu.memory_space<vmem>>, vector<1x16x32xf32>
    %5 = vector.shape_cast %4 : vector<1x16x32xf32> to vector<16x32xf32>
    %6 = vector.broadcast %3 : vector<16x1xf32> to vector<16x32xf32>
    %7 = arith.mulf %5, %6 : vector<16x32xf32>
    %cst = arith.constant 1.000000e+00 : f32
    %8 = vector.broadcast %cst : f32 to vector<1x16xf32>
    %9 = arith.subf %1, %8 : vector<1x16xf32>
    %cst_8 = arith.constant 1.000000e+09 : f32
    %10 = vector.broadcast %cst_8 : f32 to vector<1x16xf32>
    %11 = arith.mulf %9, %10 : vector<1x16xf32>
    %12 = tpu.iota {dimensions = array<i32: 0>} : vector<16x16xi32>
    %13 = tpu.iota {dimensions = array<i32: 1>} : vector<16x16xi32>
    %c1_i32 = arith.constant 1 : i32
    %14 = vector.broadcast %c1_i32 : i32 to vector<16x16xi32>
    %15 = arith.addi %13, %14 : vector<16x16xi32>
    %16 = arith.cmpi eq, %12, %15 : vector<16x16xi32>
    %17 = arith.extui %16 : vector<16x16xi1> to vector<16x16xi32>
    %18 = arith.sitofp %17 : vector<16x16xi32> to vector<16x16xf32>
    %c1_i32_9 = arith.constant 1 : i32
    %19 = vector.broadcast %c1_i32_9 : i32 to vector<16x16xi32>
    %20 = arith.subi %13, %19 : vector<16x16xi32>
    %21 = arith.cmpi eq, %12, %20 : vector<16x16xi32>
    %22 = arith.extui %21 : vector<16x16xi1> to vector<16x16xi32>
    %23 = arith.sitofp %22 : vector<16x16xi32> to vector<16x16xf32>
    %24 = arith.truncf %7 : vector<16x32xf32> to vector<16x32xbf16>
    %c0_10 = arith.constant 0 : index
    %c0_11 = arith.constant 0 : index
    %c0_12 = arith.constant 0 : index
    %25 = vector.load %arg5[%c0_10, %c0_11, %c0_12] : memref<2x32x96xbf16, #tpu.memory_space<vmem>>, vector<1x32x96xbf16>
    %26 = vector.shape_cast %25 : vector<1x32x96xbf16> to vector<32x96xbf16>
    %cst_13 = arith.constant dense<0.000000e+00> : vector<16x96xf32>
    %27 = tpu.matmul %24, %26, %cst_13 {dimension_numbers = #tpu.dot_dimension_numbers<[1], [0], [0], [1], [0, 0, 1, 1], [], []>} : vector<16x32xbf16>, vector<32x96xbf16>, vector<16x96xf32> -> vector<16x96xf32>
    %c0_14 = arith.constant 0 : index
    %c0_15 = arith.constant 0 : index
    %c0_16 = arith.constant 0 : index
    %28 = vector.load %arg6[%c0_14, %c0_15, %c0_16] : memref<2x1x96xf32, #tpu.memory_space<vmem>>, vector<1x1x96xf32>
    %29 = vector.shape_cast %28 : vector<1x1x96xf32> to vector<1x96xf32>
    %30 = vector.broadcast %29 : vector<1x96xf32> to vector<16x96xf32>
    %31 = arith.addf %27, %30 : vector<16x96xf32>
    %32 = vector.extract_strided_slice %31 {offsets = [0, 0], sizes = [16, 16], strides = [1, 1]} : vector<16x96xf32> to vector<16x16xf32>
    %33 = arith.truncf %32 : vector<16x16xf32> to vector<16x16xbf16>
    %34 = vector.extract_strided_slice %31 {offsets = [0, 32], sizes = [16, 16], strides = [1, 1]} : vector<16x96xf32> to vector<16x16xf32>
    %35 = arith.truncf %34 : vector<16x16xf32> to vector<16x16xbf16>
    %36 = vector.extract_strided_slice %31 {offsets = [0, 64], sizes = [16, 16], strides = [1, 1]} : vector<16x96xf32> to vector<16x16xf32>
    %37 = arith.truncf %36 : vector<16x16xf32> to vector<16x16xbf16>
    %cst_17 = arith.constant dense<0.000000e+00> : vector<16x16xf32>
    %38 = tpu.matmul %33, %35, %cst_17 {dimension_numbers = #tpu.dot_dimension_numbers<[1], [1], [0], [0], [0, 0, 1, 0], [], []>} : vector<16x16xbf16>, vector<16x16xbf16>, vector<16x16xf32> -> vector<16x16xf32>
    %cst_18 = arith.constant 2.500000e-01 : f32
    %39 = vector.broadcast %cst_18 : f32 to vector<16x16xf32>
    %40 = arith.mulf %38, %39 : vector<16x16xf32>
    %41 = vector.broadcast %11 : vector<1x16xf32> to vector<16x16xf32>
    %42 = arith.addf %40, %41 : vector<16x16xf32>
    %cst_19 = arith.constant dense<0xFF800000> : vector<16xf32>
    %43 = vector.multi_reduction <maximumf>, %42, %cst_19 [1] : vector<16x16xf32> to vector<16xf32>
    %44 = vector.shape_cast %43 : vector<16xf32> to vector<16x1xf32>
    %45 = vector.broadcast %44 : vector<16x1xf32> to vector<16x16xf32>
    %46 = arith.subf %42, %45 : vector<16x16xf32>
    %47 = math.exp %46 : vector<16x16xf32>
    %cst_20 = arith.constant dense<0.000000e+00> : vector<16xf32>
    %48 = vector.multi_reduction <add>, %47, %cst_20 [1] : vector<16x16xf32> to vector<16xf32>
    %49 = vector.shape_cast %48 : vector<16xf32> to vector<16x1xf32>
    %50 = tpu.reciprocal %49 {approx = true} : vector<16x1xf32> -> vector<16x1xf32>
    %51 = vector.broadcast %50 : vector<16x1xf32> to vector<16x16xf32>
    %52 = arith.mulf %47, %51 : vector<16x16xf32>
    %53 = arith.truncf %52 : vector<16x16xf32> to vector<16x16xbf16>
    %cst_21 = arith.constant dense<0.000000e+00> : vector<16x16xf32>
    %54 = tpu.matmul %53, %37, %cst_21 {dimension_numbers = #tpu.dot_dimension_numbers<[1], [0], [0], [1], [0, 0, 1, 1], [], []>} : vector<16x16xbf16>, vector<16x16xbf16>, vector<16x16xf32> -> vector<16x16xf32>
    %55 = vector.extract_strided_slice %31 {offsets = [0, 16], sizes = [16, 16], strides = [1, 1]} : vector<16x96xf32> to vector<16x16xf32>
    %56 = arith.truncf %55 : vector<16x16xf32> to vector<16x16xbf16>
    %57 = vector.extract_strided_slice %31 {offsets = [0, 48], sizes = [16, 16], strides = [1, 1]} : vector<16x96xf32> to vector<16x16xf32>
    %58 = arith.truncf %57 : vector<16x16xf32> to vector<16x16xbf16>
    %59 = vector.extract_strided_slice %31 {offsets = [0, 80], sizes = [16, 16], strides = [1, 1]} : vector<16x96xf32> to vector<16x16xf32>
    %60 = arith.truncf %59 : vector<16x16xf32> to vector<16x16xbf16>
    %cst_22 = arith.constant dense<0.000000e+00> : vector<16x16xf32>
    %61 = tpu.matmul %56, %58, %cst_22 {dimension_numbers = #tpu.dot_dimension_numbers<[1], [1], [0], [0], [0, 0, 1, 0], [], []>} : vector<16x16xbf16>, vector<16x16xbf16>, vector<16x16xf32> -> vector<16x16xf32>
    %cst_23 = arith.constant 2.500000e-01 : f32
    %62 = vector.broadcast %cst_23 : f32 to vector<16x16xf32>
    %63 = arith.mulf %61, %62 : vector<16x16xf32>
    %64 = vector.broadcast %11 : vector<1x16xf32> to vector<16x16xf32>
    %65 = arith.addf %63, %64 : vector<16x16xf32>
    %cst_24 = arith.constant dense<0xFF800000> : vector<16xf32>
    %66 = vector.multi_reduction <maximumf>, %65, %cst_24 [1] : vector<16x16xf32> to vector<16xf32>
    %67 = vector.shape_cast %66 : vector<16xf32> to vector<16x1xf32>
    %68 = vector.broadcast %67 : vector<16x1xf32> to vector<16x16xf32>
    %69 = arith.subf %65, %68 : vector<16x16xf32>
    %70 = math.exp %69 : vector<16x16xf32>
    %cst_25 = arith.constant dense<0.000000e+00> : vector<16xf32>
    %71 = vector.multi_reduction <add>, %70, %cst_25 [1] : vector<16x16xf32> to vector<16xf32>
    %72 = vector.shape_cast %71 : vector<16xf32> to vector<16x1xf32>
    %73 = tpu.reciprocal %72 {approx = true} : vector<16x1xf32> -> vector<16x1xf32>
    %74 = vector.broadcast %73 : vector<16x1xf32> to vector<16x16xf32>
    %75 = arith.mulf %70, %74 : vector<16x16xf32>
    %76 = arith.truncf %75 : vector<16x16xf32> to vector<16x16xbf16>
    %cst_26 = arith.constant dense<0.000000e+00> : vector<16x16xf32>
    %77 = tpu.matmul %76, %60, %cst_26 {dimension_numbers = #tpu.dot_dimension_numbers<[1], [0], [0], [1], [0, 0, 1, 1], [], []>} : vector<16x16xbf16>, vector<16x16xbf16>, vector<16x16xf32> -> vector<16x16xf32>
    %78 = tpu.concatenate %54, %77 in 1 : vector<16x16xf32>, vector<16x16xf32> -> vector<16x32xf32>
    %79 = arith.truncf %78 : vector<16x32xf32> to vector<16x32xbf16>
    %c0_27 = arith.constant 0 : index
    %c0_28 = arith.constant 0 : index
    %c0_29 = arith.constant 0 : index
    %80 = vector.load %arg7[%c0_27, %c0_28, %c0_29] : memref<2x32x32xbf16, #tpu.memory_space<vmem>>, vector<1x32x32xbf16>
    %81 = vector.shape_cast %80 : vector<1x32x32xbf16> to vector<32x32xbf16>
    %cst_30 = arith.constant dense<0.000000e+00> : vector<16x32xf32>
    %82 = tpu.matmul %79, %81, %cst_30 {dimension_numbers = #tpu.dot_dimension_numbers<[1], [0], [0], [1], [0, 0, 1, 1], [], []>} : vector<16x32xbf16>, vector<32x32xbf16>, vector<16x32xf32> -> vector<16x32xf32>
    %c0_31 = arith.constant 0 : index
    %c0_32 = arith.constant 0 : index
    %c0_33 = arith.constant 0 : index
    %83 = vector.load %arg8[%c0_31, %c0_32, %c0_33] : memref<2x1x32xf32, #tpu.memory_space<vmem>>, vector<1x1x32xf32>
    %84 = vector.shape_cast %83 : vector<1x1x32xf32> to vector<1x32xf32>
    %85 = vector.broadcast %84 : vector<1x32xf32> to vector<16x32xf32>
    %86 = arith.addf %82, %85 : vector<16x32xf32>
    %87 = arith.addf %7, %86 : vector<16x32xf32>
    %c0_34 = arith.constant 0 : index
    %c0_35 = arith.constant 0 : index
    %c0_36 = arith.constant 0 : index
    %88 = vector.load %arg9[%c0_34, %c0_35, %c0_36] : memref<2x1x32xf32, #tpu.memory_space<vmem>>, vector<1x1x32xf32>
    %89 = vector.shape_cast %88 : vector<1x1x32xf32> to vector<1x32xf32>
    %c0_37 = arith.constant 0 : index
    %c0_38 = arith.constant 0 : index
    %c0_39 = arith.constant 0 : index
    %90 = vector.load %arg10[%c0_37, %c0_38, %c0_39] : memref<2x1x32xf32, #tpu.memory_space<vmem>>, vector<1x1x32xf32>
    %91 = vector.shape_cast %90 : vector<1x1x32xf32> to vector<1x32xf32>
    %cst_40 = arith.constant dense<0.000000e+00> : vector<16xf32>
    %92 = vector.multi_reduction <add>, %87, %cst_40 [1] : vector<16x32xf32> to vector<16xf32>
    %93 = vector.shape_cast %92 : vector<16xf32> to vector<16x1xf32>
    %cst_41 = arith.constant 3.200000e+01 : f32
    %94 = vector.broadcast %cst_41 : f32 to vector<16x1xf32>
    %95 = arith.divf %93, %94 : vector<16x1xf32>
    %96 = vector.broadcast %95 : vector<16x1xf32> to vector<16x32xf32>
    %97 = arith.subf %87, %96 : vector<16x32xf32>
    %98 = arith.mulf %97, %97 : vector<16x32xf32>
    %cst_42 = arith.constant dense<0.000000e+00> : vector<16xf32>
    %99 = vector.multi_reduction <add>, %98, %cst_42 [1] : vector<16x32xf32> to vector<16xf32>
    %100 = vector.shape_cast %99 : vector<16xf32> to vector<16x1xf32>
    %cst_43 = arith.constant 3.200000e+01 : f32
    %101 = vector.broadcast %cst_43 : f32 to vector<16x1xf32>
    %102 = arith.divf %100, %101 : vector<16x1xf32>
    %103 = vector.broadcast %95 : vector<16x1xf32> to vector<16x32xf32>
    %104 = arith.subf %87, %103 : vector<16x32xf32>
    %cst_44 = arith.constant 9.99999974E-6 : f32
    %105 = vector.broadcast %cst_44 : f32 to vector<16x1xf32>
    %106 = arith.addf %102, %105 : vector<16x1xf32>
    %107 = math.rsqrt %106 : vector<16x1xf32>
    %108 = vector.broadcast %107 : vector<16x1xf32> to vector<16x32xf32>
    %109 = arith.mulf %104, %108 : vector<16x32xf32>
    %110 = vector.broadcast %89 : vector<1x32xf32> to vector<16x32xf32>
    %111 = arith.mulf %109, %110 : vector<16x32xf32>
    %112 = vector.broadcast %91 : vector<1x32xf32> to vector<16x32xf32>
    %113 = arith.addf %111, %112 : vector<16x32xf32>
    %114 = vector.broadcast %3 : vector<16x1xf32> to vector<16x32xf32>
    %115 = arith.mulf %113, %114 : vector<16x32xf32>
    %c0_45 = arith.constant 0 : index
    %c0_46 = arith.constant 0 : index
    %c0_47 = arith.constant 0 : index
    %116 = vector.load %arg11[%c0_45, %c0_46, %c0_47] : memref<2x96x64xbf16, #tpu.memory_space<vmem>>, vector<1x96x64xbf16>
    %117 = vector.shape_cast %116 : vector<1x96x64xbf16> to vector<96x64xbf16>
    %c0_48 = arith.constant 0 : index
    %c0_49 = arith.constant 0 : index
    %c0_50 = arith.constant 0 : index
    %118 = vector.load %arg12[%c0_48, %c0_49, %c0_50] : memref<2x1x64xf32, #tpu.memory_space<vmem>>, vector<1x1x64xf32>
    %119 = vector.shape_cast %118 : vector<1x1x64xf32> to vector<1x64xf32>
    %cst_51 = arith.constant dense<0.000000e+00> : vector<16x32xf32>
    %120 = tpu.matmul %18, %115, %cst_51 {dimension_numbers = #tpu.dot_dimension_numbers<[1], [0], [0], [1], [0, 0, 1, 1], [], []>} : vector<16x16xf32>, vector<16x32xf32>, vector<16x32xf32> -> vector<16x32xf32>
    %cst_52 = arith.constant dense<0.000000e+00> : vector<16x32xf32>
    %121 = tpu.matmul %23, %115, %cst_52 {dimension_numbers = #tpu.dot_dimension_numbers<[1], [0], [0], [1], [0, 0, 1, 1], [], []>} : vector<16x16xf32>, vector<16x32xf32>, vector<16x32xf32> -> vector<16x32xf32>
    %122 = tpu.concatenate %120, %115, %121 in 1 : vector<16x32xf32>, vector<16x32xf32>, vector<16x32xf32> -> vector<16x96xf32>
    %123 = arith.truncf %122 : vector<16x96xf32> to vector<16x96xbf16>
    %cst_53 = arith.constant dense<0.000000e+00> : vector<16x64xf32>
    %124 = tpu.matmul %123, %117, %cst_53 {dimension_numbers = #tpu.dot_dimension_numbers<[1], [0], [0], [1], [0, 0, 1, 1], [], []>} : vector<16x96xbf16>, vector<96x64xbf16>, vector<16x64xf32> -> vector<16x64xf32>
    %125 = vector.broadcast %119 : vector<1x64xf32> to vector<16x64xf32>
    %126 = arith.addf %124, %125 : vector<16x64xf32>
    %cst_54 = arith.constant 0.000000e+00 : f32
    %127 = vector.broadcast %cst_54 : f32 to vector<16x64xf32>
    %128 = arith.maximumf %126, %127 : vector<16x64xf32>
    %129 = vector.broadcast %3 : vector<16x1xf32> to vector<16x64xf32>
    %130 = arith.mulf %128, %129 : vector<16x64xf32>
    %c0_55 = arith.constant 0 : index
    %c0_56 = arith.constant 0 : index
    %c0_57 = arith.constant 0 : index
    %131 = vector.load %arg13[%c0_55, %c0_56, %c0_57] : memref<2x192x32xbf16, #tpu.memory_space<vmem>>, vector<1x192x32xbf16>
    %132 = vector.shape_cast %131 : vector<1x192x32xbf16> to vector<192x32xbf16>
    %c0_58 = arith.constant 0 : index
    %c0_59 = arith.constant 0 : index
    %c0_60 = arith.constant 0 : index
    %133 = vector.load %arg14[%c0_58, %c0_59, %c0_60] : memref<2x1x32xf32, #tpu.memory_space<vmem>>, vector<1x1x32xf32>
    %134 = vector.shape_cast %133 : vector<1x1x32xf32> to vector<1x32xf32>
    %cst_61 = arith.constant dense<0.000000e+00> : vector<16x64xf32>
    %135 = tpu.matmul %18, %130, %cst_61 {dimension_numbers = #tpu.dot_dimension_numbers<[1], [0], [0], [1], [0, 0, 1, 1], [], []>} : vector<16x16xf32>, vector<16x64xf32>, vector<16x64xf32> -> vector<16x64xf32>
    %cst_62 = arith.constant dense<0.000000e+00> : vector<16x64xf32>
    %136 = tpu.matmul %23, %130, %cst_62 {dimension_numbers = #tpu.dot_dimension_numbers<[1], [0], [0], [1], [0, 0, 1, 1], [], []>} : vector<16x16xf32>, vector<16x64xf32>, vector<16x64xf32> -> vector<16x64xf32>
    %137 = tpu.concatenate %135, %130, %136 in 1 : vector<16x64xf32>, vector<16x64xf32>, vector<16x64xf32> -> vector<16x192xf32>
    %138 = arith.truncf %137 : vector<16x192xf32> to vector<16x192xbf16>
    %cst_63 = arith.constant dense<0.000000e+00> : vector<16x32xf32>
    %139 = tpu.matmul %138, %132, %cst_63 {dimension_numbers = #tpu.dot_dimension_numbers<[1], [0], [0], [1], [0, 0, 1, 1], [], []>} : vector<16x192xbf16>, vector<192x32xbf16>, vector<16x32xf32> -> vector<16x32xf32>
    %140 = vector.broadcast %134 : vector<1x32xf32> to vector<16x32xf32>
    %141 = arith.addf %139, %140 : vector<16x32xf32>
    %142 = vector.broadcast %3 : vector<16x1xf32> to vector<16x32xf32>
    %143 = arith.mulf %141, %142 : vector<16x32xf32>
    %144 = arith.addf %113, %143 : vector<16x32xf32>
    %c0_64 = arith.constant 0 : index
    %c0_65 = arith.constant 0 : index
    %c0_66 = arith.constant 0 : index
    %145 = vector.load %arg15[%c0_64, %c0_65, %c0_66] : memref<2x1x32xf32, #tpu.memory_space<vmem>>, vector<1x1x32xf32>
    %146 = vector.shape_cast %145 : vector<1x1x32xf32> to vector<1x32xf32>
    %c0_67 = arith.constant 0 : index
    %c0_68 = arith.constant 0 : index
    %c0_69 = arith.constant 0 : index
    %147 = vector.load %arg16[%c0_67, %c0_68, %c0_69] : memref<2x1x32xf32, #tpu.memory_space<vmem>>, vector<1x1x32xf32>
    %148 = vector.shape_cast %147 : vector<1x1x32xf32> to vector<1x32xf32>
    %cst_70 = arith.constant dense<0.000000e+00> : vector<16xf32>
    %149 = vector.multi_reduction <add>, %144, %cst_70 [1] : vector<16x32xf32> to vector<16xf32>
    %150 = vector.shape_cast %149 : vector<16xf32> to vector<16x1xf32>
    %cst_71 = arith.constant 3.200000e+01 : f32
    %151 = vector.broadcast %cst_71 : f32 to vector<16x1xf32>
    %152 = arith.divf %150, %151 : vector<16x1xf32>
    %153 = vector.broadcast %152 : vector<16x1xf32> to vector<16x32xf32>
    %154 = arith.subf %144, %153 : vector<16x32xf32>
    %155 = arith.mulf %154, %154 : vector<16x32xf32>
    %cst_72 = arith.constant dense<0.000000e+00> : vector<16xf32>
    %156 = vector.multi_reduction <add>, %155, %cst_72 [1] : vector<16x32xf32> to vector<16xf32>
    %157 = vector.shape_cast %156 : vector<16xf32> to vector<16x1xf32>
    %cst_73 = arith.constant 3.200000e+01 : f32
    %158 = vector.broadcast %cst_73 : f32 to vector<16x1xf32>
    %159 = arith.divf %157, %158 : vector<16x1xf32>
    %160 = vector.broadcast %152 : vector<16x1xf32> to vector<16x32xf32>
    %161 = arith.subf %144, %160 : vector<16x32xf32>
    %cst_74 = arith.constant 9.99999974E-6 : f32
    %162 = vector.broadcast %cst_74 : f32 to vector<16x1xf32>
    %163 = arith.addf %159, %162 : vector<16x1xf32>
    %164 = math.rsqrt %163 : vector<16x1xf32>
    %165 = vector.broadcast %164 : vector<16x1xf32> to vector<16x32xf32>
    %166 = arith.mulf %161, %165 : vector<16x32xf32>
    %167 = vector.broadcast %146 : vector<1x32xf32> to vector<16x32xf32>
    %168 = arith.mulf %166, %167 : vector<16x32xf32>
    %169 = vector.broadcast %148 : vector<1x32xf32> to vector<16x32xf32>
    %170 = arith.addf %168, %169 : vector<16x32xf32>
    %171 = arith.truncf %170 : vector<16x32xf32> to vector<16x32xbf16>
    %c1 = arith.constant 1 : index
    %c0_75 = arith.constant 0 : index
    %c0_76 = arith.constant 0 : index
    %172 = vector.load %arg5[%c1, %c0_75, %c0_76] : memref<2x32x96xbf16, #tpu.memory_space<vmem>>, vector<1x32x96xbf16>
    %173 = vector.shape_cast %172 : vector<1x32x96xbf16> to vector<32x96xbf16>
    %cst_77 = arith.constant dense<0.000000e+00> : vector<16x96xf32>
    %174 = tpu.matmul %171, %173, %cst_77 {dimension_numbers = #tpu.dot_dimension_numbers<[1], [0], [0], [1], [0, 0, 1, 1], [], []>} : vector<16x32xbf16>, vector<32x96xbf16>, vector<16x96xf32> -> vector<16x96xf32>
    %c1_78 = arith.constant 1 : index
    %c0_79 = arith.constant 0 : index
    %c0_80 = arith.constant 0 : index
    %175 = vector.load %arg6[%c1_78, %c0_79, %c0_80] : memref<2x1x96xf32, #tpu.memory_space<vmem>>, vector<1x1x96xf32>
    %176 = vector.shape_cast %175 : vector<1x1x96xf32> to vector<1x96xf32>
    %177 = vector.broadcast %176 : vector<1x96xf32> to vector<16x96xf32>
    %178 = arith.addf %174, %177 : vector<16x96xf32>
    %179 = vector.extract_strided_slice %178 {offsets = [0, 0], sizes = [16, 16], strides = [1, 1]} : vector<16x96xf32> to vector<16x16xf32>
    %180 = arith.truncf %179 : vector<16x16xf32> to vector<16x16xbf16>
    %181 = vector.extract_strided_slice %178 {offsets = [0, 32], sizes = [16, 16], strides = [1, 1]} : vector<16x96xf32> to vector<16x16xf32>
    %182 = arith.truncf %181 : vector<16x16xf32> to vector<16x16xbf16>
    %183 = vector.extract_strided_slice %178 {offsets = [0, 64], sizes = [16, 16], strides = [1, 1]} : vector<16x96xf32> to vector<16x16xf32>
    %184 = arith.truncf %183 : vector<16x16xf32> to vector<16x16xbf16>
    %cst_81 = arith.constant dense<0.000000e+00> : vector<16x16xf32>
    %185 = tpu.matmul %180, %182, %cst_81 {dimension_numbers = #tpu.dot_dimension_numbers<[1], [1], [0], [0], [0, 0, 1, 0], [], []>} : vector<16x16xbf16>, vector<16x16xbf16>, vector<16x16xf32> -> vector<16x16xf32>
    %cst_82 = arith.constant 2.500000e-01 : f32
    %186 = vector.broadcast %cst_82 : f32 to vector<16x16xf32>
    %187 = arith.mulf %185, %186 : vector<16x16xf32>
    %188 = vector.broadcast %11 : vector<1x16xf32> to vector<16x16xf32>
    %189 = arith.addf %187, %188 : vector<16x16xf32>
    %cst_83 = arith.constant dense<0xFF800000> : vector<16xf32>
    %190 = vector.multi_reduction <maximumf>, %189, %cst_83 [1] : vector<16x16xf32> to vector<16xf32>
    %191 = vector.shape_cast %190 : vector<16xf32> to vector<16x1xf32>
    %192 = vector.broadcast %191 : vector<16x1xf32> to vector<16x16xf32>
    %193 = arith.subf %189, %192 : vector<16x16xf32>
    %194 = math.exp %193 : vector<16x16xf32>
    %cst_84 = arith.constant dense<0.000000e+00> : vector<16xf32>
    %195 = vector.multi_reduction <add>, %194, %cst_84 [1] : vector<16x16xf32> to vector<16xf32>
    %196 = vector.shape_cast %195 : vector<16xf32> to vector<16x1xf32>
    %197 = tpu.reciprocal %196 {approx = true} : vector<16x1xf32> -> vector<16x1xf32>
    %198 = vector.broadcast %197 : vector<16x1xf32> to vector<16x16xf32>
    %199 = arith.mulf %194, %198 : vector<16x16xf32>
    %200 = arith.truncf %199 : vector<16x16xf32> to vector<16x16xbf16>
    %cst_85 = arith.constant dense<0.000000e+00> : vector<16x16xf32>
    %201 = tpu.matmul %200, %184, %cst_85 {dimension_numbers = #tpu.dot_dimension_numbers<[1], [0], [0], [1], [0, 0, 1, 1], [], []>} : vector<16x16xbf16>, vector<16x16xbf16>, vector<16x16xf32> -> vector<16x16xf32>
    %202 = vector.extract_strided_slice %178 {offsets = [0, 16], sizes = [16, 16], strides = [1, 1]} : vector<16x96xf32> to vector<16x16xf32>
    %203 = arith.truncf %202 : vector<16x16xf32> to vector<16x16xbf16>
    %204 = vector.extract_strided_slice %178 {offsets = [0, 48], sizes = [16, 16], strides = [1, 1]} : vector<16x96xf32> to vector<16x16xf32>
    %205 = arith.truncf %204 : vector<16x16xf32> to vector<16x16xbf16>
    %206 = vector.extract_strided_slice %178 {offsets = [0, 80], sizes = [16, 16], strides = [1, 1]} : vector<16x96xf32> to vector<16x16xf32>
    %207 = arith.truncf %206 : vector<16x16xf32> to vector<16x16xbf16>
    %cst_86 = arith.constant dense<0.000000e+00> : vector<16x16xf32>
    %208 = tpu.matmul %203, %205, %cst_86 {dimension_numbers = #tpu.dot_dimension_numbers<[1], [1], [0], [0], [0, 0, 1, 0], [], []>} : vector<16x16xbf16>, vector<16x16xbf16>, vector<16x16xf32> -> vector<16x16xf32>
    %cst_87 = arith.constant 2.500000e-01 : f32
    %209 = vector.broadcast %cst_87 : f32 to vector<16x16xf32>
    %210 = arith.mulf %208, %209 : vector<16x16xf32>
    %211 = vector.broadcast %11 : vector<1x16xf32> to vector<16x16xf32>
    %212 = arith.addf %210, %211 : vector<16x16xf32>
    %cst_88 = arith.constant dense<0xFF800000> : vector<16xf32>
    %213 = vector.multi_reduction <maximumf>, %212, %cst_88 [1] : vector<16x16xf32> to vector<16xf32>
    %214 = vector.shape_cast %213 : vector<16xf32> to vector<16x1xf32>
    %215 = vector.broadcast %214 : vector<16x1xf32> to vector<16x16xf32>
    %216 = arith.subf %212, %215 : vector<16x16xf32>
    %217 = math.exp %216 : vector<16x16xf32>
    %cst_89 = arith.constant dense<0.000000e+00> : vector<16xf32>
    %218 = vector.multi_reduction <add>, %217, %cst_89 [1] : vector<16x16xf32> to vector<16xf32>
    %219 = vector.shape_cast %218 : vector<16xf32> to vector<16x1xf32>
    %220 = tpu.reciprocal %219 {approx = true} : vector<16x1xf32> -> vector<16x1xf32>
    %221 = vector.broadcast %220 : vector<16x1xf32> to vector<16x16xf32>
    %222 = arith.mulf %217, %221 : vector<16x16xf32>
    %223 = arith.truncf %222 : vector<16x16xf32> to vector<16x16xbf16>
    %cst_90 = arith.constant dense<0.000000e+00> : vector<16x16xf32>
    %224 = tpu.matmul %223, %207, %cst_90 {dimension_numbers = #tpu.dot_dimension_numbers<[1], [0], [0], [1], [0, 0, 1, 1], [], []>} : vector<16x16xbf16>, vector<16x16xbf16>, vector<16x16xf32> -> vector<16x16xf32>
    %225 = tpu.concatenate %201, %224 in 1 : vector<16x16xf32>, vector<16x16xf32> -> vector<16x32xf32>
    %226 = arith.truncf %225 : vector<16x32xf32> to vector<16x32xbf16>
    %c1_91 = arith.constant 1 : index
    %c0_92 = arith.constant 0 : index
    %c0_93 = arith.constant 0 : index
    %227 = vector.load %arg7[%c1_91, %c0_92, %c0_93] : memref<2x32x32xbf16, #tpu.memory_space<vmem>>, vector<1x32x32xbf16>
    %228 = vector.shape_cast %227 : vector<1x32x32xbf16> to vector<32x32xbf16>
    %cst_94 = arith.constant dense<0.000000e+00> : vector<16x32xf32>
    %229 = tpu.matmul %226, %228, %cst_94 {dimension_numbers = #tpu.dot_dimension_numbers<[1], [0], [0], [1], [0, 0, 1, 1], [], []>} : vector<16x32xbf16>, vector<32x32xbf16>, vector<16x32xf32> -> vector<16x32xf32>
    %c1_95 = arith.constant 1 : index
    %c0_96 = arith.constant 0 : index
    %c0_97 = arith.constant 0 : index
    %230 = vector.load %arg8[%c1_95, %c0_96, %c0_97] : memref<2x1x32xf32, #tpu.memory_space<vmem>>, vector<1x1x32xf32>
    %231 = vector.shape_cast %230 : vector<1x1x32xf32> to vector<1x32xf32>
    %232 = vector.broadcast %231 : vector<1x32xf32> to vector<16x32xf32>
    %233 = arith.addf %229, %232 : vector<16x32xf32>
    %234 = arith.addf %170, %233 : vector<16x32xf32>
    %c1_98 = arith.constant 1 : index
    %c0_99 = arith.constant 0 : index
    %c0_100 = arith.constant 0 : index
    %235 = vector.load %arg9[%c1_98, %c0_99, %c0_100] : memref<2x1x32xf32, #tpu.memory_space<vmem>>, vector<1x1x32xf32>
    %236 = vector.shape_cast %235 : vector<1x1x32xf32> to vector<1x32xf32>
    %c1_101 = arith.constant 1 : index
    %c0_102 = arith.constant 0 : index
    %c0_103 = arith.constant 0 : index
    %237 = vector.load %arg10[%c1_101, %c0_102, %c0_103] : memref<2x1x32xf32, #tpu.memory_space<vmem>>, vector<1x1x32xf32>
    %238 = vector.shape_cast %237 : vector<1x1x32xf32> to vector<1x32xf32>
    %cst_104 = arith.constant dense<0.000000e+00> : vector<16xf32>
    %239 = vector.multi_reduction <add>, %234, %cst_104 [1] : vector<16x32xf32> to vector<16xf32>
    %240 = vector.shape_cast %239 : vector<16xf32> to vector<16x1xf32>
    %cst_105 = arith.constant 3.200000e+01 : f32
    %241 = vector.broadcast %cst_105 : f32 to vector<16x1xf32>
    %242 = arith.divf %240, %241 : vector<16x1xf32>
    %243 = vector.broadcast %242 : vector<16x1xf32> to vector<16x32xf32>
    %244 = arith.subf %234, %243 : vector<16x32xf32>
    %245 = arith.mulf %244, %244 : vector<16x32xf32>
    %cst_106 = arith.constant dense<0.000000e+00> : vector<16xf32>
    %246 = vector.multi_reduction <add>, %245, %cst_106 [1] : vector<16x32xf32> to vector<16xf32>
    %247 = vector.shape_cast %246 : vector<16xf32> to vector<16x1xf32>
    %cst_107 = arith.constant 3.200000e+01 : f32
    %248 = vector.broadcast %cst_107 : f32 to vector<16x1xf32>
    %249 = arith.divf %247, %248 : vector<16x1xf32>
    %250 = vector.broadcast %242 : vector<16x1xf32> to vector<16x32xf32>
    %251 = arith.subf %234, %250 : vector<16x32xf32>
    %cst_108 = arith.constant 9.99999974E-6 : f32
    %252 = vector.broadcast %cst_108 : f32 to vector<16x1xf32>
    %253 = arith.addf %249, %252 : vector<16x1xf32>
    %254 = math.rsqrt %253 : vector<16x1xf32>
    %255 = vector.broadcast %254 : vector<16x1xf32> to vector<16x32xf32>
    %256 = arith.mulf %251, %255 : vector<16x32xf32>
    %257 = vector.broadcast %236 : vector<1x32xf32> to vector<16x32xf32>
    %258 = arith.mulf %256, %257 : vector<16x32xf32>
    %259 = vector.broadcast %238 : vector<1x32xf32> to vector<16x32xf32>
    %260 = arith.addf %258, %259 : vector<16x32xf32>
    %261 = vector.broadcast %3 : vector<16x1xf32> to vector<16x32xf32>
    %262 = arith.mulf %260, %261 : vector<16x32xf32>
    %c1_109 = arith.constant 1 : index
    %c0_110 = arith.constant 0 : index
    %c0_111 = arith.constant 0 : index
    %263 = vector.load %arg11[%c1_109, %c0_110, %c0_111] : memref<2x96x64xbf16, #tpu.memory_space<vmem>>, vector<1x96x64xbf16>
    %264 = vector.shape_cast %263 : vector<1x96x64xbf16> to vector<96x64xbf16>
    %c1_112 = arith.constant 1 : index
    %c0_113 = arith.constant 0 : index
    %c0_114 = arith.constant 0 : index
    %265 = vector.load %arg12[%c1_112, %c0_113, %c0_114] : memref<2x1x64xf32, #tpu.memory_space<vmem>>, vector<1x1x64xf32>
    %266 = vector.shape_cast %265 : vector<1x1x64xf32> to vector<1x64xf32>
    %cst_115 = arith.constant dense<0.000000e+00> : vector<16x32xf32>
    %267 = tpu.matmul %18, %262, %cst_115 {dimension_numbers = #tpu.dot_dimension_numbers<[1], [0], [0], [1], [0, 0, 1, 1], [], []>} : vector<16x16xf32>, vector<16x32xf32>, vector<16x32xf32> -> vector<16x32xf32>
    %cst_116 = arith.constant dense<0.000000e+00> : vector<16x32xf32>
    %268 = tpu.matmul %23, %262, %cst_116 {dimension_numbers = #tpu.dot_dimension_numbers<[1], [0], [0], [1], [0, 0, 1, 1], [], []>} : vector<16x16xf32>, vector<16x32xf32>, vector<16x32xf32> -> vector<16x32xf32>
    %269 = tpu.concatenate %267, %262, %268 in 1 : vector<16x32xf32>, vector<16x32xf32>, vector<16x32xf32> -> vector<16x96xf32>
    %270 = arith.truncf %269 : vector<16x96xf32> to vector<16x96xbf16>
    %cst_117 = arith.constant dense<0.000000e+00> : vector<16x64xf32>
    %271 = tpu.matmul %270, %264, %cst_117 {dimension_numbers = #tpu.dot_dimension_numbers<[1], [0], [0], [1], [0, 0, 1, 1], [], []>} : vector<16x96xbf16>, vector<96x64xbf16>, vector<16x64xf32> -> vector<16x64xf32>
    %272 = vector.broadcast %266 : vector<1x64xf32> to vector<16x64xf32>
    %273 = arith.addf %271, %272 : vector<16x64xf32>
    %cst_118 = arith.constant 0.000000e+00 : f32
    %274 = vector.broadcast %cst_118 : f32 to vector<16x64xf32>
    %275 = arith.maximumf %273, %274 : vector<16x64xf32>
    %276 = vector.broadcast %3 : vector<16x1xf32> to vector<16x64xf32>
    %277 = arith.mulf %275, %276 : vector<16x64xf32>
    %c1_119 = arith.constant 1 : index
    %c0_120 = arith.constant 0 : index
    %c0_121 = arith.constant 0 : index
    %278 = vector.load %arg13[%c1_119, %c0_120, %c0_121] : memref<2x192x32xbf16, #tpu.memory_space<vmem>>, vector<1x192x32xbf16>
    %279 = vector.shape_cast %278 : vector<1x192x32xbf16> to vector<192x32xbf16>
    %c1_122 = arith.constant 1 : index
    %c0_123 = arith.constant 0 : index
    %c0_124 = arith.constant 0 : index
    %280 = vector.load %arg14[%c1_122, %c0_123, %c0_124] : memref<2x1x32xf32, #tpu.memory_space<vmem>>, vector<1x1x32xf32>
    %281 = vector.shape_cast %280 : vector<1x1x32xf32> to vector<1x32xf32>
    %cst_125 = arith.constant dense<0.000000e+00> : vector<16x64xf32>
    %282 = tpu.matmul %18, %277, %cst_125 {dimension_numbers = #tpu.dot_dimension_numbers<[1], [0], [0], [1], [0, 0, 1, 1], [], []>} : vector<16x16xf32>, vector<16x64xf32>, vector<16x64xf32> -> vector<16x64xf32>
    %cst_126 = arith.constant dense<0.000000e+00> : vector<16x64xf32>
    %283 = tpu.matmul %23, %277, %cst_126 {dimension_numbers = #tpu.dot_dimension_numbers<[1], [0], [0], [1], [0, 0, 1, 1], [], []>} : vector<16x16xf32>, vector<16x64xf32>, vector<16x64xf32> -> vector<16x64xf32>
    %284 = tpu.concatenate %282, %277, %283 in 1 : vector<16x64xf32>, vector<16x64xf32>, vector<16x64xf32> -> vector<16x192xf32>
    %285 = arith.truncf %284 : vector<16x192xf32> to vector<16x192xbf16>
    %cst_127 = arith.constant dense<0.000000e+00> : vector<16x32xf32>
    %286 = tpu.matmul %285, %279, %cst_127 {dimension_numbers = #tpu.dot_dimension_numbers<[1], [0], [0], [1], [0, 0, 1, 1], [], []>} : vector<16x192xbf16>, vector<192x32xbf16>, vector<16x32xf32> -> vector<16x32xf32>
    %287 = vector.broadcast %281 : vector<1x32xf32> to vector<16x32xf32>
    %288 = arith.addf %286, %287 : vector<16x32xf32>
    %289 = vector.broadcast %3 : vector<16x1xf32> to vector<16x32xf32>
    %290 = arith.mulf %288, %289 : vector<16x32xf32>
    %291 = arith.addf %260, %290 : vector<16x32xf32>
    %c1_128 = arith.constant 1 : index
    %c0_129 = arith.constant 0 : index
    %c0_130 = arith.constant 0 : index
    %292 = vector.load %arg15[%c1_128, %c0_129, %c0_130] : memref<2x1x32xf32, #tpu.memory_space<vmem>>, vector<1x1x32xf32>
    %293 = vector.shape_cast %292 : vector<1x1x32xf32> to vector<1x32xf32>
    %c1_131 = arith.constant 1 : index
    %c0_132 = arith.constant 0 : index
    %c0_133 = arith.constant 0 : index
    %294 = vector.load %arg16[%c1_131, %c0_132, %c0_133] : memref<2x1x32xf32, #tpu.memory_space<vmem>>, vector<1x1x32xf32>
    %295 = vector.shape_cast %294 : vector<1x1x32xf32> to vector<1x32xf32>
    %cst_134 = arith.constant dense<0.000000e+00> : vector<16xf32>
    %296 = vector.multi_reduction <add>, %291, %cst_134 [1] : vector<16x32xf32> to vector<16xf32>
    %297 = vector.shape_cast %296 : vector<16xf32> to vector<16x1xf32>
    %cst_135 = arith.constant 3.200000e+01 : f32
    %298 = vector.broadcast %cst_135 : f32 to vector<16x1xf32>
    %299 = arith.divf %297, %298 : vector<16x1xf32>
    %300 = vector.broadcast %299 : vector<16x1xf32> to vector<16x32xf32>
    %301 = arith.subf %291, %300 : vector<16x32xf32>
    %302 = arith.mulf %301, %301 : vector<16x32xf32>
    %cst_136 = arith.constant dense<0.000000e+00> : vector<16xf32>
    %303 = vector.multi_reduction <add>, %302, %cst_136 [1] : vector<16x32xf32> to vector<16xf32>
    %304 = vector.shape_cast %303 : vector<16xf32> to vector<16x1xf32>
    %cst_137 = arith.constant 3.200000e+01 : f32
    %305 = vector.broadcast %cst_137 : f32 to vector<16x1xf32>
    %306 = arith.divf %304, %305 : vector<16x1xf32>
    %307 = vector.broadcast %299 : vector<16x1xf32> to vector<16x32xf32>
    %308 = arith.subf %291, %307 : vector<16x32xf32>
    %cst_138 = arith.constant 9.99999974E-6 : f32
    %309 = vector.broadcast %cst_138 : f32 to vector<16x1xf32>
    %310 = arith.addf %306, %309 : vector<16x1xf32>
    %311 = math.rsqrt %310 : vector<16x1xf32>
    %312 = vector.broadcast %311 : vector<16x1xf32> to vector<16x32xf32>
    %313 = arith.mulf %308, %312 : vector<16x32xf32>
    %314 = vector.broadcast %293 : vector<1x32xf32> to vector<16x32xf32>
    %315 = arith.mulf %313, %314 : vector<16x32xf32>
    %316 = vector.broadcast %295 : vector<1x32xf32> to vector<16x32xf32>
    %317 = arith.addf %315, %316 : vector<16x32xf32>
    %318 = vector.broadcast %3 : vector<16x1xf32> to vector<16x32xf32>
    %319 = arith.mulf %317, %318 : vector<16x32xf32>
    %c0_139 = arith.constant 0 : index
    %c0_140 = arith.constant 0 : index
    %c0_141 = arith.constant 0 : index
    %320 = vector.load %arg4[%c0_139, %c0_140, %c0_141] : memref<1x16x32xf32, #tpu.memory_space<vmem>>, vector<1x16x32xf32>
    %321 = vector.shape_cast %320 : vector<1x16x32xf32> to vector<16x32xf32>
    %322 = arith.addf %319, %321 : vector<16x32xf32>
    %c0_142 = arith.constant 0 : index
    %c0_143 = arith.constant 0 : index
    %c0_144 = arith.constant 0 : index
    %323 = vector.load %arg17[%c0_142, %c0_143, %c0_144] : memref<1x16x32xf32, #tpu.memory_space<vmem>>, vector<1x16x32xf32>
    %324 = vector.shape_cast %323 : vector<1x16x32xf32> to vector<16x32xf32>
    %325 = vector.shape_cast %322 : vector<16x32xf32> to vector<1x16x32xf32>
    tpu.vector_store %arg17[%c0_142, %c0_143, %c0_144], %325 {strides = array<i32>} : memref<1x16x32xf32, #tpu.memory_space<vmem>>, vector<1x16x32xf32>,
    return
  }
  func.func @transform_0(%arg0: i32) -> (i32, i32, i32) {
    %c0_i32 = arith.constant 0 : i32
    %c0_i32_0 = arith.constant 0 : i32
    %c0_i32_1 = arith.constant 0 : i32
    return %arg0, %c0_i32, %c0_i32_0 : i32, i32, i32
  }
  func.func @transform_1(%arg0: i32) -> (i32, i32, i32) {
    %c0_i32 = arith.constant 0 : i32
    %c0_i32_0 = arith.constant 0 : i32
    %c0_i32_1 = arith.constant 0 : i32
    return %arg0, %c0_i32, %c0_i32_0 : i32, i32, i32
  }
  func.func @transform_2(%arg0: i32) -> (i32, i32, i32) {
    %c0_i32 = arith.constant 0 : i32
    %c0_i32_0 = arith.constant 0 : i32
    %c0_i32_1 = arith.constant 0 : i32
    return %arg0, %c0_i32, %c0_i32_0 : i32, i32, i32
  }
  func.func @transform_3(%arg0: i32) -> (i32, i32, i32) {
    %c0_i32 = arith.constant 0 : i32
    %c0_i32_0 = arith.constant 0 : i32
    %c0_i32_1 = arith.constant 0 : i32
    %c0_i32_2 = arith.constant 0 : i32
    return %c0_i32, %c0_i32_0, %c0_i32_1 : i32, i32, i32
  }
  func.func @transform_4(%arg0: i32) -> (i32, i32, i32) {
    %c0_i32 = arith.constant 0 : i32
    %c0_i32_0 = arith.constant 0 : i32
    %c0_i32_1 = arith.constant 0 : i32
    %c0_i32_2 = arith.constant 0 : i32
    return %c0_i32, %c0_i32_0, %c0_i32_1 : i32, i32, i32
  }
  func.func @transform_5(%arg0: i32) -> (i32, i32, i32) {
    %c0_i32 = arith.constant 0 : i32
    %c0_i32_0 = arith.constant 0 : i32
    %c0_i32_1 = arith.constant 0 : i32
    %c0_i32_2 = arith.constant 0 : i32
    return %c0_i32, %c0_i32_0, %c0_i32_1 : i32, i32, i32
  }
  func.func @transform_6(%arg0: i32) -> (i32, i32, i32) {
    %c0_i32 = arith.constant 0 : i32
    %c0_i32_0 = arith.constant 0 : i32
    %c0_i32_1 = arith.constant 0 : i32
    %c0_i32_2 = arith.constant 0 : i32
    return %c0_i32, %c0_i32_0, %c0_i32_1 : i32, i32, i32
  }
  func.func @transform_7(%arg0: i32) -> (i32, i32, i32) {
    %c0_i32 = arith.constant 0 : i32
    %c0_i32_0 = arith.constant 0 : i32
    %c0_i32_1 = arith.constant 0 : i32
    %c0_i32_2 = arith.constant 0 : i32
    return %c0_i32, %c0_i32_0, %c0_i32_1 : i32, i32, i32
  }
  func.func @transform_8(%arg0: i32) -> (i32, i32, i32) {
    %c0_i32 = arith.constant 0 : i32
    %c0_i32_0 = arith.constant 0 : i32
    %c0_i32_1 = arith.constant 0 : i32
    %c0_i32_2 = arith.constant 0 : i32
    return %c0_i32, %c0_i32_0, %c0_i32_1 : i32, i32, i32
  }
  func.func @transform_9(%arg0: i32) -> (i32, i32, i32) {
    %c0_i32 = arith.constant 0 : i32
    %c0_i32_0 = arith.constant 0 : i32
    %c0_i32_1 = arith.constant 0 : i32
    %c0_i32_2 = arith.constant 0 : i32
    return %c0_i32, %c0_i32_0, %c0_i32_1 : i32, i32, i32
  }
  func.func @transform_10(%arg0: i32) -> (i32, i32, i32) {
    %c0_i32 = arith.constant 0 : i32
    %c0_i32_0 = arith.constant 0 : i32
    %c0_i32_1 = arith.constant 0 : i32
    %c0_i32_2 = arith.constant 0 : i32
    return %c0_i32, %c0_i32_0, %c0_i32_1 : i32, i32, i32
  }
  func.func @transform_11(%arg0: i32) -> (i32, i32, i32) {
    %c0_i32 = arith.constant 0 : i32
    %c0_i32_0 = arith.constant 0 : i32
    %c0_i32_1 = arith.constant 0 : i32
    %c0_i32_2 = arith.constant 0 : i32
    return %c0_i32, %c0_i32_0, %c0_i32_1 : i32, i32, i32
  }
  func.func @transform_12(%arg0: i32) -> (i32, i32, i32) {
    %c0_i32 = arith.constant 0 : i32
    %c0_i32_0 = arith.constant 0 : i32
    %c0_i32_1 = arith.constant 0 : i32
    %c0_i32_2 = arith.constant 0 : i32
    return %c0_i32, %c0_i32_0, %c0_i32_1 : i32, i32, i32
  }
  func.func @transform_13(%arg0: i32) -> (i32, i32, i32) {
    %c0_i32 = arith.constant 0 : i32
    %c0_i32_0 = arith.constant 0 : i32
    %c0_i32_1 = arith.constant 0 : i32
    %c0_i32_2 = arith.constant 0 : i32
    return %c0_i32, %c0_i32_0, %c0_i32_1 : i32, i32, i32
  }
  func.func @transform_14(%arg0: i32) -> (i32, i32, i32) {
    %c0_i32 = arith.constant 0 : i32
    %c0_i32_0 = arith.constant 0 : i32
    %c0_i32_1 = arith.constant 0 : i32
    %c0_i32_2 = arith.constant 0 : i32
    return %c0_i32, %c0_i32_0, %c0_i32_1 : i32, i32, i32
  }
  func.func @transform_15(%arg0: i32) -> (i32, i32, i32) {
    %c0_i32 = arith.constant 0 : i32
    %c0_i32_0 = arith.constant 0 : i32
    %c0_i32_1 = arith.constant 0 : i32
    %c0_i32_2 = arith.constant 0 : i32
    return %c0_i32, %c0_i32_0, %c0_i32_1 : i32, i32, i32
  }
  func.func @transform_16(%arg0: i32) -> (i32, i32, i32) {
    %c0_i32 = arith.constant 0 : i32
    %c0_i32_0 = arith.constant 0 : i32
    %c0_i32_1 = arith.constant 0 : i32
    return %arg0, %c0_i32, %c0_i32_0 : i32, i32, i32
  }
}

module attributes {stable_mosaic.version = 11 : i64} {
  func.func @_va_kernel(%arg0: i32, %arg1: memref<1x16x32xf32, #tpu.memory_space<vmem>>, %arg2: memref<1x1x16xf32, #tpu.memory_space<vmem>>, %arg3: memref<1x16x1xf32, #tpu.memory_space<vmem>>, %arg4: memref<3x96x32xbf16, #tpu.memory_space<vmem>>, %arg5: memref<3x1x32xf32, #tpu.memory_space<vmem>>, %arg6: memref<3x1x32xf32, #tpu.memory_space<vmem>>, %arg7: memref<3x1x32xf32, #tpu.memory_space<vmem>>, %arg8: memref<3x96x32xbf16, #tpu.memory_space<vmem>>, %arg9: memref<3x1x32xf32, #tpu.memory_space<vmem>>, %arg10: memref<3x1x32xf32, #tpu.memory_space<vmem>>, %arg11: memref<3x1x32xf32, #tpu.memory_space<vmem>>, %arg12: memref<1x32xbf16, #tpu.memory_space<vmem>>, %arg13: memref<1x1xf32, #tpu.memory_space<vmem>>, %arg14: memref<2x1x32xf32, #tpu.memory_space<vmem>>, %arg15: memref<2x1x1xf32, #tpu.memory_space<vmem>>, %arg16: memref<1x16xf32, #tpu.memory_space<vmem>>, %arg17: memref<1x16xf32, #tpu.memory_space<vmem>>, %arg18: memref<16x32xf32, #tpu.memory_space<vmem>>, %arg19: memref<1x16xf32, #tpu.memory_space<vmem>>, %arg20: memref<1x16xf32, #tpu.memory_space<vmem>>, %arg21: memref<16x32xf32, #tpu.memory_space<vmem>>, %arg22: memref<24x40xf32, #tpu.memory_space<vmem>>, %arg23: memref<96x8xbf16, #tpu.memory_space<vmem>>, %arg24: memref<1x8xf32, #tpu.memory_space<vmem>>, %arg25: memref<1x24x8xf32, #tpu.memory_space<vmem>>, %arg26: memref<1x16x1xf32, #tpu.memory_space<vmem>>, %arg27: memref<1x16x1xf32, #tpu.memory_space<vmem>>, %arg28: memref<1x1x40xf32, #tpu.memory_space<vmem>>) attributes {dimension_semantics = [#tpu.dimension_semantics<parallel>], iteration_bounds = array<i64: 2>, scalar_prefetch = 0 : i64, scratch_operands = 0 : i64, tpu.core_type = #tpu.core_type<tc>, window_params = [{transform_indices = @transform_0, window_bounds = array<i64: 1, 16, 32>}, {transform_indices = @transform_1, window_bounds = array<i64: 1, 1, 16>}, {transform_indices = @transform_2, window_bounds = array<i64: 1, 16, 1>}, {pipeline_mode = #tpu.pipeline_mode<synchronous>, transform_indices = @transform_3, window_bounds = array<i64: 3, 96, 32>}, {pipeline_mode = #tpu.pipeline_mode<synchronous>, transform_indices = @transform_4, window_bounds = array<i64: 3, 1, 32>}, {pipeline_mode = #tpu.pipeline_mode<synchronous>, transform_indices = @transform_5, window_bounds = array<i64: 3, 1, 32>}, {pipeline_mode = #tpu.pipeline_mode<synchronous>, transform_indices = @transform_6, window_bounds = array<i64: 3, 1, 32>}, {pipeline_mode = #tpu.pipeline_mode<synchronous>, transform_indices = @transform_7, window_bounds = array<i64: 3, 96, 32>}, {pipeline_mode = #tpu.pipeline_mode<synchronous>, transform_indices = @transform_8, window_bounds = array<i64: 3, 1, 32>}, {pipeline_mode = #tpu.pipeline_mode<synchronous>, transform_indices = @transform_9, window_bounds = array<i64: 3, 1, 32>}, {pipeline_mode = #tpu.pipeline_mode<synchronous>, transform_indices = @transform_10, window_bounds = array<i64: 3, 1, 32>}, {pipeline_mode = #tpu.pipeline_mode<synchronous>, transform_indices = @transform_11, window_bounds = array<i64: 1, 32>}, {pipeline_mode = #tpu.pipeline_mode<synchronous>, transform_indices = @transform_12, window_bounds = array<i64: 1, 1>}, {pipeline_mode = #tpu.pipeline_mode<synchronous>, transform_indices = @transform_13, window_bounds = array<i64: 2, 1, 32>}, {pipeline_mode = #tpu.pipeline_mode<synchronous>, transform_indices = @transform_14, window_bounds = array<i64: 2, 1, 1>}, {pipeline_mode = #tpu.pipeline_mode<synchronous>, transform_indices = @transform_15, window_bounds = array<i64: 1, 16>}, {pipeline_mode = #tpu.pipeline_mode<synchronous>, transform_indices = @transform_16, window_bounds = array<i64: 1, 16>}, {pipeline_mode = #tpu.pipeline_mode<synchronous>, transform_indices = @transform_17, window_bounds = array<i64: 16, 32>}, {pipeline_mode = #tpu.pipeline_mode<synchronous>, transform_indices = @transform_18, window_bounds = array<i64: 1, 16>}, {pipeline_mode = #tpu.pipeline_mode<synchronous>, transform_indices = @transform_19, window_bounds = array<i64: 1, 16>}, {pipeline_mode = #tpu.pipeline_mode<synchronous>, transform_indices = @transform_20, window_bounds = array<i64: 16, 32>}, {pipeline_mode = #tpu.pipeline_mode<synchronous>, transform_indices = @transform_21, window_bounds = array<i64: 24, 40>}, {pipeline_mode = #tpu.pipeline_mode<synchronous>, transform_indices = @transform_22, window_bounds = array<i64: 96, 8>}, {pipeline_mode = #tpu.pipeline_mode<synchronous>, transform_indices = @transform_23, window_bounds = array<i64: 1, 8>}, {transform_indices = @transform_24, window_bounds = array<i64: 1, 24, 8>}, {transform_indices = @transform_25, window_bounds = array<i64: 1, 16, 1>}, {transform_indices = @transform_26, window_bounds = array<i64: 1, 16, 1>}, {transform_indices = @transform_27, window_bounds = array<i64: 1, 1, 40>}]} {
    %c0 = arith.constant 0 : index
    %c0_0 = arith.constant 0 : index
    %c0_1 = arith.constant 0 : index
    %0 = vector.load %arg1[%c0, %c0_0, %c0_1] : memref<1x16x32xf32, #tpu.memory_space<vmem>>, vector<1x16x32xf32>
    %1 = vector.shape_cast %0 : vector<1x16x32xf32> to vector<16x32xf32>
    %c0_2 = arith.constant 0 : index
    %c0_3 = arith.constant 0 : index
    %c0_4 = arith.constant 0 : index
    %2 = vector.load %arg2[%c0_2, %c0_3, %c0_4] : memref<1x1x16xf32, #tpu.memory_space<vmem>>, vector<1x1x16xf32>
    %3 = vector.shape_cast %2 : vector<1x1x16xf32> to vector<1x16xf32>
    %c0_5 = arith.constant 0 : index
    %c0_6 = arith.constant 0 : index
    %c0_7 = arith.constant 0 : index
    %4 = vector.load %arg3[%c0_5, %c0_6, %c0_7] : memref<1x16x1xf32, #tpu.memory_space<vmem>>, vector<1x16x1xf32>
    %5 = vector.shape_cast %4 : vector<1x16x1xf32> to vector<16x1xf32>
    %6 = tpu.iota {dimensions = array<i32: 0>} : vector<16x16xi32>
    %7 = tpu.iota {dimensions = array<i32: 1>} : vector<16x16xi32>
    %c1_i32 = arith.constant 1 : i32
    %8 = vector.broadcast %c1_i32 : i32 to vector<16x16xi32>
    %9 = arith.addi %7, %8 : vector<16x16xi32>
    %10 = arith.cmpi eq, %6, %9 : vector<16x16xi32>
    %11 = arith.extui %10 : vector<16x16xi1> to vector<16x16xi32>
    %12 = arith.sitofp %11 : vector<16x16xi32> to vector<16x16xf32>
    %c1_i32_8 = arith.constant 1 : i32
    %13 = vector.broadcast %c1_i32_8 : i32 to vector<16x16xi32>
    %14 = arith.subi %7, %13 : vector<16x16xi32>
    %15 = arith.cmpi eq, %6, %14 : vector<16x16xi32>
    %16 = arith.extui %15 : vector<16x16xi1> to vector<16x16xi32>
    %17 = arith.sitofp %16 : vector<16x16xi32> to vector<16x16xf32>
    %c0_9 = arith.constant 0 : index
    %c0_10 = arith.constant 0 : index
    %c0_11 = arith.constant 0 : index
    %18 = vector.load %arg4[%c0_9, %c0_10, %c0_11] : memref<3x96x32xbf16, #tpu.memory_space<vmem>>, vector<1x96x32xbf16>
    %19 = vector.shape_cast %18 : vector<1x96x32xbf16> to vector<96x32xbf16>
    %c0_12 = arith.constant 0 : index
    %c0_13 = arith.constant 0 : index
    %c0_14 = arith.constant 0 : index
    %20 = vector.load %arg5[%c0_12, %c0_13, %c0_14] : memref<3x1x32xf32, #tpu.memory_space<vmem>>, vector<1x1x32xf32>
    %21 = vector.shape_cast %20 : vector<1x1x32xf32> to vector<1x32xf32>
    %cst = arith.constant dense<0.000000e+00> : vector<16x32xf32>
    %22 = tpu.matmul %12, %1, %cst {dimension_numbers = #tpu.dot_dimension_numbers<[1], [0], [0], [1], [0, 0, 1, 1], [], []>} : vector<16x16xf32>, vector<16x32xf32>, vector<16x32xf32> -> vector<16x32xf32>
    %cst_15 = arith.constant dense<0.000000e+00> : vector<16x32xf32>
    %23 = tpu.matmul %17, %1, %cst_15 {dimension_numbers = #tpu.dot_dimension_numbers<[1], [0], [0], [1], [0, 0, 1, 1], [], []>} : vector<16x16xf32>, vector<16x32xf32>, vector<16x32xf32> -> vector<16x32xf32>
    %24 = tpu.concatenate %22, %1, %23 in 1 : vector<16x32xf32>, vector<16x32xf32>, vector<16x32xf32> -> vector<16x96xf32>
    %25 = arith.truncf %24 : vector<16x96xf32> to vector<16x96xbf16>
    %cst_16 = arith.constant dense<0.000000e+00> : vector<16x32xf32>
    %26 = tpu.matmul %25, %19, %cst_16 {dimension_numbers = #tpu.dot_dimension_numbers<[1], [0], [0], [1], [0, 0, 1, 1], [], []>} : vector<16x96xbf16>, vector<96x32xbf16>, vector<16x32xf32> -> vector<16x32xf32>
    %27 = vector.broadcast %21 : vector<1x32xf32> to vector<16x32xf32>
    %28 = arith.addf %26, %27 : vector<16x32xf32>
    %cst_17 = arith.constant 0.000000e+00 : f32
    %29 = vector.broadcast %cst_17 : f32 to vector<16x32xf32>
    %30 = arith.maximumf %28, %29 : vector<16x32xf32>
    %c0_18 = arith.constant 0 : index
    %c0_19 = arith.constant 0 : index
    %c0_20 = arith.constant 0 : index
    %31 = vector.load %arg6[%c0_18, %c0_19, %c0_20] : memref<3x1x32xf32, #tpu.memory_space<vmem>>, vector<1x1x32xf32>
    %32 = vector.shape_cast %31 : vector<1x1x32xf32> to vector<1x32xf32>
    %c0_21 = arith.constant 0 : index
    %c0_22 = arith.constant 0 : index
    %c0_23 = arith.constant 0 : index
    %33 = vector.load %arg7[%c0_21, %c0_22, %c0_23] : memref<3x1x32xf32, #tpu.memory_space<vmem>>, vector<1x1x32xf32>
    %34 = vector.shape_cast %33 : vector<1x1x32xf32> to vector<1x32xf32>
    %cst_24 = arith.constant dense<0.000000e+00> : vector<16xf32>
    %35 = vector.multi_reduction <add>, %30, %cst_24 [1] : vector<16x32xf32> to vector<16xf32>
    %36 = vector.shape_cast %35 : vector<16xf32> to vector<16x1xf32>
    %cst_25 = arith.constant 3.200000e+01 : f32
    %37 = vector.broadcast %cst_25 : f32 to vector<16x1xf32>
    %38 = arith.divf %36, %37 : vector<16x1xf32>
    %39 = vector.broadcast %38 : vector<16x1xf32> to vector<16x32xf32>
    %40 = arith.subf %30, %39 : vector<16x32xf32>
    %41 = arith.mulf %40, %40 : vector<16x32xf32>
    %cst_26 = arith.constant dense<0.000000e+00> : vector<16xf32>
    %42 = vector.multi_reduction <add>, %41, %cst_26 [1] : vector<16x32xf32> to vector<16xf32>
    %43 = vector.shape_cast %42 : vector<16xf32> to vector<16x1xf32>
    %cst_27 = arith.constant 3.200000e+01 : f32
    %44 = vector.broadcast %cst_27 : f32 to vector<16x1xf32>
    %45 = arith.divf %43, %44 : vector<16x1xf32>
    %46 = vector.broadcast %38 : vector<16x1xf32> to vector<16x32xf32>
    %47 = arith.subf %30, %46 : vector<16x32xf32>
    %cst_28 = arith.constant 9.99999974E-6 : f32
    %48 = vector.broadcast %cst_28 : f32 to vector<16x1xf32>
    %49 = arith.addf %45, %48 : vector<16x1xf32>
    %50 = math.rsqrt %49 : vector<16x1xf32>
    %51 = vector.broadcast %50 : vector<16x1xf32> to vector<16x32xf32>
    %52 = arith.mulf %47, %51 : vector<16x32xf32>
    %53 = vector.broadcast %32 : vector<1x32xf32> to vector<16x32xf32>
    %54 = arith.mulf %52, %53 : vector<16x32xf32>
    %55 = vector.broadcast %34 : vector<1x32xf32> to vector<16x32xf32>
    %56 = arith.addf %54, %55 : vector<16x32xf32>
    %c0_29 = arith.constant 0 : index
    %c0_30 = arith.constant 0 : index
    %c0_31 = arith.constant 0 : index
    %57 = vector.load %arg8[%c0_29, %c0_30, %c0_31] : memref<3x96x32xbf16, #tpu.memory_space<vmem>>, vector<1x96x32xbf16>
    %58 = vector.shape_cast %57 : vector<1x96x32xbf16> to vector<96x32xbf16>
    %c0_32 = arith.constant 0 : index
    %c0_33 = arith.constant 0 : index
    %c0_34 = arith.constant 0 : index
    %59 = vector.load %arg9[%c0_32, %c0_33, %c0_34] : memref<3x1x32xf32, #tpu.memory_space<vmem>>, vector<1x1x32xf32>
    %60 = vector.shape_cast %59 : vector<1x1x32xf32> to vector<1x32xf32>
    %cst_35 = arith.constant dense<0.000000e+00> : vector<16x32xf32>
    %61 = tpu.matmul %12, %56, %cst_35 {dimension_numbers = #tpu.dot_dimension_numbers<[1], [0], [0], [1], [0, 0, 1, 1], [], []>} : vector<16x16xf32>, vector<16x32xf32>, vector<16x32xf32> -> vector<16x32xf32>
    %cst_36 = arith.constant dense<0.000000e+00> : vector<16x32xf32>
    %62 = tpu.matmul %17, %56, %cst_36 {dimension_numbers = #tpu.dot_dimension_numbers<[1], [0], [0], [1], [0, 0, 1, 1], [], []>} : vector<16x16xf32>, vector<16x32xf32>, vector<16x32xf32> -> vector<16x32xf32>
    %63 = tpu.concatenate %61, %56, %62 in 1 : vector<16x32xf32>, vector<16x32xf32>, vector<16x32xf32> -> vector<16x96xf32>
    %64 = arith.truncf %63 : vector<16x96xf32> to vector<16x96xbf16>
    %cst_37 = arith.constant dense<0.000000e+00> : vector<16x32xf32>
    %65 = tpu.matmul %64, %58, %cst_37 {dimension_numbers = #tpu.dot_dimension_numbers<[1], [0], [0], [1], [0, 0, 1, 1], [], []>} : vector<16x96xbf16>, vector<96x32xbf16>, vector<16x32xf32> -> vector<16x32xf32>
    %66 = vector.broadcast %60 : vector<1x32xf32> to vector<16x32xf32>
    %67 = arith.addf %65, %66 : vector<16x32xf32>
    %cst_38 = arith.constant 0.000000e+00 : f32
    %68 = vector.broadcast %cst_38 : f32 to vector<16x32xf32>
    %69 = arith.maximumf %67, %68 : vector<16x32xf32>
    %c0_39 = arith.constant 0 : index
    %c0_40 = arith.constant 0 : index
    %c0_41 = arith.constant 0 : index
    %70 = vector.load %arg10[%c0_39, %c0_40, %c0_41] : memref<3x1x32xf32, #tpu.memory_space<vmem>>, vector<1x1x32xf32>
    %71 = vector.shape_cast %70 : vector<1x1x32xf32> to vector<1x32xf32>
    %c0_42 = arith.constant 0 : index
    %c0_43 = arith.constant 0 : index
    %c0_44 = arith.constant 0 : index
    %72 = vector.load %arg11[%c0_42, %c0_43, %c0_44] : memref<3x1x32xf32, #tpu.memory_space<vmem>>, vector<1x1x32xf32>
    %73 = vector.shape_cast %72 : vector<1x1x32xf32> to vector<1x32xf32>
    %cst_45 = arith.constant dense<0.000000e+00> : vector<16xf32>
    %74 = vector.multi_reduction <add>, %69, %cst_45 [1] : vector<16x32xf32> to vector<16xf32>
    %75 = vector.shape_cast %74 : vector<16xf32> to vector<16x1xf32>
    %cst_46 = arith.constant 3.200000e+01 : f32
    %76 = vector.broadcast %cst_46 : f32 to vector<16x1xf32>
    %77 = arith.divf %75, %76 : vector<16x1xf32>
    %78 = vector.broadcast %77 : vector<16x1xf32> to vector<16x32xf32>
    %79 = arith.subf %69, %78 : vector<16x32xf32>
    %80 = arith.mulf %79, %79 : vector<16x32xf32>
    %cst_47 = arith.constant dense<0.000000e+00> : vector<16xf32>
    %81 = vector.multi_reduction <add>, %80, %cst_47 [1] : vector<16x32xf32> to vector<16xf32>
    %82 = vector.shape_cast %81 : vector<16xf32> to vector<16x1xf32>
    %cst_48 = arith.constant 3.200000e+01 : f32
    %83 = vector.broadcast %cst_48 : f32 to vector<16x1xf32>
    %84 = arith.divf %82, %83 : vector<16x1xf32>
    %85 = vector.broadcast %77 : vector<16x1xf32> to vector<16x32xf32>
    %86 = arith.subf %69, %85 : vector<16x32xf32>
    %cst_49 = arith.constant 9.99999974E-6 : f32
    %87 = vector.broadcast %cst_49 : f32 to vector<16x1xf32>
    %88 = arith.addf %84, %87 : vector<16x1xf32>
    %89 = math.rsqrt %88 : vector<16x1xf32>
    %90 = vector.broadcast %89 : vector<16x1xf32> to vector<16x32xf32>
    %91 = arith.mulf %86, %90 : vector<16x32xf32>
    %92 = vector.broadcast %71 : vector<1x32xf32> to vector<16x32xf32>
    %93 = arith.mulf %91, %92 : vector<16x32xf32>
    %94 = vector.broadcast %73 : vector<1x32xf32> to vector<16x32xf32>
    %95 = arith.addf %93, %94 : vector<16x32xf32>
    %c0_50 = arith.constant 0 : index
    %c0_51 = arith.constant 0 : index
    %96 = vector.load %arg12[%c0_50, %c0_51] : memref<1x32xbf16, #tpu.memory_space<vmem>>, vector<1x32xbf16>
    %97 = arith.truncf %95 : vector<16x32xf32> to vector<16x32xbf16>
    %cst_52 = arith.constant dense<0.000000e+00> : vector<1x16xf32>
    %98 = tpu.matmul %96, %97, %cst_52 {dimension_numbers = #tpu.dot_dimension_numbers<[1], [1], [0], [0], [0, 0, 1, 0], [], []>} : vector<1x32xbf16>, vector<16x32xbf16>, vector<1x16xf32> -> vector<1x16xf32>
    %c0_53 = arith.constant 0 : index
    %c0_54 = arith.constant 0 : index
    %99 = vector.load %arg13[%c0_53, %c0_54] : memref<1x1xf32, #tpu.memory_space<vmem>>, vector<1x1xf32>
    %100 = vector.broadcast %99 : vector<1x1xf32> to vector<1x16xf32>
    %101 = arith.addf %98, %100 : vector<1x16xf32>
    %102 = arith.mulf %101, %3 : vector<1x16xf32>
    %103 = math.exp %102 : vector<1x16xf32>
    %cst_55 = arith.constant 1.000000e+00 : f32
    %104 = vector.broadcast %cst_55 : f32 to vector<1x16xf32>
    %105 = arith.subf %103, %104 : vector<1x16xf32>
    %106 = math.roundeven %105 : vector<1x16xf32>
    %cst_56 = arith.constant 0.000000e+00 : f32
    %107 = vector.broadcast %cst_56 : f32 to vector<1x16xf32>
    %108 = arith.maximumf %106, %107 : vector<1x16xf32>
    %109 = arith.mulf %108, %3 : vector<1x16xf32>
    %110 = tpu.iota {dimensions = array<i32: 0>} : vector<16x16xi32>
    %111 = tpu.iota {dimensions = array<i32: 1>} : vector<16x16xi32>
    %112 = arith.cmpi sle, %110, %111 : vector<16x16xi32>
    %113 = arith.extui %112 : vector<16x16xi1> to vector<16x16xi32>
    %114 = arith.sitofp %113 : vector<16x16xi32> to vector<16x16xf32>
    %cst_57 = arith.constant dense<0.000000e+00> : vector<1x16xf32>
    %115 = tpu.matmul %109, %114, %cst_57 {dimension_numbers = #tpu.dot_dimension_numbers<[1], [0], [0], [1], [0, 0, 1, 1], [], []>} : vector<1x16xf32>, vector<16x16xf32>, vector<1x16xf32> -> vector<1x16xf32>
    %116 = arith.subf %115, %109 : vector<1x16xf32>
    %c1 = arith.constant 1 : index
    %c0_58 = arith.constant 0 : index
    %c0_59 = arith.constant 0 : index
    %117 = vector.load %arg4[%c1, %c0_58, %c0_59] : memref<3x96x32xbf16, #tpu.memory_space<vmem>>, vector<1x96x32xbf16>
    %118 = vector.shape_cast %117 : vector<1x96x32xbf16> to vector<96x32xbf16>
    %c1_60 = arith.constant 1 : index
    %c0_61 = arith.constant 0 : index
    %c0_62 = arith.constant 0 : index
    %119 = vector.load %arg5[%c1_60, %c0_61, %c0_62] : memref<3x1x32xf32, #tpu.memory_space<vmem>>, vector<1x1x32xf32>
    %120 = vector.shape_cast %119 : vector<1x1x32xf32> to vector<1x32xf32>
    %cst_63 = arith.constant dense<0.000000e+00> : vector<16x32xf32>
    %121 = tpu.matmul %12, %1, %cst_63 {dimension_numbers = #tpu.dot_dimension_numbers<[1], [0], [0], [1], [0, 0, 1, 1], [], []>} : vector<16x16xf32>, vector<16x32xf32>, vector<16x32xf32> -> vector<16x32xf32>
    %cst_64 = arith.constant dense<0.000000e+00> : vector<16x32xf32>
    %122 = tpu.matmul %17, %1, %cst_64 {dimension_numbers = #tpu.dot_dimension_numbers<[1], [0], [0], [1], [0, 0, 1, 1], [], []>} : vector<16x16xf32>, vector<16x32xf32>, vector<16x32xf32> -> vector<16x32xf32>
    %123 = tpu.concatenate %121, %1, %122 in 1 : vector<16x32xf32>, vector<16x32xf32>, vector<16x32xf32> -> vector<16x96xf32>
    %124 = arith.truncf %123 : vector<16x96xf32> to vector<16x96xbf16>
    %cst_65 = arith.constant dense<0.000000e+00> : vector<16x32xf32>
    %125 = tpu.matmul %124, %118, %cst_65 {dimension_numbers = #tpu.dot_dimension_numbers<[1], [0], [0], [1], [0, 0, 1, 1], [], []>} : vector<16x96xbf16>, vector<96x32xbf16>, vector<16x32xf32> -> vector<16x32xf32>
    %126 = vector.broadcast %120 : vector<1x32xf32> to vector<16x32xf32>
    %127 = arith.addf %125, %126 : vector<16x32xf32>
    %cst_66 = arith.constant 0.000000e+00 : f32
    %128 = vector.broadcast %cst_66 : f32 to vector<16x32xf32>
    %129 = arith.maximumf %127, %128 : vector<16x32xf32>
    %c1_67 = arith.constant 1 : index
    %c0_68 = arith.constant 0 : index
    %c0_69 = arith.constant 0 : index
    %130 = vector.load %arg6[%c1_67, %c0_68, %c0_69] : memref<3x1x32xf32, #tpu.memory_space<vmem>>, vector<1x1x32xf32>
    %131 = vector.shape_cast %130 : vector<1x1x32xf32> to vector<1x32xf32>
    %c1_70 = arith.constant 1 : index
    %c0_71 = arith.constant 0 : index
    %c0_72 = arith.constant 0 : index
    %132 = vector.load %arg7[%c1_70, %c0_71, %c0_72] : memref<3x1x32xf32, #tpu.memory_space<vmem>>, vector<1x1x32xf32>
    %133 = vector.shape_cast %132 : vector<1x1x32xf32> to vector<1x32xf32>
    %cst_73 = arith.constant dense<0.000000e+00> : vector<16xf32>
    %134 = vector.multi_reduction <add>, %129, %cst_73 [1] : vector<16x32xf32> to vector<16xf32>
    %135 = vector.shape_cast %134 : vector<16xf32> to vector<16x1xf32>
    %cst_74 = arith.constant 3.200000e+01 : f32
    %136 = vector.broadcast %cst_74 : f32 to vector<16x1xf32>
    %137 = arith.divf %135, %136 : vector<16x1xf32>
    %138 = vector.broadcast %137 : vector<16x1xf32> to vector<16x32xf32>
    %139 = arith.subf %129, %138 : vector<16x32xf32>
    %140 = arith.mulf %139, %139 : vector<16x32xf32>
    %cst_75 = arith.constant dense<0.000000e+00> : vector<16xf32>
    %141 = vector.multi_reduction <add>, %140, %cst_75 [1] : vector<16x32xf32> to vector<16xf32>
    %142 = vector.shape_cast %141 : vector<16xf32> to vector<16x1xf32>
    %cst_76 = arith.constant 3.200000e+01 : f32
    %143 = vector.broadcast %cst_76 : f32 to vector<16x1xf32>
    %144 = arith.divf %142, %143 : vector<16x1xf32>
    %145 = vector.broadcast %137 : vector<16x1xf32> to vector<16x32xf32>
    %146 = arith.subf %129, %145 : vector<16x32xf32>
    %cst_77 = arith.constant 9.99999974E-6 : f32
    %147 = vector.broadcast %cst_77 : f32 to vector<16x1xf32>
    %148 = arith.addf %144, %147 : vector<16x1xf32>
    %149 = math.rsqrt %148 : vector<16x1xf32>
    %150 = vector.broadcast %149 : vector<16x1xf32> to vector<16x32xf32>
    %151 = arith.mulf %146, %150 : vector<16x32xf32>
    %152 = vector.broadcast %131 : vector<1x32xf32> to vector<16x32xf32>
    %153 = arith.mulf %151, %152 : vector<16x32xf32>
    %154 = vector.broadcast %133 : vector<1x32xf32> to vector<16x32xf32>
    %155 = arith.addf %153, %154 : vector<16x32xf32>
    %c1_78 = arith.constant 1 : index
    %c0_79 = arith.constant 0 : index
    %c0_80 = arith.constant 0 : index
    %156 = vector.load %arg8[%c1_78, %c0_79, %c0_80] : memref<3x96x32xbf16, #tpu.memory_space<vmem>>, vector<1x96x32xbf16>
    %157 = vector.shape_cast %156 : vector<1x96x32xbf16> to vector<96x32xbf16>
    %c1_81 = arith.constant 1 : index
    %c0_82 = arith.constant 0 : index
    %c0_83 = arith.constant 0 : index
    %158 = vector.load %arg9[%c1_81, %c0_82, %c0_83] : memref<3x1x32xf32, #tpu.memory_space<vmem>>, vector<1x1x32xf32>
    %159 = vector.shape_cast %158 : vector<1x1x32xf32> to vector<1x32xf32>
    %cst_84 = arith.constant dense<0.000000e+00> : vector<16x32xf32>
    %160 = tpu.matmul %12, %155, %cst_84 {dimension_numbers = #tpu.dot_dimension_numbers<[1], [0], [0], [1], [0, 0, 1, 1], [], []>} : vector<16x16xf32>, vector<16x32xf32>, vector<16x32xf32> -> vector<16x32xf32>
    %cst_85 = arith.constant dense<0.000000e+00> : vector<16x32xf32>
    %161 = tpu.matmul %17, %155, %cst_85 {dimension_numbers = #tpu.dot_dimension_numbers<[1], [0], [0], [1], [0, 0, 1, 1], [], []>} : vector<16x16xf32>, vector<16x32xf32>, vector<16x32xf32> -> vector<16x32xf32>
    %162 = tpu.concatenate %160, %155, %161 in 1 : vector<16x32xf32>, vector<16x32xf32>, vector<16x32xf32> -> vector<16x96xf32>
    %163 = arith.truncf %162 : vector<16x96xf32> to vector<16x96xbf16>
    %cst_86 = arith.constant dense<0.000000e+00> : vector<16x32xf32>
    %164 = tpu.matmul %163, %157, %cst_86 {dimension_numbers = #tpu.dot_dimension_numbers<[1], [0], [0], [1], [0, 0, 1, 1], [], []>} : vector<16x96xbf16>, vector<96x32xbf16>, vector<16x32xf32> -> vector<16x32xf32>
    %165 = vector.broadcast %159 : vector<1x32xf32> to vector<16x32xf32>
    %166 = arith.addf %164, %165 : vector<16x32xf32>
    %cst_87 = arith.constant 0.000000e+00 : f32
    %167 = vector.broadcast %cst_87 : f32 to vector<16x32xf32>
    %168 = arith.maximumf %166, %167 : vector<16x32xf32>
    %c1_88 = arith.constant 1 : index
    %c0_89 = arith.constant 0 : index
    %c0_90 = arith.constant 0 : index
    %169 = vector.load %arg10[%c1_88, %c0_89, %c0_90] : memref<3x1x32xf32, #tpu.memory_space<vmem>>, vector<1x1x32xf32>
    %170 = vector.shape_cast %169 : vector<1x1x32xf32> to vector<1x32xf32>
    %c1_91 = arith.constant 1 : index
    %c0_92 = arith.constant 0 : index
    %c0_93 = arith.constant 0 : index
    %171 = vector.load %arg11[%c1_91, %c0_92, %c0_93] : memref<3x1x32xf32, #tpu.memory_space<vmem>>, vector<1x1x32xf32>
    %172 = vector.shape_cast %171 : vector<1x1x32xf32> to vector<1x32xf32>
    %cst_94 = arith.constant dense<0.000000e+00> : vector<16xf32>
    %173 = vector.multi_reduction <add>, %168, %cst_94 [1] : vector<16x32xf32> to vector<16xf32>
    %174 = vector.shape_cast %173 : vector<16xf32> to vector<16x1xf32>
    %cst_95 = arith.constant 3.200000e+01 : f32
    %175 = vector.broadcast %cst_95 : f32 to vector<16x1xf32>
    %176 = arith.divf %174, %175 : vector<16x1xf32>
    %177 = vector.broadcast %176 : vector<16x1xf32> to vector<16x32xf32>
    %178 = arith.subf %168, %177 : vector<16x32xf32>
    %179 = arith.mulf %178, %178 : vector<16x32xf32>
    %cst_96 = arith.constant dense<0.000000e+00> : vector<16xf32>
    %180 = vector.multi_reduction <add>, %179, %cst_96 [1] : vector<16x32xf32> to vector<16xf32>
    %181 = vector.shape_cast %180 : vector<16xf32> to vector<16x1xf32>
    %cst_97 = arith.constant 3.200000e+01 : f32
    %182 = vector.broadcast %cst_97 : f32 to vector<16x1xf32>
    %183 = arith.divf %181, %182 : vector<16x1xf32>
    %184 = vector.broadcast %176 : vector<16x1xf32> to vector<16x32xf32>
    %185 = arith.subf %168, %184 : vector<16x32xf32>
    %cst_98 = arith.constant 9.99999974E-6 : f32
    %186 = vector.broadcast %cst_98 : f32 to vector<16x1xf32>
    %187 = arith.addf %183, %186 : vector<16x1xf32>
    %188 = math.rsqrt %187 : vector<16x1xf32>
    %189 = vector.broadcast %188 : vector<16x1xf32> to vector<16x32xf32>
    %190 = arith.mulf %185, %189 : vector<16x32xf32>
    %191 = vector.broadcast %170 : vector<1x32xf32> to vector<16x32xf32>
    %192 = arith.mulf %190, %191 : vector<16x32xf32>
    %193 = vector.broadcast %172 : vector<1x32xf32> to vector<16x32xf32>
    %194 = arith.addf %192, %193 : vector<16x32xf32>
    %c0_99 = arith.constant 0 : index
    %c0_100 = arith.constant 0 : index
    %c0_101 = arith.constant 0 : index
    %195 = vector.load %arg14[%c0_99, %c0_100, %c0_101] : memref<2x1x32xf32, #tpu.memory_space<vmem>>, vector<1x1x32xf32>
    %196 = vector.shape_cast %195 : vector<1x1x32xf32> to vector<1x32xf32>
    %197 = vector.broadcast %196 : vector<1x32xf32> to vector<16x32xf32>
    %198 = arith.mulf %194, %197 : vector<16x32xf32>
    %cst_102 = arith.constant dense<0.000000e+00> : vector<16xf32>
    %199 = vector.multi_reduction <add>, %198, %cst_102 [1] : vector<16x32xf32> to vector<16xf32>
    %200 = vector.shape_cast %199 : vector<16xf32> to vector<16x1xf32>
    %c0_103 = arith.constant 0 : index
    %c0_104 = arith.constant 0 : index
    %c0_105 = arith.constant 0 : index
    %201 = vector.load %arg15[%c0_103, %c0_104, %c0_105] : memref<2x1x1xf32, #tpu.memory_space<vmem>>, vector<1x1x1xf32>
    %202 = vector.shape_cast %201 : vector<1x1x1xf32> to vector<1x1xf32>
    %203 = vector.broadcast %202 : vector<1x1xf32> to vector<16x1xf32>
    %204 = arith.addf %200, %203 : vector<16x1xf32>
    %205 = arith.mulf %204, %5 : vector<16x1xf32>
    %c0_106 = arith.constant 0 : index
    %c0_107 = arith.constant 0 : index
    %206 = vector.load %arg16[%c0_106, %c0_107] : memref<1x16xf32, #tpu.memory_space<vmem>>, vector<1x16xf32>
    %207 = vector.broadcast %205 : vector<16x1xf32> to vector<16x16xf32>
    %208 = vector.broadcast %206 : vector<1x16xf32> to vector<16x16xf32>
    %209 = arith.cmpf ogt, %207, %208 : vector<16x16xf32>
    %c0_108 = arith.constant 0 : index
    %c0_109 = arith.constant 0 : index
    %210 = vector.load %arg17[%c0_108, %c0_109] : memref<1x16xf32, #tpu.memory_space<vmem>>, vector<1x16xf32>
    %211 = vector.broadcast %205 : vector<16x1xf32> to vector<16x16xf32>
    %212 = vector.broadcast %210 : vector<1x16xf32> to vector<16x16xf32>
    %213 = arith.cmpf ole, %211, %212 : vector<16x16xf32>
    %214 = arith.andi %209, %213 : vector<16x16xi1>
    %cst_110 = arith.constant 1.000000e+00 : f32
    %cst_111 = arith.constant 0.000000e+00 : f32
    %215 = vector.broadcast %cst_110 : f32 to vector<16x16xf32>
    %216 = vector.broadcast %cst_111 : f32 to vector<16x16xf32>
    %217 = arith.select %214, %215, %216 : vector<16x16xi1>, vector<16x16xf32>
    %c0_112 = arith.constant 0 : index
    %c0_113 = arith.constant 0 : index
    %218 = vector.load %arg18[%c0_112, %c0_113] : memref<16x32xf32, #tpu.memory_space<vmem>>, vector<16x32xf32>
    %cst_114 = arith.constant dense<0.000000e+00> : vector<16x32xf32>
    %219 = tpu.matmul %217, %218, %cst_114 {dimension_numbers = #tpu.dot_dimension_numbers<[1], [0], [0], [1], [0, 0, 1, 1], [], []>} : vector<16x16xf32>, vector<16x32xf32>, vector<16x32xf32> -> vector<16x32xf32>
    %220 = arith.addf %1, %219 : vector<16x32xf32>
    %c2 = arith.constant 2 : index
    %c0_115 = arith.constant 0 : index
    %c0_116 = arith.constant 0 : index
    %221 = vector.load %arg4[%c2, %c0_115, %c0_116] : memref<3x96x32xbf16, #tpu.memory_space<vmem>>, vector<1x96x32xbf16>
    %222 = vector.shape_cast %221 : vector<1x96x32xbf16> to vector<96x32xbf16>
    %c2_117 = arith.constant 2 : index
    %c0_118 = arith.constant 0 : index
    %c0_119 = arith.constant 0 : index
    %223 = vector.load %arg5[%c2_117, %c0_118, %c0_119] : memref<3x1x32xf32, #tpu.memory_space<vmem>>, vector<1x1x32xf32>
    %224 = vector.shape_cast %223 : vector<1x1x32xf32> to vector<1x32xf32>
    %cst_120 = arith.constant dense<0.000000e+00> : vector<16x32xf32>
    %225 = tpu.matmul %12, %220, %cst_120 {dimension_numbers = #tpu.dot_dimension_numbers<[1], [0], [0], [1], [0, 0, 1, 1], [], []>} : vector<16x16xf32>, vector<16x32xf32>, vector<16x32xf32> -> vector<16x32xf32>
    %cst_121 = arith.constant dense<0.000000e+00> : vector<16x32xf32>
    %226 = tpu.matmul %17, %220, %cst_121 {dimension_numbers = #tpu.dot_dimension_numbers<[1], [0], [0], [1], [0, 0, 1, 1], [], []>} : vector<16x16xf32>, vector<16x32xf32>, vector<16x32xf32> -> vector<16x32xf32>
    %227 = tpu.concatenate %225, %220, %226 in 1 : vector<16x32xf32>, vector<16x32xf32>, vector<16x32xf32> -> vector<16x96xf32>
    %228 = arith.truncf %227 : vector<16x96xf32> to vector<16x96xbf16>
    %cst_122 = arith.constant dense<0.000000e+00> : vector<16x32xf32>
    %229 = tpu.matmul %228, %222, %cst_122 {dimension_numbers = #tpu.dot_dimension_numbers<[1], [0], [0], [1], [0, 0, 1, 1], [], []>} : vector<16x96xbf16>, vector<96x32xbf16>, vector<16x32xf32> -> vector<16x32xf32>
    %230 = vector.broadcast %224 : vector<1x32xf32> to vector<16x32xf32>
    %231 = arith.addf %229, %230 : vector<16x32xf32>
    %cst_123 = arith.constant 0.000000e+00 : f32
    %232 = vector.broadcast %cst_123 : f32 to vector<16x32xf32>
    %233 = arith.maximumf %231, %232 : vector<16x32xf32>
    %c2_124 = arith.constant 2 : index
    %c0_125 = arith.constant 0 : index
    %c0_126 = arith.constant 0 : index
    %234 = vector.load %arg6[%c2_124, %c0_125, %c0_126] : memref<3x1x32xf32, #tpu.memory_space<vmem>>, vector<1x1x32xf32>
    %235 = vector.shape_cast %234 : vector<1x1x32xf32> to vector<1x32xf32>
    %c2_127 = arith.constant 2 : index
    %c0_128 = arith.constant 0 : index
    %c0_129 = arith.constant 0 : index
    %236 = vector.load %arg7[%c2_127, %c0_128, %c0_129] : memref<3x1x32xf32, #tpu.memory_space<vmem>>, vector<1x1x32xf32>
    %237 = vector.shape_cast %236 : vector<1x1x32xf32> to vector<1x32xf32>
    %cst_130 = arith.constant dense<0.000000e+00> : vector<16xf32>
    %238 = vector.multi_reduction <add>, %233, %cst_130 [1] : vector<16x32xf32> to vector<16xf32>
    %239 = vector.shape_cast %238 : vector<16xf32> to vector<16x1xf32>
    %cst_131 = arith.constant 3.200000e+01 : f32
    %240 = vector.broadcast %cst_131 : f32 to vector<16x1xf32>
    %241 = arith.divf %239, %240 : vector<16x1xf32>
    %242 = vector.broadcast %241 : vector<16x1xf32> to vector<16x32xf32>
    %243 = arith.subf %233, %242 : vector<16x32xf32>
    %244 = arith.mulf %243, %243 : vector<16x32xf32>
    %cst_132 = arith.constant dense<0.000000e+00> : vector<16xf32>
    %245 = vector.multi_reduction <add>, %244, %cst_132 [1] : vector<16x32xf32> to vector<16xf32>
    %246 = vector.shape_cast %245 : vector<16xf32> to vector<16x1xf32>
    %cst_133 = arith.constant 3.200000e+01 : f32
    %247 = vector.broadcast %cst_133 : f32 to vector<16x1xf32>
    %248 = arith.divf %246, %247 : vector<16x1xf32>
    %249 = vector.broadcast %241 : vector<16x1xf32> to vector<16x32xf32>
    %250 = arith.subf %233, %249 : vector<16x32xf32>
    %cst_134 = arith.constant 9.99999974E-6 : f32
    %251 = vector.broadcast %cst_134 : f32 to vector<16x1xf32>
    %252 = arith.addf %248, %251 : vector<16x1xf32>
    %253 = math.rsqrt %252 : vector<16x1xf32>
    %254 = vector.broadcast %253 : vector<16x1xf32> to vector<16x32xf32>
    %255 = arith.mulf %250, %254 : vector<16x32xf32>
    %256 = vector.broadcast %235 : vector<1x32xf32> to vector<16x32xf32>
    %257 = arith.mulf %255, %256 : vector<16x32xf32>
    %258 = vector.broadcast %237 : vector<1x32xf32> to vector<16x32xf32>
    %259 = arith.addf %257, %258 : vector<16x32xf32>
    %c2_135 = arith.constant 2 : index
    %c0_136 = arith.constant 0 : index
    %c0_137 = arith.constant 0 : index
    %260 = vector.load %arg8[%c2_135, %c0_136, %c0_137] : memref<3x96x32xbf16, #tpu.memory_space<vmem>>, vector<1x96x32xbf16>
    %261 = vector.shape_cast %260 : vector<1x96x32xbf16> to vector<96x32xbf16>
    %c2_138 = arith.constant 2 : index
    %c0_139 = arith.constant 0 : index
    %c0_140 = arith.constant 0 : index
    %262 = vector.load %arg9[%c2_138, %c0_139, %c0_140] : memref<3x1x32xf32, #tpu.memory_space<vmem>>, vector<1x1x32xf32>
    %263 = vector.shape_cast %262 : vector<1x1x32xf32> to vector<1x32xf32>
    %cst_141 = arith.constant dense<0.000000e+00> : vector<16x32xf32>
    %264 = tpu.matmul %12, %259, %cst_141 {dimension_numbers = #tpu.dot_dimension_numbers<[1], [0], [0], [1], [0, 0, 1, 1], [], []>} : vector<16x16xf32>, vector<16x32xf32>, vector<16x32xf32> -> vector<16x32xf32>
    %cst_142 = arith.constant dense<0.000000e+00> : vector<16x32xf32>
    %265 = tpu.matmul %17, %259, %cst_142 {dimension_numbers = #tpu.dot_dimension_numbers<[1], [0], [0], [1], [0, 0, 1, 1], [], []>} : vector<16x16xf32>, vector<16x32xf32>, vector<16x32xf32> -> vector<16x32xf32>
    %266 = tpu.concatenate %264, %259, %265 in 1 : vector<16x32xf32>, vector<16x32xf32>, vector<16x32xf32> -> vector<16x96xf32>
    %267 = arith.truncf %266 : vector<16x96xf32> to vector<16x96xbf16>
    %cst_143 = arith.constant dense<0.000000e+00> : vector<16x32xf32>
    %268 = tpu.matmul %267, %261, %cst_143 {dimension_numbers = #tpu.dot_dimension_numbers<[1], [0], [0], [1], [0, 0, 1, 1], [], []>} : vector<16x96xbf16>, vector<96x32xbf16>, vector<16x32xf32> -> vector<16x32xf32>
    %269 = vector.broadcast %263 : vector<1x32xf32> to vector<16x32xf32>
    %270 = arith.addf %268, %269 : vector<16x32xf32>
    %cst_144 = arith.constant 0.000000e+00 : f32
    %271 = vector.broadcast %cst_144 : f32 to vector<16x32xf32>
    %272 = arith.maximumf %270, %271 : vector<16x32xf32>
    %c2_145 = arith.constant 2 : index
    %c0_146 = arith.constant 0 : index
    %c0_147 = arith.constant 0 : index
    %273 = vector.load %arg10[%c2_145, %c0_146, %c0_147] : memref<3x1x32xf32, #tpu.memory_space<vmem>>, vector<1x1x32xf32>
    %274 = vector.shape_cast %273 : vector<1x1x32xf32> to vector<1x32xf32>
    %c2_148 = arith.constant 2 : index
    %c0_149 = arith.constant 0 : index
    %c0_150 = arith.constant 0 : index
    %275 = vector.load %arg11[%c2_148, %c0_149, %c0_150] : memref<3x1x32xf32, #tpu.memory_space<vmem>>, vector<1x1x32xf32>
    %276 = vector.shape_cast %275 : vector<1x1x32xf32> to vector<1x32xf32>
    %cst_151 = arith.constant dense<0.000000e+00> : vector<16xf32>
    %277 = vector.multi_reduction <add>, %272, %cst_151 [1] : vector<16x32xf32> to vector<16xf32>
    %278 = vector.shape_cast %277 : vector<16xf32> to vector<16x1xf32>
    %cst_152 = arith.constant 3.200000e+01 : f32
    %279 = vector.broadcast %cst_152 : f32 to vector<16x1xf32>
    %280 = arith.divf %278, %279 : vector<16x1xf32>
    %281 = vector.broadcast %280 : vector<16x1xf32> to vector<16x32xf32>
    %282 = arith.subf %272, %281 : vector<16x32xf32>
    %283 = arith.mulf %282, %282 : vector<16x32xf32>
    %cst_153 = arith.constant dense<0.000000e+00> : vector<16xf32>
    %284 = vector.multi_reduction <add>, %283, %cst_153 [1] : vector<16x32xf32> to vector<16xf32>
    %285 = vector.shape_cast %284 : vector<16xf32> to vector<16x1xf32>
    %cst_154 = arith.constant 3.200000e+01 : f32
    %286 = vector.broadcast %cst_154 : f32 to vector<16x1xf32>
    %287 = arith.divf %285, %286 : vector<16x1xf32>
    %288 = vector.broadcast %280 : vector<16x1xf32> to vector<16x32xf32>
    %289 = arith.subf %272, %288 : vector<16x32xf32>
    %cst_155 = arith.constant 9.99999974E-6 : f32
    %290 = vector.broadcast %cst_155 : f32 to vector<16x1xf32>
    %291 = arith.addf %287, %290 : vector<16x1xf32>
    %292 = math.rsqrt %291 : vector<16x1xf32>
    %293 = vector.broadcast %292 : vector<16x1xf32> to vector<16x32xf32>
    %294 = arith.mulf %289, %293 : vector<16x32xf32>
    %295 = vector.broadcast %274 : vector<1x32xf32> to vector<16x32xf32>
    %296 = arith.mulf %294, %295 : vector<16x32xf32>
    %297 = vector.broadcast %276 : vector<1x32xf32> to vector<16x32xf32>
    %298 = arith.addf %296, %297 : vector<16x32xf32>
    %c1_156 = arith.constant 1 : index
    %c0_157 = arith.constant 0 : index
    %c0_158 = arith.constant 0 : index
    %299 = vector.load %arg14[%c1_156, %c0_157, %c0_158] : memref<2x1x32xf32, #tpu.memory_space<vmem>>, vector<1x1x32xf32>
    %300 = vector.shape_cast %299 : vector<1x1x32xf32> to vector<1x32xf32>
    %301 = vector.broadcast %300 : vector<1x32xf32> to vector<16x32xf32>
    %302 = arith.mulf %298, %301 : vector<16x32xf32>
    %cst_159 = arith.constant dense<0.000000e+00> : vector<16xf32>
    %303 = vector.multi_reduction <add>, %302, %cst_159 [1] : vector<16x32xf32> to vector<16xf32>
    %304 = vector.shape_cast %303 : vector<16xf32> to vector<16x1xf32>
    %c1_160 = arith.constant 1 : index
    %c0_161 = arith.constant 0 : index
    %c0_162 = arith.constant 0 : index
    %305 = vector.load %arg15[%c1_160, %c0_161, %c0_162] : memref<2x1x1xf32, #tpu.memory_space<vmem>>, vector<1x1x1xf32>
    %306 = vector.shape_cast %305 : vector<1x1x1xf32> to vector<1x1xf32>
    %307 = vector.broadcast %306 : vector<1x1xf32> to vector<16x1xf32>
    %308 = arith.addf %304, %307 : vector<16x1xf32>
    %309 = arith.mulf %308, %5 : vector<16x1xf32>
    %c0_163 = arith.constant 0 : index
    %c0_164 = arith.constant 0 : index
    %310 = vector.load %arg19[%c0_163, %c0_164] : memref<1x16xf32, #tpu.memory_space<vmem>>, vector<1x16xf32>
    %311 = vector.broadcast %309 : vector<16x1xf32> to vector<16x16xf32>
    %312 = vector.broadcast %310 : vector<1x16xf32> to vector<16x16xf32>
    %313 = arith.cmpf ogt, %311, %312 : vector<16x16xf32>
    %c0_165 = arith.constant 0 : index
    %c0_166 = arith.constant 0 : index
    %314 = vector.load %arg20[%c0_165, %c0_166] : memref<1x16xf32, #tpu.memory_space<vmem>>, vector<1x16xf32>
    %315 = vector.broadcast %309 : vector<16x1xf32> to vector<16x16xf32>
    %316 = vector.broadcast %314 : vector<1x16xf32> to vector<16x16xf32>
    %317 = arith.cmpf ole, %315, %316 : vector<16x16xf32>
    %318 = arith.andi %313, %317 : vector<16x16xi1>
    %cst_167 = arith.constant 1.000000e+00 : f32
    %cst_168 = arith.constant 0.000000e+00 : f32
    %319 = vector.broadcast %cst_167 : f32 to vector<16x16xf32>
    %320 = vector.broadcast %cst_168 : f32 to vector<16x16xf32>
    %321 = arith.select %318, %319, %320 : vector<16x16xi1>, vector<16x16xf32>
    %c0_169 = arith.constant 0 : index
    %c0_170 = arith.constant 0 : index
    %322 = vector.load %arg21[%c0_169, %c0_170] : memref<16x32xf32, #tpu.memory_space<vmem>>, vector<16x32xf32>
    %cst_171 = arith.constant dense<0.000000e+00> : vector<16x32xf32>
    %323 = tpu.matmul %321, %322, %cst_171 {dimension_numbers = #tpu.dot_dimension_numbers<[1], [0], [0], [1], [0, 0, 1, 1], [], []>} : vector<16x16xf32>, vector<16x32xf32>, vector<16x32xf32> -> vector<16x32xf32>
    %324 = arith.addf %220, %323 : vector<16x32xf32>
    %325 = tpu.iota {dimensions = array<i32: 0>} : vector<40x16xi32>
    %326 = arith.sitofp %325 : vector<40x16xi32> to vector<40x16xf32>
    %327 = vector.broadcast %116 : vector<1x16xf32> to vector<40x16xf32>
    %328 = arith.cmpf oge, %326, %327 : vector<40x16xf32>
    %329 = vector.broadcast %115 : vector<1x16xf32> to vector<40x16xf32>
    %330 = arith.cmpf olt, %326, %329 : vector<40x16xf32>
    %331 = arith.andi %328, %330 : vector<40x16xi1>
    %cst_172 = arith.constant 1.000000e+00 : f32
    %cst_173 = arith.constant 0.000000e+00 : f32
    %332 = vector.broadcast %cst_172 : f32 to vector<40x16xf32>
    %333 = vector.broadcast %cst_173 : f32 to vector<40x16xf32>
    %334 = arith.select %331, %332, %333 : vector<40x16xi1>, vector<40x16xf32>
    %cst_174 = arith.constant dense<0.000000e+00> : vector<40x32xf32>
    %335 = tpu.matmul %334, %324, %cst_174 {dimension_numbers = #tpu.dot_dimension_numbers<[1], [0], [0], [1], [0, 0, 1, 1], [], []>} : vector<40x16xf32>, vector<16x32xf32>, vector<40x32xf32> -> vector<40x32xf32>
    %c0_175 = arith.constant 0 : index
    %c0_176 = arith.constant 0 : index
    %336 = vector.load %arg22[%c0_175, %c0_176] : memref<24x40xf32, #tpu.memory_space<vmem>>, vector<24x40xf32>
    %cst_177 = arith.constant dense<0.000000e+00> : vector<24x32xf32>
    %337 = tpu.matmul %336, %335, %cst_177 {dimension_numbers = #tpu.dot_dimension_numbers<[1], [0], [0], [1], [0, 0, 1, 1], [], []>} : vector<24x40xf32>, vector<40x32xf32>, vector<24x32xf32> -> vector<24x32xf32>
    %338 = tpu.iota {dimensions = array<i32: 0>} : vector<24x24xi32>
    %339 = tpu.iota {dimensions = array<i32: 1>} : vector<24x24xi32>
    %c1_i32_178 = arith.constant 1 : i32
    %340 = vector.broadcast %c1_i32_178 : i32 to vector<24x24xi32>
    %341 = arith.addi %339, %340 : vector<24x24xi32>
    %342 = arith.cmpi eq, %338, %341 : vector<24x24xi32>
    %343 = arith.extui %342 : vector<24x24xi1> to vector<24x24xi32>
    %344 = arith.sitofp %343 : vector<24x24xi32> to vector<24x24xf32>
    %c1_i32_179 = arith.constant 1 : i32
    %345 = vector.broadcast %c1_i32_179 : i32 to vector<24x24xi32>
    %346 = arith.subi %339, %345 : vector<24x24xi32>
    %347 = arith.cmpi eq, %338, %346 : vector<24x24xi32>
    %348 = arith.extui %347 : vector<24x24xi1> to vector<24x24xi32>
    %349 = arith.sitofp %348 : vector<24x24xi32> to vector<24x24xf32>
    %c0_180 = arith.constant 0 : index
    %c0_181 = arith.constant 0 : index
    %350 = vector.load %arg23[%c0_180, %c0_181] : memref<96x8xbf16, #tpu.memory_space<vmem>>, vector<96x8xbf16>
    %c0_182 = arith.constant 0 : index
    %c0_183 = arith.constant 0 : index
    %351 = vector.load %arg24[%c0_182, %c0_183] : memref<1x8xf32, #tpu.memory_space<vmem>>, vector<1x8xf32>
    %cst_184 = arith.constant dense<0.000000e+00> : vector<24x32xf32>
    %352 = tpu.matmul %344, %337, %cst_184 {dimension_numbers = #tpu.dot_dimension_numbers<[1], [0], [0], [1], [0, 0, 1, 1], [], []>} : vector<24x24xf32>, vector<24x32xf32>, vector<24x32xf32> -> vector<24x32xf32>
    %cst_185 = arith.constant dense<0.000000e+00> : vector<24x32xf32>
    %353 = tpu.matmul %349, %337, %cst_185 {dimension_numbers = #tpu.dot_dimension_numbers<[1], [0], [0], [1], [0, 0, 1, 1], [], []>} : vector<24x24xf32>, vector<24x32xf32>, vector<24x32xf32> -> vector<24x32xf32>
    %354 = tpu.concatenate %352, %337, %353 in 1 : vector<24x32xf32>, vector<24x32xf32>, vector<24x32xf32> -> vector<24x96xf32>
    %355 = arith.truncf %354 : vector<24x96xf32> to vector<24x96xbf16>
    %cst_186 = arith.constant dense<0.000000e+00> : vector<24x8xf32>
    %356 = tpu.matmul %355, %350, %cst_186 {dimension_numbers = #tpu.dot_dimension_numbers<[1], [0], [0], [1], [0, 0, 1, 1], [], []>} : vector<24x96xbf16>, vector<96x8xbf16>, vector<24x8xf32> -> vector<24x8xf32>
    %357 = vector.broadcast %351 : vector<1x8xf32> to vector<24x8xf32>
    %358 = arith.addf %356, %357 : vector<24x8xf32>
    %c0_187 = arith.constant 0 : index
    %c0_188 = arith.constant 0 : index
    %c0_189 = arith.constant 0 : index
    %359 = vector.load %arg25[%c0_187, %c0_188, %c0_189] : memref<1x24x8xf32, #tpu.memory_space<vmem>>, vector<1x24x8xf32>
    %360 = vector.shape_cast %359 : vector<1x24x8xf32> to vector<24x8xf32>
    %361 = vector.shape_cast %358 : vector<24x8xf32> to vector<1x24x8xf32>
    tpu.vector_store %arg25[%c0_187, %c0_188, %c0_189], %361 {strides = array<i32>} : memref<1x24x8xf32, #tpu.memory_space<vmem>>, vector<1x24x8xf32>,
    %c0_190 = arith.constant 0 : index
    %c0_191 = arith.constant 0 : index
    %c0_192 = arith.constant 0 : index
    %362 = vector.load %arg26[%c0_190, %c0_191, %c0_192] : memref<1x16x1xf32, #tpu.memory_space<vmem>>, vector<1x16x1xf32>
    %363 = vector.shape_cast %362 : vector<1x16x1xf32> to vector<16x1xf32>
    %364 = vector.shape_cast %205 : vector<16x1xf32> to vector<1x16x1xf32>
    tpu.vector_store %arg26[%c0_190, %c0_191, %c0_192], %364 {strides = array<i32>} : memref<1x16x1xf32, #tpu.memory_space<vmem>>, vector<1x16x1xf32>,
    %c0_193 = arith.constant 0 : index
    %c0_194 = arith.constant 0 : index
    %c0_195 = arith.constant 0 : index
    %365 = vector.load %arg27[%c0_193, %c0_194, %c0_195] : memref<1x16x1xf32, #tpu.memory_space<vmem>>, vector<1x16x1xf32>
    %366 = vector.shape_cast %365 : vector<1x16x1xf32> to vector<16x1xf32>
    %367 = vector.shape_cast %309 : vector<16x1xf32> to vector<1x16x1xf32>
    tpu.vector_store %arg27[%c0_193, %c0_194, %c0_195], %367 {strides = array<i32>} : memref<1x16x1xf32, #tpu.memory_space<vmem>>, vector<1x16x1xf32>,
    %368 = tpu.iota {dimensions = array<i32: 1>} : vector<1x40xi32>
    %369 = arith.sitofp %368 : vector<1x40xi32> to vector<1x40xf32>
    %cst_196 = arith.constant dense<0.000000e+00> : vector<1xf32>
    %370 = vector.multi_reduction <add>, %109, %cst_196 [1] : vector<1x16xf32> to vector<1xf32>
    %371 = vector.shape_cast %370 : vector<1xf32> to vector<1x1xf32>
    %cst_197 = arith.constant 4.000000e+01 : f32
    %372 = vector.broadcast %cst_197 : f32 to vector<1x1xf32>
    %373 = arith.minimumf %371, %372 : vector<1x1xf32>
    %374 = vector.broadcast %373 : vector<1x1xf32> to vector<1x40xf32>
    %375 = arith.cmpf olt, %369, %374 : vector<1x40xf32>
    %cst_198 = arith.constant 1.000000e+00 : f32
    %cst_199 = arith.constant 0.000000e+00 : f32
    %376 = vector.broadcast %cst_198 : f32 to vector<1x40xf32>
    %377 = vector.broadcast %cst_199 : f32 to vector<1x40xf32>
    %378 = arith.select %375, %376, %377 : vector<1x40xi1>, vector<1x40xf32>
    %c0_200 = arith.constant 0 : index
    %c0_201 = arith.constant 0 : index
    %c0_202 = arith.constant 0 : index
    %379 = vector.load %arg28[%c0_200, %c0_201, %c0_202] : memref<1x1x40xf32, #tpu.memory_space<vmem>>, vector<1x1x40xf32>
    %380 = vector.shape_cast %379 : vector<1x1x40xf32> to vector<1x40xf32>
    %381 = vector.shape_cast %378 : vector<1x40xf32> to vector<1x1x40xf32>
    tpu.vector_store %arg28[%c0_200, %c0_201, %c0_202], %381 {strides = array<i32>} : memref<1x1x40xf32, #tpu.memory_space<vmem>>, vector<1x1x40xf32>,
    return
  }
  func.func @transform_0(%arg0: i32) -> (i32, i32, i32) {
    %c0_i32 = arith.constant 0 : i32
    %c0_i32_0 = arith.constant 0 : i32
    %c0_i32_1 = arith.constant 0 : i32
    return %arg0, %c0_i32, %c0_i32_0 : i32, i32, i32
  }
  func.func @transform_1(%arg0: i32) -> (i32, i32, i32) {
    %c0_i32 = arith.constant 0 : i32
    %c0_i32_0 = arith.constant 0 : i32
    %c0_i32_1 = arith.constant 0 : i32
    return %arg0, %c0_i32, %c0_i32_0 : i32, i32, i32
  }
  func.func @transform_2(%arg0: i32) -> (i32, i32, i32) {
    %c0_i32 = arith.constant 0 : i32
    %c0_i32_0 = arith.constant 0 : i32
    %c0_i32_1 = arith.constant 0 : i32
    return %arg0, %c0_i32, %c0_i32_0 : i32, i32, i32
  }
  func.func @transform_3(%arg0: i32) -> (i32, i32, i32) {
    %c0_i32 = arith.constant 0 : i32
    %c0_i32_0 = arith.constant 0 : i32
    %c0_i32_1 = arith.constant 0 : i32
    %c0_i32_2 = arith.constant 0 : i32
    return %c0_i32, %c0_i32_0, %c0_i32_1 : i32, i32, i32
  }
  func.func @transform_4(%arg0: i32) -> (i32, i32, i32) {
    %c0_i32 = arith.constant 0 : i32
    %c0_i32_0 = arith.constant 0 : i32
    %c0_i32_1 = arith.constant 0 : i32
    %c0_i32_2 = arith.constant 0 : i32
    return %c0_i32, %c0_i32_0, %c0_i32_1 : i32, i32, i32
  }
  func.func @transform_5(%arg0: i32) -> (i32, i32, i32) {
    %c0_i32 = arith.constant 0 : i32
    %c0_i32_0 = arith.constant 0 : i32
    %c0_i32_1 = arith.constant 0 : i32
    %c0_i32_2 = arith.constant 0 : i32
    return %c0_i32, %c0_i32_0, %c0_i32_1 : i32, i32, i32
  }
  func.func @transform_6(%arg0: i32) -> (i32, i32, i32) {
    %c0_i32 = arith.constant 0 : i32
    %c0_i32_0 = arith.constant 0 : i32
    %c0_i32_1 = arith.constant 0 : i32
    %c0_i32_2 = arith.constant 0 : i32
    return %c0_i32, %c0_i32_0, %c0_i32_1 : i32, i32, i32
  }
  func.func @transform_7(%arg0: i32) -> (i32, i32, i32) {
    %c0_i32 = arith.constant 0 : i32
    %c0_i32_0 = arith.constant 0 : i32
    %c0_i32_1 = arith.constant 0 : i32
    %c0_i32_2 = arith.constant 0 : i32
    return %c0_i32, %c0_i32_0, %c0_i32_1 : i32, i32, i32
  }
  func.func @transform_8(%arg0: i32) -> (i32, i32, i32) {
    %c0_i32 = arith.constant 0 : i32
    %c0_i32_0 = arith.constant 0 : i32
    %c0_i32_1 = arith.constant 0 : i32
    %c0_i32_2 = arith.constant 0 : i32
    return %c0_i32, %c0_i32_0, %c0_i32_1 : i32, i32, i32
  }
  func.func @transform_9(%arg0: i32) -> (i32, i32, i32) {
    %c0_i32 = arith.constant 0 : i32
    %c0_i32_0 = arith.constant 0 : i32
    %c0_i32_1 = arith.constant 0 : i32
    %c0_i32_2 = arith.constant 0 : i32
    return %c0_i32, %c0_i32_0, %c0_i32_1 : i32, i32, i32
  }
  func.func @transform_10(%arg0: i32) -> (i32, i32, i32) {
    %c0_i32 = arith.constant 0 : i32
    %c0_i32_0 = arith.constant 0 : i32
    %c0_i32_1 = arith.constant 0 : i32
    %c0_i32_2 = arith.constant 0 : i32
    return %c0_i32, %c0_i32_0, %c0_i32_1 : i32, i32, i32
  }
  func.func @transform_11(%arg0: i32) -> (i32, i32) {
    %c0_i32 = arith.constant 0 : i32
    %c0_i32_0 = arith.constant 0 : i32
    %c0_i32_1 = arith.constant 0 : i32
    return %c0_i32, %c0_i32_0 : i32, i32
  }
  func.func @transform_12(%arg0: i32) -> (i32, i32) {
    %c0_i32 = arith.constant 0 : i32
    %c0_i32_0 = arith.constant 0 : i32
    %c0_i32_1 = arith.constant 0 : i32
    return %c0_i32, %c0_i32_0 : i32, i32
  }
  func.func @transform_13(%arg0: i32) -> (i32, i32, i32) {
    %c0_i32 = arith.constant 0 : i32
    %c0_i32_0 = arith.constant 0 : i32
    %c0_i32_1 = arith.constant 0 : i32
    %c0_i32_2 = arith.constant 0 : i32
    return %c0_i32, %c0_i32_0, %c0_i32_1 : i32, i32, i32
  }
  func.func @transform_14(%arg0: i32) -> (i32, i32, i32) {
    %c0_i32 = arith.constant 0 : i32
    %c0_i32_0 = arith.constant 0 : i32
    %c0_i32_1 = arith.constant 0 : i32
    %c0_i32_2 = arith.constant 0 : i32
    return %c0_i32, %c0_i32_0, %c0_i32_1 : i32, i32, i32
  }
  func.func @transform_15(%arg0: i32) -> (i32, i32) {
    %c0_i32 = arith.constant 0 : i32
    %c0_i32_0 = arith.constant 0 : i32
    %c0_i32_1 = arith.constant 0 : i32
    return %c0_i32, %c0_i32_0 : i32, i32
  }
  func.func @transform_16(%arg0: i32) -> (i32, i32) {
    %c0_i32 = arith.constant 0 : i32
    %c0_i32_0 = arith.constant 0 : i32
    %c0_i32_1 = arith.constant 0 : i32
    return %c0_i32, %c0_i32_0 : i32, i32
  }
  func.func @transform_17(%arg0: i32) -> (i32, i32) {
    %c0_i32 = arith.constant 0 : i32
    %c0_i32_0 = arith.constant 0 : i32
    %c0_i32_1 = arith.constant 0 : i32
    return %c0_i32, %c0_i32_0 : i32, i32
  }
  func.func @transform_18(%arg0: i32) -> (i32, i32) {
    %c0_i32 = arith.constant 0 : i32
    %c0_i32_0 = arith.constant 0 : i32
    %c0_i32_1 = arith.constant 0 : i32
    return %c0_i32, %c0_i32_0 : i32, i32
  }
  func.func @transform_19(%arg0: i32) -> (i32, i32) {
    %c0_i32 = arith.constant 0 : i32
    %c0_i32_0 = arith.constant 0 : i32
    %c0_i32_1 = arith.constant 0 : i32
    return %c0_i32, %c0_i32_0 : i32, i32
  }
  func.func @transform_20(%arg0: i32) -> (i32, i32) {
    %c0_i32 = arith.constant 0 : i32
    %c0_i32_0 = arith.constant 0 : i32
    %c0_i32_1 = arith.constant 0 : i32
    return %c0_i32, %c0_i32_0 : i32, i32
  }
  func.func @transform_21(%arg0: i32) -> (i32, i32) {
    %c0_i32 = arith.constant 0 : i32
    %c0_i32_0 = arith.constant 0 : i32
    %c0_i32_1 = arith.constant 0 : i32
    return %c0_i32, %c0_i32_0 : i32, i32
  }
  func.func @transform_22(%arg0: i32) -> (i32, i32) {
    %c0_i32 = arith.constant 0 : i32
    %c0_i32_0 = arith.constant 0 : i32
    %c0_i32_1 = arith.constant 0 : i32
    return %c0_i32, %c0_i32_0 : i32, i32
  }
  func.func @transform_23(%arg0: i32) -> (i32, i32) {
    %c0_i32 = arith.constant 0 : i32
    %c0_i32_0 = arith.constant 0 : i32
    %c0_i32_1 = arith.constant 0 : i32
    return %c0_i32, %c0_i32_0 : i32, i32
  }
  func.func @transform_24(%arg0: i32) -> (i32, i32, i32) {
    %c0_i32 = arith.constant 0 : i32
    %c0_i32_0 = arith.constant 0 : i32
    %c0_i32_1 = arith.constant 0 : i32
    return %arg0, %c0_i32, %c0_i32_0 : i32, i32, i32
  }
  func.func @transform_25(%arg0: i32) -> (i32, i32, i32) {
    %c0_i32 = arith.constant 0 : i32
    %c0_i32_0 = arith.constant 0 : i32
    %c0_i32_1 = arith.constant 0 : i32
    return %arg0, %c0_i32, %c0_i32_0 : i32, i32, i32
  }
  func.func @transform_26(%arg0: i32) -> (i32, i32, i32) {
    %c0_i32 = arith.constant 0 : i32
    %c0_i32_0 = arith.constant 0 : i32
    %c0_i32_1 = arith.constant 0 : i32
    return %arg0, %c0_i32, %c0_i32_0 : i32, i32, i32
  }
  func.func @transform_27(%arg0: i32) -> (i32, i32, i32) {
    %c0_i32 = arith.constant 0 : i32
    %c0_i32_0 = arith.constant 0 : i32
    %c0_i32_1 = arith.constant 0 : i32
    return %arg0, %c0_i32, %c0_i32_0 : i32, i32, i32
  }
}

</mosaic_0001>

<bundles_post_ra>
// kernel: forward.2
= control target key start
LH: loop header
LB: loop body
LE: loop exit
PB: predicated region body
PF: predicated region fallthrough
CT: control target
= control target key end

     0   :  { %s3526_s21 = smov 0   ;;  %s4043_s0 = inlined_call_operand.vmem [shape: f32[2,16,32], index: 0, kind: input, shape index: {}]   ;;  %s4044_s1 = inlined_call_operand.vmem [shape: f32[2,1,16], index: 1, kind: input, shape index: {}]   ;;  %s4045_s2 = inlined_call_operand.vmem [shape: f32[2,16,1], index: 2, kind: input, shape index: {}]   ;;  %s4046_s3 = inlined_call_operand.vmem [shape: f32[1,16,32], index: 3, kind: input, shape index: {}]   ;;  %s4047_s4 = inlined_call_operand.vmem [shape: bf16[2,32,96], index: 4, kind: input, shape index: {}]   ;;  %s4048_s5 = inlined_call_operand.vmem [shape: f32[2,1,96], index: 5, kind: input, shape index: {}]   ;;  %s4049_s6 = inlined_call_operand.vmem [shape: bf16[2,32,32], index: 6, kind: input, shape index: {}]   ;;  %s4050_s7 = inlined_call_operand.vmem [shape: f32[2,1,32], index: 7, kind: input, shape index: {}]   ;;  %s4051_s8 = inlined_call_operand.vmem [shape: f32[2,1,32], index: 8, kind: input, shape index: {}]   ;;  %s4052_s9 = inlined_call_operand.vmem [shape: f32[2,1,32], index: 9, kind: input, shape index: {}]   ;;  %s4053_s10 = inlined_call_operand.vmem [shape: bf16[2,96,64], index: 10, kind: input, shape index: {}]   ;;  %s4054_s11 = inlined_call_operand.vmem [shape: f32[2,1,64], index: 11, kind: input, shape index: {}]   ;;  %s4055_s12 = inlined_call_operand.vmem [shape: bf16[2,192,32], index: 12, kind: input, shape index: {}]   ;;  %s4056_s13 = inlined_call_operand.vmem [shape: f32[2,1,32], index: 13, kind: input, shape index: {}]   ;;  %s4057_s14 = inlined_call_operand.vmem [shape: f32[2,1,32], index: 14, kind: input, shape index: {}]   ;;  %s4058_s15 = inlined_call_operand.vmem [shape: f32[2,1,32], index: 15, kind: input, shape index: {}]   ;;  %s4059_s16 = inlined_call_operand.vmem [shape: f32[2,16,32], index: 16, kind: output, shape index: {}]  }
   0x1   :  { %4062 = sst [smem:[#allocation2_spill]] %s4043_s0 }
   0x2 LB: > { %s2864_s22 = sadd.s32 4294967295, %s3429_s21   ;;  %p2868_p0 = scmp.ge.s32.totalorder %s3429_s21, 1  ;;  %s3429_s21 = sphi %s3526_s21, %s26_s21  }
   0x3   : > { %p480_p1 = scmp.lt.s32.totalorder %s3429_s21, 3 }
   0x5   : > { %p481_p2 = pnand %p2868_p0, %p480_p1 }
   0x6   : > { %p538_p3 = scmp.lt.s32.totalorder (!%p481_p2), %s2864_s22, 1  ;;  %s4063_s18 = sld [smem:[#allocation2_spill]] (!%p481_p2) }
   0x7   : > { %484 = sbr.rel (%p481_p2) target bundleno = 7023 (0x1b6f), region = 84  ;;  %s3434_s24 = smov (!%p481_p2), 96  }
   0x8   : > { %s3436_s29 = smov (!%p481_p2), 64   ;;  %s3437_s30 = smov (!%p481_p2), 112  }
   0x9   : > { %s3438_s0 = smov (!%p481_p2), 48   ;;  %s4061_s23 = smov (!%p481_p2), 16  }
   0xa   : > { %s4060_s20 = smov (!%p481_p2), 32   ;;  %s4065_s27 = smov (!%p481_p2), 32  }
   0xc   : > { %v3431_v0 = vmov 0   ;;  %s4067_s22 = smov (!%p538_p3, %s2864_s22), 1  ;;  %v3331_v1 = vld [vmem:[%s4047_s4 + $0x8] sm:$0xff]   ;;  %v3432_v2 = vmov 0.0   ;;  %v3332_v4 = vld [vmem:[%s4047_s4] sm:$0xff]   ;;  %vm3433_vm0 = vmmov 0   ;;  %v576_v23 = vlaneseq }
   0xd   : > { %3290 = vset.pattern.permute.xlu0 %v3431_v0  ;;  %3104 = vmatprep.subr.bf16.mxu0 %v3432_v2  ;;  %s3543_s25 = sshll.u32 %s4067_s22, 4  ;;  %vm619_vm1 = vcmask 261120   ;;  %v2881_v14 = vld [vmem:[%s4048_s5] ss:$0 sm:$0xff]  ;;  %vm668_vm2 = vcmask 130048   ;;  %vm1241_vm7 = vcmask 523264  }
   0xe   : > { %3136 = vmatprep.subr.bf16.mxu1 %v3432_v2  ;;  %3105 = vmatpush3.bf16.msra.mxu0 %v3331_v1  ;;  %s550_s28 = scalar_lea.vmem %s4045_s2, %s3543_s25  ;;  %s542_s19 = scalar_lea.vmem %s4063_s18, %s3543_s25  ;;  %v3595_v26 = vshrl.u32 %v576_v23, 7  ;;  %vm1287_vm8 = vcmask 785408  }
   0xf   : > { %3106 = vmatprep.subr.bf16.mxu0 %v3432_v2  ;;  %v558_v3 = vld [vmem:[%s550_s28] sm:$0xff]  ;;  %3108 = vmatprep.mubr.msk.bf16.mxu0 %vm3433_vm0, %v3432_v2  ;;  %v559_v5 = vld [vmem:[%s550_s28 + $0x8] sm:$0xff]  ;;  %s545_s28 = scalar_lea.vmem %s4044_s1, %s4067_s22  ;;  %s3435_s22 = smov 80  }
  0x10   : > { %564 = vperm.xlu0 %3290, %v558_v3   ;;  %3140 = vmatprep.mubr.msk.bf16.mxu1 %vm3433_vm0, %v3432_v2  ;;  %v560_v7 = vld [vmem:[%s542_s19] sm:$0xff]  ;;  %v561_v8 = vld [vmem:[%s542_s19 + $0x8] sm:$0xff]  ;;  %v721_v28 = vsub.s32 0, %v3595_v26  ;;  %s555_s19 = scalar_lea.vmem %s4059_s16, %s3543_s25 }
  0x11   : > { %v557_v24 = vld [vmem:[%s545_s28] sm:$0x1]  ;;  %s4064_s28 = smov 16  }
  0x12   : > { %3107 = vmatpush3.bf16.msra.mxu0 %v3332_v4  ;;  %v2875_v25 = vadd.f32 -1.0, %v557_v24 }
  0x13   : > { %3112 = vmatprep.subr.bf16.mxu0 %v3432_v2 }
  0x14   : > { %569 = vperm.xlu0 %3290, %v559_v5   ;;  %v575_v27 = vmul.f32 1e+09, %v2875_v25 }
  0x16   : > { %v3598_v29 = vrot.slane %v575_v27, %v721_v28 }
  0x8b   : > { %v3562_v6 = vpop.permute.xlu0 %564 }
  0x8c   : > { %v3567_v10 = vmul.f32 %v3562_v6, %v560_v7 }
  0x8f   : > { %v3564_v9 = vpop.permute.xlu0 %569 }
  0x90   : > { %v3570_v11 = vmul.f32 %v3564_v9, %v561_v8 }
  0x92   : > { %v595_v12 = vpack.c.bf16 %v3570_v11, %v3567_v10 }
  0x94   : > { %3109 = vmatmul.mubr.msk.bf16.vlgmr.msra.gmra.mxu0 %vm619_vm1, %v595_v12 }
  0x95   : > { %3114 = vmatprep.mubr.msk.bf16.mxu0 %vm3433_vm0, %v3432_v2 }
 0x154   : > { %v657_v13 = vpop.f32.mrf.mxu0 }
 0x155   : > { %v658_v17 = vadd.f32 %v2881_v14, %v657_v13 }
 0x156   : > { %v3110_v15 = vpop.f32.mrf.mxu0 }
 0x158   : > { %v660_v16 = vpop.f32.mrf.mxu0 }
 0x159   : > { %v661_v18 = vadd.f32 %v2881_v14, %v660_v16 }
 0x15a   : > { %v3111_v19 = vpop.f32.mrf.mxu0 }
 0x15b   : > { %v3580_v20 = vpack.c.bf16 %v661_v18, %v658_v17 }
 0x15d   : > { %666 = vrot.lane.b32.xlu1 %v3580_v20, %s3434_s24 }
 0x1cf   : > { %v667_v21 = vpop.permute.xlu1 %666 }
 0x1d0   : > { %v673_v22 = vsel %vm668_vm2, %v667_v21, 0 }
 0x1d1   : > { %3113 = vmatpush3.bf16.xpose.msra.mxu0 %v673_v22 }
 0x1d2   : > { %3118 = vmatprep.subr.bf16.mxu0 %v3432_v2 }
 0x1d8   : > { %3115 = vmatmul.mubr.msk.bf16.vlgmr.msra.gmra.mxu0 %vm668_vm2, %v3580_v20 }
 0x1d9   : > { %3120 = vmatprep.mubr.msk.bf16.mxu0 %vm3433_vm0, %v3432_v2 }
 0x298   : > { %v709_v30 = vpop.f32.mrf.mxu0 }
 0x299   : > { %v716_v31 = vmul.f32 0.25, %v709_v30 }
 0x29a   : > { %v3116_v32 = vpop.f32.mrf.mxu0 }
 0x29b   : > { %v724_v33 = vadd.f32 %v3598_v29, %v716_v31 }
 0x29c   : > { %v712_v34 = vpop.f32.mrf.mxu0 }
 0x29d   : > { %v717_v35 = vmul.f32 0.25, %v712_v34  ;;  %v726_v36 = vsel %vm668_vm2, %v724_v33, -inf }
 0x29e   : > { %727 = vmax.xlane.f32.xlu1 %v726_v36  ;;  %v3117_v37 = vpop.f32.mrf.mxu0 }
 0x29f   : > { %v725_v38 = vadd.f32 %v3598_v29, %v717_v35 }
 0x2a1   : > { %v729_v39 = vsel %vm668_vm2, %v725_v38, -inf }
 0x2a2   : > { %730 = vmax.xlane.f32.xlu0 %v729_v39  ;;  %v3334_v39 = vld [vmem:[%s4049_s6] sm:$0xff]  }
 0x327   : > { %v728_v40 = vpop.xlane.xlu1 %727 }
 0x328   : > { %v732_v41 = vsub.f32 %v724_v33, %v728_v40 }
 0x32a   : > { %v734_v42 = vmul.f32 1.442695, %v732_v41 }
 0x32b   : > { %v731_v43 = vpop.xlane.xlu0 %730 }
 0x32c   : > { %3375 = vpow2.f32 %v734_v42  ;;  %v733_v44 = vsub.f32 %v725_v38, %v731_v43  ;;  %v3333_v38 = vld [vmem:[%s4049_s6 + $0x8] sm:$0xff]  }
 0x32d   : > { %3137 = vmatpush3.bf16.msra.mxu1 %v3333_v38 }
 0x32e   : > { %v736_v45 = vmul.f32 1.442695, %v733_v44  ;;  %3138 = vmatprep.subr.bf16.mxu1 %v3432_v2 }
 0x330   : > { %3377 = vpow2.f32 %v736_v45 }
 0x331   : > { %3139 = vmatpush3.bf16.msra.mxu1 %v3334_v39 }
 0x339   : > { %v3376_v46 = vpop.eup %3375 }
 0x33a   : > { %v738_v47 = vsel %vm668_vm2, %v3376_v46, 0.0 }
 0x33b   : > { %739 = vadd.xlane.f32.xlu0 %v738_v47 }
 0x33d   : > { %v3378_v48 = vpop.eup %3377 }
 0x33e   : > { %v741_v49 = vsel %vm668_vm2, %v3378_v48, 0.0 }
 0x33f   : > { %742 = vadd.xlane.f32.xlu1 %v741_v49 }
 0x350   : > { %798 = vrot.lane.b32.xlu1 %v3580_v20, %s3435_s22 }
 0x351   : > { %749 = vrot.lane.b32.xlu0 %v3580_v20, %s3436_s29 }
 0x354   : > { %796 = vrot.lane.b32.xlu1 %v3580_v20, %s3437_s30 }
 0x3c4   : > { %v740_v50 = vpop.xlane.xlu0 %739 }
 0x3c5   : > { %3379 = vrcp.f32 %v740_v50 }
 0x3c8   : > { %v743_v51 = vpop.xlane.xlu1 %742  ;;  %v750_v52 = vpop.permute.xlu0 %749 }
 0x3c9   : > { %3381 = vrcp.f32 %v743_v51  ;;  %3119 = vmatpush3.bf16.msra.mxu0 %v750_v52  ;;  %v2889_v51 = vld [vmem:[%s4050_s7] ss:$0 sm:$0xff] }
 0x3ca   : > { %3124 = vmatprep.subr.bf16.mxu0 %v3432_v2 }
 0x3cc   : > { %v799_v57 = vpop.permute.xlu1 %798 }
 0x3cd   : > { %v804_v59 = vsel %vm668_vm2, %v799_v57, 0 }
 0x3d0   : > { %v797_v60 = vpop.permute.xlu1 %796 }
 0x3d2   : > { %v3380_v53 = vpop.eup %3379 }
 0x3d3   : > { %v746_v55 = vmul.f32 %v3380_v53, %v3376_v46 }
 0x3d6   : > { %v3382_v54 = vpop.eup %3381 }
 0x3d7   : > { %v747_v56 = vmul.f32 %v3382_v54, %v3378_v48 }
 0x3d9   : > { %v748_v58 = vpack.c.bf16 %v747_v56, %v746_v55 }
 0x3db   : > { %3121 = vmatmul.mubr.msk.bf16.vlgmr.msra.gmra.mxu0 %vm668_vm2, %v748_v58 }
 0x3dc   : > { %3125 = vmatpush3.bf16.xpose.msra.mxu0 %v804_v59  ;;  %3126 = vmatprep.mubr.msk.bf16.mxu0 %vm3433_vm0, %v3432_v2 }
 0x3dd   : > { %3130 = vmatprep.subr.bf16.mxu0 %v3432_v2 }
 0x3e3   : > { %3127 = vmatmul.mubr.msk.bf16.vlgmr.msra.gmra.mxu0 %vm668_vm2, %v797_v60 }
 0x3e4   : > { %3132 = vmatprep.mubr.msk.bf16.mxu0 %vm3433_vm0, %v3432_v2 }
 0x49b   : > { %v789_v61 = vpop.f32.mrf.mxu0 }
 0x49d   : > { %v3122_v62 = vpop.f32.mrf.mxu0 }
 0x49f   : > { %v792_v63 = vpop.f32.mrf.mxu0 }
 0x4a1   : > { %v3123_v1 = vpop.f32.mrf.mxu0 }
 0x4a3   : > { %v840_v3 = vpop.f32.mrf.mxu0 }
 0x4a4   : > { %v847_v4 = vmul.f32 0.25, %v840_v3 }
 0x4a5   : > { %v3128_v5 = vpop.f32.mrf.mxu0 }
 0x4a6   : > { %v849_v7 = vadd.f32 %v847_v4, %v3598_v29 }
 0x4a7   : > { %v843_v8 = vpop.f32.mrf.mxu0 }
 0x4a8   : > { %v848_v12 = vmul.f32 0.25, %v843_v8  ;;  %v851_v13 = vsel %vm668_vm2, %v849_v7, -inf }
 0x4a9   : > { %852 = vmax.xlane.f32.xlu0 %v851_v13  ;;  %v3129_v14 = vpop.f32.mrf.mxu0  ;;  %v580_v13 = vand.u32 127, %v576_v23 }
 0x4aa   : > { %v850_v15 = vadd.f32 %v848_v12, %v3598_v29 }
 0x4ab   : > { %v2878_v14 = vadd.s32 4294967295, %v580_v13 }
 0x4ac   : > { %v854_v16 = vsel %vm668_vm2, %v850_v15, -inf }
 0x4ad   : > { %855 = vmax.xlane.f32.xlu1 %v854_v16  ;;  %vm589_vm4 = vcmp.eq.s32.totalorder %v3595_v26, %v2878_v14 }
 0x4ae   : > { %v3657_v16 = vsel %vm589_vm4, 1.0, %v3432_v2 }
 0x4be   : > { %874 = vrot.lane.b32.xlu1 %v3580_v20, %s3438_s0 }
 0x532   : > { %v853_v17 = vpop.xlane.xlu0 %852 }
 0x533   : > { %v857_v18 = vsub.f32 %v849_v7, %v853_v17 }
 0x535   : > { %v859_v19 = vmul.f32 1.442695, %v857_v18 }
 0x536   : > { %v856_v21 = vpop.xlane.xlu1 %855 }
 0x537   : > { %3383 = vpow2.f32 %v859_v19  ;;  %v858_v22 = vsub.f32 %v850_v15, %v856_v21 }
 0x539   : > { %v861_v24 = vmul.f32 1.442695, %v858_v22 }
 0x53a   : > { %v875_v25 = vpop.permute.xlu1 %874 }
 0x53b   : > { %3385 = vpow2.f32 %v861_v24  ;;  %3131 = vmatpush3.bf16.msra.mxu0 %v875_v25  ;;  %v2893_v25 = vld [vmem:[%s4051_s8] ss:$0 sm:$0xff] }
 0x544   : > { %v3384_v27 = vpop.eup %3383 }
 0x545   : > { %v863_v28 = vsel %vm668_vm2, %v3384_v27, 0.0 }
 0x546   : > { %864 = vadd.xlane.f32.xlu0 %v863_v28 }
 0x548   : > { %v3386_v30 = vpop.eup %3385 }
 0x549   : > { %v866_v31 = vsel %vm668_vm2, %v3386_v30, 0.0 }
 0x54a   : > { %867 = vadd.xlane.f32.xlu0 %v866_v31  ;;  %v2894_v31 = vld [vmem:[%s4052_s9] ss:$0 sm:$0xff] }
 0x5cf   : > { %v865_v32 = vpop.xlane.xlu0 %864 }
 0x5d0   : > { %3387 = vrcp.f32 %v865_v32 }
 0x5d3   : > { %v868_v20 = vpop.xlane.xlu0 %867 }
 0x5d4   : > { %3389 = vrcp.f32 %v868_v20 }
 0x5dd   : > { %v3388_v33 = vpop.eup %3387 }
 0x5de   : > { %v871_v35 = vmul.f32 %v3388_v33, %v3384_v27 }
 0x5e1   : > { %v3390_v34 = vpop.eup %3389 }
 0x5e2   : > { %v872_v36 = vmul.f32 %v3390_v34, %v3386_v30  ;;  %v578_v34 = vadd.s32 8, %v3595_v26 }
 0x5e4   : > { %v873_v37 = vpack.c.bf16 %v872_v36, %v871_v35  ;;  %vm590_vm6 = vcmp.eq.s32.totalorder %v578_v34, %v2878_v14  ;;  %v3341_v14 = vld [vmem:[%s4055_s12 + $0x38] sm:$0xff]  }
 0x5e6   : > { %3133 = vmatmul.mubr.msk.bf16.vlgmr.msra.gmra.mxu0 %vm668_vm2, %v873_v37 }
 0x6a6   : > { %v914_v40 = vpop.f32.mrf.mxu0 }
 0x6a8   : > { %v3134_v41 = vpop.f32.mrf.mxu0 }
 0x6a9   : > { %v3336_v41 = vld [vmem:[%s4053_s10 + $0x20] sm:$0xff]  }
 0x6aa   : > { %v917_v42 = vpop.f32.mrf.mxu0 }
 0x6ab   : > { %v3291_v43 = vpack.i.bf16 %v917_v42, %v914_v40  ;;  %v3335_v40 = vld [vmem:[%s4053_s10 + $0x28] sm:$0xff]   ;;  %v3337_v42 = vld [vmem:[%s4053_s10 + $0x18] sm:$0xff]  }
 0x6ac   : > { %v3135_v44 = vpop.f32.mrf.mxu0 }
 0x6ad   : > { %3292 = vrot.lane.b32.xlu0 %v3291_v43, %s4061_s23  ;;  %v3338_v43 = vld [vmem:[%s4053_s10 + $0x10] sm:$0xff]   ;;  %v3339_v44 = vld [vmem:[%s4053_s10 + $0x8] sm:$0xff]  }
 0x71f   : > { %v3293_v45 = vpop.permute.xlu0 %3292 }
 0x720   : > { %v3295_v46 = vunpack.i.h.bf16 %v3293_v45  ;;  %v3294_v47 = vunpack.i.l.bf16 %v3293_v45  ;;  %v3340_v45 = vld [vmem:[%s4053_s10] sm:$0xff]  }
 0x722   : > { %v930_v48 = vsel %vm668_vm2, %v792_v63, %v3295_v46  ;;  %v929_v49 = vsel %vm668_vm2, %v789_v61, %v3294_v47 }
 0x723   : > { %v931_v50 = vpack.c.bf16 %v930_v48, %v929_v49 }
 0x725   : > { %3141 = vmatmul.mubr.msk.bf16.vlgmr.msra.gmra.mxu1 %vm619_vm1, %v931_v50 }
 0x726   : > { %3155 = vmatprep.mubr.msk.f32.mxu1 %vm668_vm2, %v3657_v16 }
 0x7e5   : > { %v992_v52 = vpop.f32.mrf.mxu1 }
 0x7e6   : > { %v993_v53 = vadd.f32 %v2889_v51, %v992_v52 }
 0x7e7   : > { %v3142_v54 = vpop.f32.mrf.mxu1 }
 0x7e8   : > { %v999_v55 = vadd.f32 %v993_v53, %v3567_v10 }
 0x7e9   : > { %v995_v56 = vpop.f32.mrf.mxu1 }
 0x7ea   : > { %v996_v57 = vadd.f32 %v2889_v51, %v995_v56  ;;  %v1003_v58 = vsel %vm619_vm1, %v999_v55, 0.0 }
 0x7eb   : > { %1004 = vadd.xlane.f32.xlu0 %v1003_v58  ;;  %v3143_v59 = vpop.f32.mrf.mxu1 }
 0x7ec   : > { %v1000_v60 = vadd.f32 %v996_v57, %v3570_v11  ;;  %v581_v11 = vadd.s32 1, %v580_v13 }
 0x7ee   : > { %v1006_v61 = vsel %vm619_vm1, %v1000_v60, 0.0  ;;  %vm582_vm3 = vcmp.eq.s32.totalorder %v3595_v26, %v581_v11  ;;  %vm583_vm5 = vcmp.eq.s32.totalorder %v578_v34, %v581_v11  ;;  %v3683_v26 = vsel %vm590_vm6, 1.0, %v3432_v2 }
 0x7ef   : > { %1007 = vadd.xlane.f32.xlu1 %v1006_v61  ;;  %v3654_v15 = vsel %vm582_vm3, 1.0, %v3432_v2  ;;  %v3679_v39 = vsel %vm583_vm5, 1.0, %v3432_v2 }
 0x7f0   : > { %3148 = vmatprep.mubr.msk.f32.mxu0 %vm668_vm2, %v3654_v15 }
 0x874   : > { %v1005_v62 = vpop.xlane.xlu0 %1004 }
 0x875   : > { %v1010_v63 = vmul.f32 0.03125, %v1005_v62  ;;  %v2899_v62 = vld [vmem:[%s4054_s11] ss:$0 sm:$0xff] }
 0x877   : > { %v1012_v1 = vsub.f32 %v999_v55, %v1010_v63 }
 0x878   : > { %v1008_v3 = vpop.xlane.xlu1 %1007 }
 0x879   : > { %v1011_v4 = vmul.f32 0.03125, %v1008_v3  ;;  %v1014_v5 = vmul.f32 %v1012_v1, %v1012_v1 }
 0x87b   : > { %v1013_v7 = vsub.f32 %v1000_v60, %v1011_v4  ;;  %v1016_v10 = vsel %vm619_vm1, %v1014_v5, 0.0 }
 0x87c   : > { %1017 = vadd.xlane.f32.xlu0 %v1016_v10 }
 0x87d   : > { %v1015_v8 = vmul.f32 %v1013_v7, %v1013_v7 }
 0x87f   : > { %v1019_v12 = vsel %vm619_vm1, %v1015_v8, 0.0 }
 0x880   : > { %1020 = vadd.xlane.f32.xlu1 %v1019_v12 }
 0x905   : > { %v1018_v17 = vpop.xlane.xlu0 %1017 }
 0x906   : > { %v1022_v23 = vmul.f32 0.03125, %v1018_v17  ;;  %v3342_v17 = vld [vmem:[%s4055_s12 + $0x30] sm:$0xff]  }
 0x908   : > { %v1024_v18 = vadd.f32 1e-05, %v1022_v23  ;;  %v3343_v23 = vld [vmem:[%s4055_s12 + $0x28] sm:$0xff]  }
 0x909   : > { %v1021_v19 = vpop.xlane.xlu1 %1020 }
 0x90a   : > { %3391 = vrsqrt.f32 %v1024_v18  ;;  %v1023_v21 = vmul.f32 0.03125, %v1021_v19  ;;  %v3344_v18 = vld [vmem:[%s4055_s12 + $0x20] sm:$0xff]   ;;  %v3345_v19 = vld [vmem:[%s4055_s12 + $0x18] sm:$0xff]  }
 0x90c   : > { %v1025_v22 = vadd.f32 1e-05, %v1023_v21  ;;  %v3346_v21 = vld [vmem:[%s4055_s12 + $0x10] sm:$0xff]  }
 0x90e   : > { %3393 = vrsqrt.f32 %v1025_v22  ;;  %v3347_v22 = vld [vmem:[%s4055_s12 + $0x8] sm:$0xff]  }
 0x917   : > { %v3392_v24 = vpop.eup %3391 }
 0x918   : > { %v1028_v27 = vmul.f32 %v3392_v24, %v1012_v1  ;;  %v3348_v24 = vld [vmem:[%s4055_s12] sm:$0xff]  }
 0x91a   : > { %v1036_v28 = vmul.f32 %v2893_v25, %v1028_v27  ;;  %v3350_v27 = vld [vmem:[%s4055_s12 + $0x50] sm:$0xff]  }
 0x91b   : > { %v3394_v30 = vpop.eup %3393 }
 0x91c   : > { %v1029_v32 = vmul.f32 %v3394_v30, %v1013_v7  ;;  %v3669_v33 = vadd.f32 %v2894_v31, %v1036_v28  ;;  %v3351_v28 = vld [vmem:[%s4055_s12 + $0x48] sm:$0xff]   ;;  %v3352_v30 = vld [vmem:[%s4055_s12 + $0x40] sm:$0xff]  }
 0x91e   : > { %v1037_v20 = vmul.f32 %v2893_v25, %v1029_v32  ;;  %v1046_v37 = vmul.f32 %v3669_v33, %v3562_v6  ;;  %v3349_v25 = vld [vmem:[%s4055_s12 + $0x58] sm:$0xff]  }
 0x920   : > { %v3672_v35 = vadd.f32 %v2894_v31, %v1037_v20 }
 0x922   : > { %v1047_v36 = vmul.f32 %v3672_v35, %v3564_v9 }
 0x924   : > { %3144 = vmatprep.subr.mxu0 %v1047_v36  ;;  %3151 = vmatprep.subr.mxu1 %v1047_v36  ;;  %v3296_v38 = vpack.i.bf16 %v1047_v36, %v1046_v37 }
 0x925   : > { %3145 = vmatpush3.msra.mxu0 %v1047_v36  ;;  %3152 = vmatpush3.msra.mxu1 %v1047_v36 }
 0x926   : > { %3297 = vrot.lane.b32.xlu1 %v3296_v38, %s4060_s20  ;;  %3146 = vmatprep.subr.mxu0 %v1046_v37 }
 0x927   : > { %3153 = vmatprep.subr.mxu1 %v1046_v37  ;;  %3147 = vmatpush3.msra.mxu0 %v1046_v37 }
 0x928   : > { %3154 = vmatpush3.msra.mxu1 %v1046_v37  ;;  %3149 = vmatmul.mubr.msk.f32.vlgmr.msra.gmra.mxu0 %vm668_vm2, %v3679_v39 }
 0x929   : > { %3156 = vmatmul.mubr.msk.f32.vlgmr.msra.gmra.mxu1 %vm668_vm2, %v3683_v26  ;;  %3158 = vmatprep.subr.bf16.mxu0 %v3432_v2 }
 0x92a   : > { %3170 = vmatprep.mubr.msk.bf16.mxu0 %vm3433_vm0, %v3432_v2  ;;  %3178 = vmatprep.mubr.msk.f32.mxu1 %vm668_vm2, %v3654_v15 }
 0x92b   : > { %3159 = vmatpush3.bf16.msra.mxu0 %v3335_v40 }
 0x92c   : > { %3160 = vmatprep.subr.bf16.mxu0 %v3432_v2 }
 0x92f   : > { %3161 = vmatpush3.bf16.msra.mxu0 %v3336_v41 }
 0x930   : > { %3162 = vmatprep.subr.bf16.mxu0 %v3432_v2 }
 0x933   : > { %3163 = vmatpush3.bf16.msra.mxu0 %v3337_v42 }
 0x934   : > { %3164 = vmatprep.subr.bf16.mxu0 %v3432_v2 }
 0x937   : > { %3165 = vmatpush3.bf16.msra.mxu0 %v3338_v43 }
 0x938   : > { %3166 = vmatprep.subr.bf16.mxu0 %v3432_v2 }
 0x93b   : > { %3167 = vmatpush3.bf16.msra.mxu0 %v3339_v44  ;;  %v2911_v44 = vld [vmem:[%s4056_s13] ss:$0 sm:$0xff] }
 0x93c   : > { %3168 = vmatprep.subr.bf16.mxu0 %v3432_v2 }
 0x93f   : > { %3169 = vmatpush3.bf16.msra.mxu0 %v3340_v45 }
 0x940   : > { %3188 = vmatprep.subr.bf16.mxu0 %v3432_v2 }
 0x998   : > { %v3298_v50 = vpop.permute.xlu1 %3297 }
 0x999   : > { %v3300_v52 = vunpack.i.h.bf16 %v3298_v50  ;;  %v3299_v53 = vunpack.i.l.bf16 %v3298_v50 }
 0x9e8   : > { %v3150_v49 = vpop.f32.mrf.mxu0 }
 0x9e9   : > { %v3157_v46 = vpop.f32.mrf.mxu1  ;;  %v1240_v57 = vsel %vm619_vm1, %v3150_v49, %v3300_v52 }
 0x9ea   : > { %v1133_v51 = vpop.f32.mrf.mxu0 }
 0x9eb   : > { %v1214_v47 = vpop.f32.mrf.mxu1  ;;  %v1239_v58 = vsel %vm619_vm1, %v1133_v51, %v3299_v53 }
 0x9ec   : > { %v3301_v48 = vpack.i.bf16 %v3157_v46, %v1214_v47 }
 0x9ee   : > { %3302 = vrot.lane.b32.xlu0 %v3301_v48, %s3436_s29 }
 0xa60   : > { %v3303_v54 = vpop.permute.xlu0 %3302 }
 0xa61   : > { %v3305_v55 = vunpack.i.h.bf16 %v3303_v54  ;;  %v3304_v56 = vunpack.i.l.bf16 %v3303_v54 }
 0xa63   : > { %v1242_v59 = vsel %vm1241_vm7, %v1239_v58, %v3304_v56  ;;  %v1243_v60 = vsel %vm1241_vm7, %v1240_v57, %v3305_v55 }
 0xa64   : > { %v1244_v61 = vpack.c.bf16 %v1243_v60, %v1242_v59 }
 0xa66   : > { %3171 = vmatmul.mubr.msk.bf16.vlgmr.msra.gmra.mxu0 %vm1287_vm8, %v1244_v61 }
 0xa67   : > { %3192 = vmatprep.mubr.msk.bf16.mxu0 %vm3433_vm0, %v3432_v2 }
 0xb26   : > { %v1325_v63 = vpop.f32.mrf.mxu0 }
 0xb27   : > { %v1326_v1 = vadd.f32 %v2899_v62, %v1325_v63 }
 0xb28   : > { %v3172_v3 = vpop.f32.mrf.mxu0 }
 0xb29   : > { %v1332_v5 = vmax.f32 %v1326_v1, 0.0 }
 0xb2a   : > { %v1328_v4 = vpop.f32.mrf.mxu0 }
 0xb2b   : > { %v1329_v7 = vadd.f32 %v2899_v62, %v1328_v4  ;;  %v1334_v12 = vmul.f32 %v1332_v5, %v3562_v6  ;;  %v3354_v4 = vld [vmem:[%s4047_s4 + $0x10] sm:$0xff]  }
 0xb2c   : > { %v3173_v10 = vpop.f32.mrf.mxu0 }
 0xb2d   : > { %v1333_v8 = vmax.f32 %v1329_v7, 0.0 }
 0xb2f   : > { %v1335_v13 = vmul.f32 %v1333_v8, %v3564_v9 }
 0xb31   : > { %3174 = vmatprep.subr.mxu1 %v1335_v13  ;;  %v3306_v11 = vpack.i.bf16 %v1335_v13, %v1334_v12 }
 0xb32   : > { %3175 = vmatpush3.msra.mxu1 %v1335_v13 }
 0xb33   : > { %3307 = vrot.lane.b32.xlu1 %v3306_v11, %s3436_s29  ;;  %3176 = vmatprep.subr.mxu1 %v1334_v12 }
 0xb34   : > { %3177 = vmatpush3.msra.mxu1 %v1334_v12 }
 0xb35   : > { %3179 = vmatmul.mubr.msk.f32.vlgmr.msra.gmra.mxu1 %vm668_vm2, %v3679_v39  ;;  %3181 = vmatprep.subr.mxu1 %v1335_v13 }
 0xb36   : > { %3182 = vmatpush3.msra.mxu1 %v1335_v13  ;;  %3185 = vmatprep.mubr.msk.f32.mxu1 %vm668_vm2, %v3657_v16 }
 0xb37   : > { %3183 = vmatprep.subr.mxu1 %v1334_v12 }
 0xb38   : > { %3184 = vmatpush3.msra.mxu1 %v1334_v12 }
 0xb39   : > { %3186 = vmatmul.mubr.msk.f32.vlgmr.msra.gmra.mxu1 %vm668_vm2, %v3683_v26  ;;  %1604 = vmatprep.subr.bf16.mxu1 %v3431_v0 }
 0xb3a   : > { %1605 = vmatpush1.bf16.msra.mxu1 %v3341_v14 }
 0xb3b   : > { %1606 = vmatprep.subr.bf16.mxu1 %v3431_v0 }
 0xb3e   : > { %1607 = vmatpush1.bf16.msra.mxu1 %v3342_v17  ;;  %v2925_v17 = vld [vmem:[%s4057_s14] ss:$0 sm:$0xff] }
 0xb3f   : > { %1608 = vmatprep.subr.bf16.mxu1 %v3431_v0 }
 0xb42   : > { %1609 = vmatpush1.bf16.msra.mxu1 %v3343_v23 }
 0xb43   : > { %1610 = vmatprep.subr.bf16.mxu1 %v3431_v0 }
 0xb46   : > { %1611 = vmatpush1.bf16.msra.mxu1 %v3344_v18 }
 0xb47   : > { %1612 = vmatprep.subr.bf16.mxu1 %v3431_v0 }
 0xb4a   : > { %1613 = vmatpush1.bf16.msra.mxu1 %v3345_v19 }
 0xb4b   : > { %1614 = vmatprep.subr.bf16.mxu1 %v3431_v0 }
 0xb4e   : > { %1615 = vmatpush1.bf16.msra.mxu1 %v3346_v21  ;;  %v2926_v21 = vld [vmem:[%s4058_s15] ss:$0 sm:$0xff] }
 0xb4f   : > { %1616 = vmatprep.subr.bf16.mxu1 %v3431_v0 }
 0xb52   : > { %1617 = vmatpush1.bf16.msra.mxu1 %v3347_v22 }
 0xb53   : > { %1618 = vmatprep.subr.bf16.mxu1 %v3431_v0 }
 0xb56   : > { %1619 = vmatpush1.bf16.msra.mxu1 %v3348_v24 }
 0xb57   : > { %1628 = vmatprep.subr.bf16.mxu1 %v3431_v0 }
 0xb5a   : > { %1629 = vmatpush2.bf16.msra.mxu1 %v3349_v25 }
 0xb5b   : > { %1630 = vmatprep.subr.bf16.mxu1 %v3431_v0 }
 0xb5e   : > { %1631 = vmatpush2.bf16.msra.mxu1 %v3350_v27 }
 0xb5f   : > { %1632 = vmatprep.subr.bf16.mxu1 %v3431_v0 }
 0xb62   : > { %1633 = vmatpush2.bf16.msra.mxu1 %v3351_v28 }
 0xb63   : > { %1634 = vmatprep.subr.bf16.mxu1 %v3431_v0 }
 0xb66   : > { %1635 = vmatpush2.bf16.msra.mxu1 %v3352_v30  ;;  %v2932_v30 = vld [vmem:[%s4048_s5 + $0x1] ss:$0 sm:$0xff] }
 0xb67   : > { %3220 = vmatprep.subr.bf16.mxu1 %v3432_v2 }
 0xba5   : > { %v3308_v31 = vpop.permute.xlu1 %3307 }
 0xba6   : > { %v3309_v34 = vunpack.i.l.bf16 %v3308_v31  ;;  %v3310_v37 = vunpack.i.h.bf16 %v3308_v31 }
 0xbf5   : > { %v3180_v32 = vpop.f32.mrf.mxu1 }
 0xbf6   : > { %v1520_v41 = vsel %vm1241_vm7, %v3180_v32, %v3310_v37 }
 0xbf7   : > { %v1427_v20 = vpop.f32.mrf.mxu1 }
 0xbf8   : > { %v1519_v38 = vsel %vm1241_vm7, %v1427_v20, %v3309_v34 }
 0xbf9   : > { %v3187_v36 = vpop.f32.mrf.mxu1  ;;  %v1521_v43 = vpack.c.bf16 %v1520_v41, %v1519_v38 }
 0xbfb   : > { %v1502_v40 = vpop.f32.mrf.mxu1 }
 0xbfc   : > { %v1522_v42 = vpack.c.bf16 %v3187_v36, %v1502_v40 }
 0xbfe   : > { %2924 = vmatprep.mubr.msk.bf16.mxu1 %vm1241_vm7, %v1522_v42 }
 0xbff   : > { %1637 = vmatmul.mubr.bf16.vlgmr.msra.gmra.mxu1 %v1521_v43 }
 0xc00   : > { %3224 = vmatprep.mubr.msk.bf16.mxu1 %vm3433_vm0, %v3432_v2 }
 0xcbf   : > { %v1638_v45 = vpop.f32.mrf.mxu1 }
 0xcc0   : > { %v1639_v46 = vadd.f32 %v2911_v44, %v1638_v45 }
 0xcc1   : > { %v1640_v47 = vpop.f32.mrf.mxu1 }
 0xcc2   : > { %v1645_v48 = vmul.f32 %v1639_v46, %v3562_v6 }
 0xcc3   : > { %v1641_v49 = vpop.f32.mrf.mxu1 }
 0xcc4   : > { %v1642_v50 = vadd.f32 %v2911_v44, %v1641_v49  ;;  %v1647_v51 = vadd.f32 %v1645_v48, %v3669_v33 }
 0xcc5   : > { %v1643_v52 = vpop.f32.mrf.mxu1 }
 0xcc6   : > { %v1646_v53 = vmul.f32 %v1642_v50, %v3564_v9  ;;  %v1651_v54 = vsel %vm619_vm1, %v1647_v51, 0.0 }
 0xcc7   : > { %1652 = vadd.xlane.f32.xlu1 %v1651_v54 }
 0xcc8   : > { %v1648_v55 = vadd.f32 %v1646_v53, %v3672_v35  ;;  %v3353_v35 = vld [vmem:[%s4047_s4 + $0x18] sm:$0xff]  }
 0xcc9   : > { %3189 = vmatpush3.bf16.msra.mxu0 %v3353_v35 }
 0xcca   : > { %v1654_v56 = vsel %vm619_vm1, %v1648_v55, 0.0  ;;  %3190 = vmatprep.subr.bf16.mxu0 %v3432_v2 }
 0xccb   : > { %1655 = vadd.xlane.f32.xlu0 %v1654_v56 }
 0xccd   : > { %3191 = vmatpush3.bf16.msra.mxu0 %v3354_v4 }
 0xcce   : > { %3196 = vmatprep.subr.bf16.mxu0 %v3432_v2 }
 0xd50   : > { %v1653_v57 = vpop.xlane.xlu1 %1652 }
 0xd51   : > { %v1657_v58 = vmul.f32 0.03125, %v1653_v57 }
 0xd53   : > { %v1659_v59 = vsub.f32 %v1647_v51, %v1657_v58 }
 0xd54   : > { %v1656_v60 = vpop.xlane.xlu0 %1655 }
 0xd55   : > { %v1658_v61 = vmul.f32 0.03125, %v1656_v60  ;;  %v1661_v62 = vmul.f32 %v1659_v59, %v1659_v59 }
 0xd57   : > { %v1660_v63 = vsub.f32 %v1648_v55, %v1658_v61  ;;  %v1663_v33 = vsel %vm619_vm1, %v1661_v62, 0.0 }
 0xd58   : > { %1664 = vadd.xlane.f32.xlu0 %v1663_v33 }
 0xd59   : > { %v1662_v1 = vmul.f32 %v1660_v63, %v1660_v63 }
 0xd5b   : > { %v1666_v3 = vsel %vm619_vm1, %v1662_v1, 0.0 }
 0xd5c   : > { %1667 = vadd.xlane.f32.xlu1 %v1666_v3 }
 0xde1   : > { %v1665_v5 = vpop.xlane.xlu0 %1664 }
 0xde2   : > { %v1669_v7 = vmul.f32 0.03125, %v1665_v5 }
 0xde4   : > { %v1671_v10 = vadd.f32 1e-05, %v1669_v7 }
 0xde5   : > { %v1668_v8 = vpop.xlane.xlu1 %1667 }
 0xde6   : > { %3395 = vrsqrt.f32 %v1671_v10  ;;  %v1670_v12 = vmul.f32 0.03125, %v1668_v8 }
 0xde8   : > { %v1672_v13 = vadd.f32 1e-05, %v1670_v12 }
 0xdea   : > { %3397 = vrsqrt.f32 %v1672_v13 }
 0xdf3   : > { %v3396_v11 = vpop.eup %3395 }
 0xdf4   : > { %v1675_v14 = vmul.f32 %v3396_v11, %v1659_v59 }
 0xdf6   : > { %v1683_v19 = vmul.f32 %v2925_v17, %v1675_v14 }
 0xdf7   : > { %v3398_v23 = vpop.eup %3397 }
 0xdf8   : > { %v1676_v18 = vmul.f32 %v3398_v23, %v1660_v63  ;;  %v3817_v24 = vadd.f32 %v2926_v21, %v1683_v19 }
 0xdfa   : > { %v1684_v22 = vmul.f32 %v2925_v17, %v1676_v18 }
 0xdfc   : > { %v3819_v25 = vadd.f32 %v2926_v21, %v1684_v22 }
 0xdfe   : > { %v1693_v27 = vpack.c.bf16 %v3819_v25, %v3817_v24 }
 0xe00   : > { %3193 = vmatmul.mubr.msk.bf16.vlgmr.msra.gmra.mxu0 %vm619_vm1, %v1693_v27 }
 0xe01   : > { %3198 = vmatprep.mubr.msk.bf16.mxu0 %vm3433_vm0, %v3432_v2 }
 0xec0   : > { %v1756_v28 = vpop.f32.mrf.mxu0 }
 0xec1   : > { %v1757_v20 = vadd.f32 %v2932_v30, %v1756_v28 }
 0xec2   : > { %v3194_v31 = vpop.f32.mrf.mxu0 }
 0xec4   : > { %v1759_v32 = vpop.f32.mrf.mxu0 }
 0xec5   : > { %v1760_v34 = vadd.f32 %v2932_v30, %v1759_v32 }
 0xec6   : > { %v3195_v36 = vpop.f32.mrf.mxu0 }
 0xec7   : > { %v3829_v37 = vpack.c.bf16 %v1760_v34, %v1757_v20 }
 0xec9   : > { %1765 = vrot.lane.b32.xlu0 %v3829_v37, %s3434_s24 }
 0xecd   : > { %1890 = vrot.lane.b32.xlu0 %v3829_v37, %s3435_s22 }
 0xed1   : > { %1888 = vrot.lane.b32.xlu0 %v3829_v37, %s3437_s30 }
 0xf3b   : > { %v1766_v38 = vpop.permute.xlu0 %1765 }
 0xf3c   : > { %v1771_v40 = vsel %vm668_vm2, %v1766_v38, 0 }
 0xf3d   : > { %3197 = vmatpush3.bf16.xpose.msra.mxu0 %v1771_v40 }
 0xf3e   : > { %3202 = vmatprep.subr.bf16.mxu0 %v3432_v2 }
 0xf3f   : > { %v1891_v4 = vpop.permute.xlu0 %1890 }
 0xf40   : > { %v1896_v7 = vsel %vm668_vm2, %v1891_v4, 0 }
 0xf43   : > { %v1889_v10 = vpop.permute.xlu0 %1888 }
 0xf44   : > { %3199 = vmatmul.mubr.msk.bf16.vlgmr.msra.gmra.mxu0 %vm668_vm2, %v3829_v37 }
 0xf45   : > { %3204 = vmatprep.mubr.msk.bf16.mxu0 %vm3433_vm0, %v3432_v2 }
0x1004   : > { %v1807_v41 = vpop.f32.mrf.mxu0 }
0x1005   : > { %v1814_v42 = vmul.f32 0.25, %v1807_v41 }
0x1006   : > { %v3200_v43 = vpop.f32.mrf.mxu0 }
0x1007   : > { %v1816_v44 = vadd.f32 %v1814_v42, %v3598_v29 }
0x1008   : > { %v1810_v45 = vpop.f32.mrf.mxu0 }
0x1009   : > { %v1815_v46 = vmul.f32 0.25, %v1810_v45  ;;  %v1818_v47 = vsel %vm668_vm2, %v1816_v44, -inf }
0x100a   : > { %1819 = vmax.xlane.f32.xlu1 %v1818_v47  ;;  %v3201_v48 = vpop.f32.mrf.mxu0 }
0x100b   : > { %v1817_v49 = vadd.f32 %v1815_v46, %v3598_v29 }
0x100d   : > { %v1821_v50 = vsel %vm668_vm2, %v1817_v49, -inf }
0x100e   : > { %1822 = vmax.xlane.f32.xlu1 %v1821_v50 }
0x1093   : > { %v1820_v51 = vpop.xlane.xlu1 %1819 }
0x1094   : > { %v1824_v52 = vsub.f32 %v1816_v44, %v1820_v51  ;;  %v3356_v51 = vld [vmem:[%s4049_s6 + $0x10] sm:$0xff]  }
0x1096   : > { %v1826_v53 = vmul.f32 1.442695, %v1824_v52 }
0x1097   : > { %v1823_v54 = vpop.xlane.xlu1 %1822 }
0x1098   : > { %3399 = vpow2.f32 %v1826_v53  ;;  %v1825_v55 = vsub.f32 %v1817_v49, %v1823_v54 }
0x109a   : > { %v1828_v56 = vmul.f32 1.442695, %v1825_v55 }
0x109c   : > { %3401 = vpow2.f32 %v1828_v56 }
0x10a5   : > { %v3400_v57 = vpop.eup %3399 }
0x10a6   : > { %v1830_v58 = vsel %vm668_vm2, %v3400_v57, 0.0 }
0x10a7   : > { %1831 = vadd.xlane.f32.xlu1 %v1830_v58 }
0x10a9   : > { %v3402_v59 = vpop.eup %3401 }
0x10aa   : > { %v1833_v60 = vsel %vm668_vm2, %v3402_v59, 0.0 }
0x10ab   : > { %1834 = vadd.xlane.f32.xlu1 %v1833_v60 }
0x10bc   : > { %1841 = vrot.lane.b32.xlu1 %v3829_v37, %s3436_s29 }
0x1130   : > { %v1832_v61 = vpop.xlane.xlu1 %1831 }
0x1131   : > { %3403 = vrcp.f32 %v1832_v61 }
0x1134   : > { %v1835_v62 = vpop.xlane.xlu1 %1834 }
0x1135   : > { %3405 = vrcp.f32 %v1835_v62 }
0x1138   : > { %v1842_v63 = vpop.permute.xlu1 %1841 }
0x1139   : > { %3203 = vmatpush3.bf16.msra.mxu0 %v1842_v63  ;;  %v2945_v63 = vld [vmem:[%s4050_s7 + $0x1] ss:$0 sm:$0xff] }
0x113a   : > { %3208 = vmatprep.subr.bf16.mxu0 %v3432_v2 }
0x113e   : > { %v3404_v33 = vpop.eup %3403 }
0x113f   : > { %v1838_v3 = vmul.f32 %v3404_v33, %v3400_v57 }
0x1142   : > { %v3406_v1 = vpop.eup %3405 }
0x1143   : > { %v1839_v35 = vmul.f32 %v3406_v1, %v3402_v59 }
0x1145   : > { %v1840_v5 = vpack.c.bf16 %v1839_v35, %v1838_v3 }
0x1147   : > { %3205 = vmatmul.mubr.msk.bf16.vlgmr.msra.gmra.mxu0 %vm668_vm2, %v1840_v5 }
0x1148   : > { %3209 = vmatpush3.bf16.xpose.msra.mxu0 %v1896_v7  ;;  %3210 = vmatprep.mubr.msk.bf16.mxu0 %vm3433_vm0, %v3432_v2 }
0x1149   : > { %3214 = vmatprep.subr.bf16.mxu0 %v3432_v2 }
0x114f   : > { %3211 = vmatmul.mubr.msk.bf16.vlgmr.msra.gmra.mxu0 %vm668_vm2, %v1889_v10 }
0x1150   : > { %3216 = vmatprep.mubr.msk.bf16.mxu0 %vm3433_vm0, %v3432_v2 }
0x1207   : > { %v1881_v8 = vpop.f32.mrf.mxu0 }
0x1209   : > { %v3206_v12 = vpop.f32.mrf.mxu0 }
0x120b   : > { %v1884_v13 = vpop.f32.mrf.mxu0 }
0x120d   : > { %v3207_v11 = vpop.f32.mrf.mxu0 }
0x120f   : > { %v1932_v14 = vpop.f32.mrf.mxu0 }
0x1210   : > { %v1939_v17 = vmul.f32 0.25, %v1932_v14 }
0x1211   : > { %v3212_v23 = vpop.f32.mrf.mxu0 }
0x1212   : > { %v1941_v18 = vadd.f32 %v1939_v17, %v3598_v29 }
0x1213   : > { %v1935_v19 = vpop.f32.mrf.mxu0 }
0x1214   : > { %v1940_v21 = vmul.f32 0.25, %v1935_v19  ;;  %v1943_v22 = vsel %vm668_vm2, %v1941_v18, -inf }
0x1215   : > { %1944 = vmax.xlane.f32.xlu0 %v1943_v22  ;;  %v3213_v27 = vpop.f32.mrf.mxu0 }
0x1216   : > { %v1942_v28 = vadd.f32 %v1940_v21, %v3598_v29 }
0x1218   : > { %v1946_v30 = vsel %vm668_vm2, %v1942_v28, -inf }
0x1219   : > { %1947 = vmax.xlane.f32.xlu1 %v1946_v30 }
0x129e   : > { %v1945_v31 = vpop.xlane.xlu0 %1944 }
0x129f   : > { %v1949_v32 = vsub.f32 %v1941_v18, %v1945_v31 }
0x12a1   : > { %v1951_v20 = vmul.f32 1.442695, %v1949_v32 }
0x12a2   : > { %v1948_v34 = vpop.xlane.xlu1 %1947 }
0x12a3   : > { %3407 = vpow2.f32 %v1951_v20  ;;  %v1950_v36 = vsub.f32 %v1942_v28, %v1948_v34  ;;  %v2951_v34 = vld [vmem:[%s4051_s8 + $0x1] ss:$0 sm:$0xff] }
0x12a5   : > { %v1953_v38 = vmul.f32 1.442695, %v1950_v36 }
0x12a7   : > { %3409 = vpow2.f32 %v1953_v38 }
0x12b0   : > { %v3408_v40 = vpop.eup %3407 }
0x12b1   : > { %v1955_v41 = vsel %vm668_vm2, %v3408_v40, 0.0 }
0x12b2   : > { %1956 = vadd.xlane.f32.xlu0 %v1955_v41  ;;  %v2952_v41 = vld [vmem:[%s4052_s9 + $0x1] ss:$0 sm:$0xff] }
0x12b4   : > { %v3410_v42 = vpop.eup %3409 }
0x12b5   : > { %v1958_v43 = vsel %vm668_vm2, %v3410_v42, 0.0 }
0x12b6   : > { %1959 = vadd.xlane.f32.xlu0 %v1958_v43 }
0x12cc   : > { %1966 = vrot.lane.b32.xlu0 %v3829_v37, %s3438_s0  ;;  %v3355_v37 = vld [vmem:[%s4049_s6 + $0x18] sm:$0xff]  }
0x12cd   : > { %3221 = vmatpush3.bf16.msra.mxu1 %v3355_v37  ;;  %v3361_v37 = vld [vmem:[%s4053_s10 + $0x38] sm:$0xff]  }
0x12ce   : > { %3222 = vmatprep.subr.bf16.mxu1 %v3432_v2 }
0x12d1   : > { %3223 = vmatpush3.bf16.msra.mxu1 %v3356_v51  ;;  %v3362_v51 = vld [vmem:[%s4053_s10 + $0x30] sm:$0xff]  }
0x133b   : > { %v1957_v29 = vpop.xlane.xlu0 %1956 }
0x133c   : > { %3411 = vrcp.f32 %v1957_v29 }
0x133f   : > { %v1960_v44 = vpop.xlane.xlu0 %1959 }
0x1340   : > { %3413 = vrcp.f32 %v1960_v44 }
0x1343   : > { %v1967_v45 = vpop.permute.xlu0 %1966 }
0x1344   : > { %3215 = vmatpush3.bf16.msra.mxu0 %v1967_v45 }
0x1349   : > { %v3412_v46 = vpop.eup %3411 }
0x134a   : > { %v1963_v48 = vmul.f32 %v3412_v46, %v3408_v40 }
0x134d   : > { %v3414_v47 = vpop.eup %3413 }
0x134e   : > { %v1964_v49 = vmul.f32 %v3414_v47, %v3410_v42 }
0x1350   : > { %v1965_v50 = vpack.c.bf16 %v1964_v49, %v1963_v48  ;;  %v3357_v48 = vld [vmem:[%s4053_s10 + $0x58] sm:$0xff]   ;;  %v3358_v49 = vld [vmem:[%s4053_s10 + $0x50] sm:$0xff]  }
0x1352   : > { %3217 = vmatmul.mubr.msk.bf16.vlgmr.msra.gmra.mxu0 %vm668_vm2, %v1965_v50  ;;  %v3359_v50 = vld [vmem:[%s4053_s10 + $0x48] sm:$0xff]  }
0x1353   : > { %3232 = vmatprep.mubr.msk.f32.mxu0 %vm668_vm2, %v3654_v15 }
0x1412   : > { %v2006_v52 = vpop.f32.mrf.mxu0 }
0x1414   : > { %v3218_v53 = vpop.f32.mrf.mxu0 }
0x1416   : > { %v2009_v54 = vpop.f32.mrf.mxu0 }
0x1417   : > { %v3311_v55 = vpack.i.bf16 %v2009_v54, %v2006_v52 }
0x1418   : > { %v3219_v56 = vpop.f32.mrf.mxu0 }
0x1419   : > { %3312 = vrot.lane.b32.xlu1 %v3311_v55, %s4064_s28 }
0x148b   : > { %v3313_v57 = vpop.permute.xlu1 %3312 }
0x148c   : > { %v3315_v58 = vunpack.i.h.bf16 %v3313_v57  ;;  %v3314_v59 = vunpack.i.l.bf16 %v3313_v57 }
0x148e   : > { %v2022_v60 = vsel %vm668_vm2, %v1884_v13, %v3315_v58  ;;  %v2021_v61 = vsel %vm668_vm2, %v1881_v8, %v3314_v59 }
0x148f   : > { %v2023_v62 = vpack.c.bf16 %v2022_v60, %v2021_v61 }
0x1491   : > { %3225 = vmatmul.mubr.msk.bf16.vlgmr.msra.gmra.mxu1 %vm619_vm1, %v2023_v62 }
0x1492   : > { %3239 = vmatprep.mubr.msk.f32.mxu1 %vm668_vm2, %v3657_v16 }
0x1551   : > { %v2086_v33 = vpop.f32.mrf.mxu1 }
0x1552   : > { %v2087_v1 = vadd.f32 %v2945_v63, %v2086_v33 }
0x1553   : > { %v3226_v3 = vpop.f32.mrf.mxu1 }
0x1554   : > { %v2093_v35 = vadd.f32 %v2087_v1, %v3817_v24 }
0x1555   : > { %v2089_v4 = vpop.f32.mrf.mxu1 }
0x1556   : > { %v2090_v5 = vadd.f32 %v2945_v63, %v2089_v4  ;;  %v2099_v7 = vsel %vm619_vm1, %v2093_v35, 0.0 }
0x1557   : > { %2100 = vadd.xlane.f32.xlu0 %v2099_v7  ;;  %v3227_v10 = vpop.f32.mrf.mxu1 }
0x1558   : > { %v2094_v8 = vadd.f32 %v2090_v5, %v3819_v25 }
0x155a   : > { %v2102_v12 = vsel %vm619_vm1, %v2094_v8, 0.0 }
0x155b   : > { %2103 = vadd.xlane.f32.xlu1 %v2102_v12 }
0x15e0   : > { %v2101_v13 = vpop.xlane.xlu0 %2100 }
0x15e1   : > { %v2105_v11 = vmul.f32 0.03125, %v2101_v13 }
0x15e3   : > { %v2107_v14 = vsub.f32 %v2093_v35, %v2105_v11  ;;  %v2970_v35 = vld [vmem:[%s4054_s11 + $0x1] ss:$0 sm:$0xff] }
0x15e4   : > { %v2104_v17 = vpop.xlane.xlu1 %2103 }
0x15e5   : > { %v2106_v23 = vmul.f32 0.03125, %v2104_v17  ;;  %v2109_v18 = vmul.f32 %v2107_v14, %v2107_v14 }
0x15e7   : > { %v2108_v19 = vsub.f32 %v2094_v8, %v2106_v23  ;;  %v2111_v24 = vsel %vm619_vm1, %v2109_v18, 0.0  ;;  %v3363_v18 = vld [vmem:[%s4055_s12 + $0x98] sm:$0xff]  }
0x15e8   : > { %2112 = vadd.xlane.f32.xlu1 %v2111_v24  ;;  %v3368_v24 = vld [vmem:[%s4055_s12 + $0x70] sm:$0xff]  }
0x15e9   : > { %v2110_v21 = vmul.f32 %v2108_v19, %v2108_v19 }
0x15eb   : > { %v2114_v22 = vsel %vm619_vm1, %v2110_v21, 0.0  ;;  %v3369_v21 = vld [vmem:[%s4055_s12 + $0x68] sm:$0xff]  }
0x15ec   : > { %2115 = vadd.xlane.f32.xlu0 %v2114_v22  ;;  %v3370_v22 = vld [vmem:[%s4055_s12 + $0x60] sm:$0xff]  }
0x1671   : > { %v2113_v27 = vpop.xlane.xlu1 %2112 }
0x1672   : > { %v2117_v28 = vmul.f32 0.03125, %v2113_v27  ;;  %v3371_v27 = vld [vmem:[%s4055_s12 + $0xb8] sm:$0xff]  }
0x1674   : > { %v2119_v25 = vadd.f32 1e-05, %v2117_v28  ;;  %v3372_v28 = vld [vmem:[%s4055_s12 + $0xb0] sm:$0xff]  }
0x1675   : > { %v2116_v30 = vpop.xlane.xlu0 %2115 }
0x1676   : > { %3415 = vrsqrt.f32 %v2119_v25  ;;  %v2118_v31 = vmul.f32 0.03125, %v2116_v30  ;;  %v3373_v25 = vld [vmem:[%s4055_s12 + $0xa8] sm:$0xff]   ;;  %v3374_v30 = vld [vmem:[%s4055_s12 + $0xa0] sm:$0xff]  }
0x1678   : > { %v2120_v32 = vadd.f32 1e-05, %v2118_v31 }
0x167a   : > { %3417 = vrsqrt.f32 %v2120_v32 }
0x1683   : > { %v3416_v20 = vpop.eup %3415 }
0x1684   : > { %v2123_v36 = vmul.f32 %v3416_v20, %v2107_v14 }
0x1686   : > { %v2131_v38 = vmul.f32 %v2951_v34, %v2123_v36 }
0x1687   : > { %v3418_v40 = vpop.eup %3417 }
0x1688   : > { %v2124_v42 = vmul.f32 %v3418_v40, %v2108_v19  ;;  %v3899_v29 = vadd.f32 %v2952_v41, %v2131_v38  ;;  %v3367_v19 = vld [vmem:[%s4055_s12 + $0x78] sm:$0xff]  }
0x168a   : > { %v2132_v43 = vmul.f32 %v2951_v34, %v2124_v42  ;;  %v2141_v46 = vmul.f32 %v3899_v29, %v3562_v6 }
0x168c   : > { %v3901_v44 = vadd.f32 %v2952_v41, %v2132_v43 }
0x168e   : > { %v2142_v45 = vmul.f32 %v3901_v44, %v3564_v9 }
0x1690   : > { %3228 = vmatprep.subr.mxu0 %v2142_v45  ;;  %3235 = vmatprep.subr.mxu1 %v2142_v45  ;;  %v3316_v47 = vpack.i.bf16 %v2142_v45, %v2141_v46 }
0x1691   : > { %3229 = vmatpush3.msra.mxu0 %v2142_v45  ;;  %3236 = vmatpush3.msra.mxu1 %v2142_v45 }
0x1692   : > { %3317 = vrot.lane.b32.xlu0 %v3316_v47, %s4065_s27  ;;  %3230 = vmatprep.subr.mxu0 %v2141_v46 }
0x1693   : > { %3237 = vmatprep.subr.mxu1 %v2141_v46  ;;  %3231 = vmatpush3.msra.mxu0 %v2141_v46 }
0x1694   : > { %3238 = vmatpush3.msra.mxu1 %v2141_v46  ;;  %3233 = vmatmul.mubr.msk.f32.vlgmr.msra.gmra.mxu0 %vm668_vm2, %v3679_v39 }
0x1695   : > { %3240 = vmatmul.mubr.msk.f32.vlgmr.msra.gmra.mxu1 %vm668_vm2, %v3683_v26  ;;  %3242 = vmatprep.subr.bf16.mxu0 %v3432_v2 }
0x1696   : > { %3254 = vmatprep.mubr.msk.bf16.mxu0 %vm3433_vm0, %v3432_v2  ;;  %3262 = vmatprep.mubr.msk.f32.mxu1 %vm668_vm2, %v3654_v15  ;;  %v3360_v15 = vld [vmem:[%s4053_s10 + $0x40] sm:$0xff]  }
0x1697   : > { %3243 = vmatpush3.bf16.msra.mxu0 %v3357_v48 }
0x1698   : > { %3244 = vmatprep.subr.bf16.mxu0 %v3432_v2 }
0x169b   : > { %3245 = vmatpush3.bf16.msra.mxu0 %v3358_v49 }
0x169c   : > { %3246 = vmatprep.subr.bf16.mxu0 %v3432_v2 }
0x169f   : > { %3247 = vmatpush3.bf16.msra.mxu0 %v3359_v50 }
0x16a0   : > { %3248 = vmatprep.subr.bf16.mxu0 %v3432_v2 }
0x16a3   : > { %3249 = vmatpush3.bf16.msra.mxu0 %v3360_v15 }
0x16a4   : > { %3250 = vmatprep.subr.bf16.mxu0 %v3432_v2 }
0x16a7   : > { %3251 = vmatpush3.bf16.msra.mxu0 %v3361_v37 }
0x16a8   : > { %3252 = vmatprep.subr.bf16.mxu0 %v3432_v2 }
0x16ab   : > { %3253 = vmatpush3.bf16.msra.mxu0 %v3362_v51 }
0x1704   : > { %v3318_v56 = vpop.permute.xlu0 %3317 }
0x1705   : > { %v3320_v58 = vunpack.i.h.bf16 %v3318_v56  ;;  %v3319_v59 = vunpack.i.l.bf16 %v3318_v56 }
0x1754   : > { %v3234_v55 = vpop.f32.mrf.mxu0 }
0x1755   : > { %v3241_v52 = vpop.f32.mrf.mxu1  ;;  %v2325_v2 = vsel %vm619_vm1, %v3234_v55, %v3320_v58 }
0x1756   : > { %v2224_v57 = vpop.f32.mrf.mxu0 }
0x1757   : > { %v2299_v53 = vpop.f32.mrf.mxu1  ;;  %v2324_v63 = vsel %vm619_vm1, %v2224_v57, %v3319_v59 }
0x1758   : > { %v3321_v54 = vpack.i.bf16 %v3241_v52, %v2299_v53 }
0x175a   : > { %3322 = vrot.lane.b32.xlu1 %v3321_v54, %s3436_s29 }
0x17cc   : > { %v3323_v60 = vpop.permute.xlu1 %3322 }
0x17cd   : > { %v3325_v61 = vunpack.i.h.bf16 %v3323_v60  ;;  %v3324_v62 = vunpack.i.l.bf16 %v3323_v60 }
0x17cf   : > { %v2326_v33 = vsel %vm1241_vm7, %v2324_v63, %v3324_v62  ;;  %v2327_v1 = vsel %vm1241_vm7, %v2325_v2, %v3325_v61 }
0x17d0   : > { %v2328_v3 = vpack.c.bf16 %v2327_v1, %v2326_v33 }
0x17d2   : > { %3255 = vmatmul.mubr.msk.bf16.vlgmr.msra.gmra.mxu0 %vm1287_vm8, %v2328_v3 }
0x1892   : > { %v2408_v4 = vpop.f32.mrf.mxu0 }
0x1893   : > { %v2409_v5 = vadd.f32 %v2970_v35, %v2408_v4 }
0x1894   : > { %v3256_v7 = vpop.f32.mrf.mxu0 }
0x1895   : > { %v2415_v8 = vmax.f32 %v2409_v5, 0.0  ;;  %v3023_v7 = vld [vmem:[%s4057_s14 + $0x1] ss:$0 sm:$0xff] }
0x1896   : > { %v2411_v10 = vpop.f32.mrf.mxu0 }
0x1897   : > { %v2412_v12 = vadd.f32 %v2970_v35, %v2411_v10  ;;  %v2417_v14 = vmul.f32 %v2415_v8, %v3562_v6  ;;  %v3024_v8 = vld [vmem:[%s4058_s15 + $0x1] ss:$0 sm:$0xff] }
0x1898   : > { %v3257_v13 = vpop.f32.mrf.mxu0 }
0x1899   : > { %v2416_v11 = vmax.f32 %v2412_v12, 0.0 }
0x189b   : > { %v2418_v17 = vmul.f32 %v2416_v11, %v3564_v9 }
0x189d   : > { %3258 = vmatprep.subr.mxu1 %v2418_v17  ;;  %v3326_v23 = vpack.i.bf16 %v2418_v17, %v2417_v14 }
0x189e   : > { %3259 = vmatpush3.msra.mxu1 %v2418_v17 }
0x189f   : > { %3327 = vrot.lane.b32.xlu1 %v3326_v23, %s3436_s29  ;;  %3260 = vmatprep.subr.mxu1 %v2417_v14 }
0x18a0   : > { %3261 = vmatpush3.msra.mxu1 %v2417_v14 }
0x18a1   : > { %3263 = vmatmul.mubr.msk.f32.vlgmr.msra.gmra.mxu1 %vm668_vm2, %v3679_v39  ;;  %3265 = vmatprep.subr.mxu1 %v2418_v17  ;;  %v3364_v39 = vld [vmem:[%s4055_s12 + $0x90] sm:$0xff]  }
0x18a2   : > { %3266 = vmatpush3.msra.mxu1 %v2418_v17  ;;  %3269 = vmatprep.mubr.msk.f32.mxu1 %vm668_vm2, %v3657_v16  ;;  %v3365_v16 = vld [vmem:[%s4055_s12 + $0x88] sm:$0xff]   ;;  %v2782_v17 = vld [vmem:[%s4046_s3] sm:$0xff] }
0x18a3   : > { %3267 = vmatprep.subr.mxu1 %v2417_v14 }
0x18a4   : > { %3268 = vmatpush3.msra.mxu1 %v2417_v14 }
0x18a5   : > { %3270 = vmatmul.mubr.msk.f32.vlgmr.msra.gmra.mxu1 %vm668_vm2, %v3683_v26  ;;  %2689 = vmatprep.subr.bf16.mxu1 %v3431_v0  ;;  %v3366_v26 = vld [vmem:[%s4055_s12 + $0x80] sm:$0xff]  }
0x18a6   : > { %2690 = vmatpush1.bf16.msra.mxu1 %v3363_v18 }
0x18a7   : > { %2691 = vmatprep.subr.bf16.mxu1 %v3431_v0 }
0x18aa   : > { %2692 = vmatpush1.bf16.msra.mxu1 %v3364_v39 }
0x18ab   : > { %2693 = vmatprep.subr.bf16.mxu1 %v3431_v0 }
0x18ae   : > { %2694 = vmatpush1.bf16.msra.mxu1 %v3365_v16 }
0x18af   : > { %2695 = vmatprep.subr.bf16.mxu1 %v3431_v0 }
0x18b2   : > { %2696 = vmatpush1.bf16.msra.mxu1 %v3366_v26  ;;  %v2783_v26 = vld [vmem:[%s4046_s3 + $0x8] sm:$0xff] }
0x18b3   : > { %2697 = vmatprep.subr.bf16.mxu1 %v3431_v0 }
0x18b6   : > { %2698 = vmatpush1.bf16.msra.mxu1 %v3367_v19 }
0x18b7   : > { %2699 = vmatprep.subr.bf16.mxu1 %v3431_v0 }
0x18ba   : > { %2700 = vmatpush1.bf16.msra.mxu1 %v3368_v24 }
0x18bb   : > { %2701 = vmatprep.subr.bf16.mxu1 %v3431_v0 }
0x18be   : > { %2702 = vmatpush1.bf16.msra.mxu1 %v3369_v21 }
0x18bf   : > { %2703 = vmatprep.subr.bf16.mxu1 %v3431_v0 }
0x18c2   : > { %2704 = vmatpush1.bf16.msra.mxu1 %v3370_v22 }
0x18c3   : > { %2713 = vmatprep.subr.bf16.mxu1 %v3431_v0 }
0x18c6   : > { %2714 = vmatpush2.bf16.msra.mxu1 %v3371_v27 }
0x18c7   : > { %2715 = vmatprep.subr.bf16.mxu1 %v3431_v0 }
0x18ca   : > { %2716 = vmatpush2.bf16.msra.mxu1 %v3372_v28 }
0x18cb   : > { %2717 = vmatprep.subr.bf16.mxu1 %v3431_v0 }
0x18ce   : > { %2718 = vmatpush2.bf16.msra.mxu1 %v3373_v25 }
0x18cf   : > { %2719 = vmatprep.subr.bf16.mxu1 %v3431_v0  ;;  %v3007_v0 = vld [vmem:[%s4056_s13 + $0x1] ss:$0 sm:$0xff] }
0x18d2   : > { %2720 = vmatpush2.bf16.msra.mxu1 %v3374_v30 }
0x1911   : > { %v3328_v31 = vpop.permute.xlu1 %3327 }
0x1912   : > { %v3329_v34 = vunpack.i.l.bf16 %v3328_v31  ;;  %v3330_v38 = vunpack.i.h.bf16 %v3328_v31 }
0x1961   : > { %v3264_v32 = vpop.f32.mrf.mxu1 }
0x1962   : > { %v2605_v42 = vsel %vm1241_vm7, %v3264_v32, %v3330_v38 }
0x1963   : > { %v2512_v20 = vpop.f32.mrf.mxu1 }
0x1964   : > { %v2604_v40 = vsel %vm1241_vm7, %v2512_v20, %v3329_v34 }
0x1965   : > { %v3271_v36 = vpop.f32.mrf.mxu1  ;;  %v2606_v45 = vpack.c.bf16 %v2605_v42, %v2604_v40 }
0x1967   : > { %v2587_v41 = vpop.f32.mrf.mxu1 }
0x1968   : > { %v2607_v43 = vpack.c.bf16 %v3271_v36, %v2587_v41 }
0x196a   : > { %3020 = vmatprep.mubr.msk.bf16.mxu1 %vm1241_vm7, %v2607_v43 }
0x196b   : > { %2722 = vmatmul.mubr.bf16.vlgmr.msra.gmra.mxu1 %v2606_v45 }
0x1a2b   : > { %v2723_v46 = vpop.f32.mrf.mxu1 }
0x1a2c   : > { %v2724_v47 = vadd.f32 %v3007_v0, %v2723_v46 }
0x1a2d   : > { %v2725_v48 = vpop.f32.mrf.mxu1 }
0x1a2e   : > { %v2730_v49 = vmul.f32 %v2724_v47, %v3562_v6 }
0x1a2f   : > { %v2726_v50 = vpop.f32.mrf.mxu1 }
0x1a30   : > { %v2727_v15 = vadd.f32 %v3007_v0, %v2726_v50  ;;  %v2732_v37 = vadd.f32 %v2730_v49, %v3899_v29 }
0x1a31   : > { %v2728_v51 = vpop.f32.mrf.mxu1 }
0x1a32   : > { %v2731_v52 = vmul.f32 %v2727_v15, %v3564_v9  ;;  %v2738_v53 = vsel %vm619_vm1, %v2732_v37, 0.0 }
0x1a33   : > { %2739 = vadd.xlane.f32.xlu0 %v2738_v53 }
0x1a34   : > { %v2733_v54 = vadd.f32 %v2731_v52, %v3901_v44 }
0x1a36   : > { %v2741_v55 = vsel %vm619_vm1, %v2733_v54, 0.0 }
0x1a37   : > { %2742 = vadd.xlane.f32.xlu1 %v2741_v55 }
0x1abc   : > { %v2740_v56 = vpop.xlane.xlu0 %2739 }
0x1abd   : > { %v2744_v57 = vmul.f32 0.03125, %v2740_v56 }
0x1abf   : > { %v2746_v58 = vsub.f32 %v2732_v37, %v2744_v57 }
0x1ac0   : > { %v2743_v59 = vpop.xlane.xlu1 %2742 }
0x1ac1   : > { %v2745_v60 = vmul.f32 0.03125, %v2743_v59  ;;  %v2748_v61 = vmul.f32 %v2746_v58, %v2746_v58 }
0x1ac3   : > { %v2747_v62 = vsub.f32 %v2733_v54, %v2745_v60  ;;  %v2750_v29 = vsel %vm619_vm1, %v2748_v61, 0.0 }
0x1ac4   : > { %2751 = vadd.xlane.f32.xlu0 %v2750_v29 }
0x1ac5   : > { %v2749_v2 = vmul.f32 %v2747_v62, %v2747_v62 }
0x1ac7   : > { %v2753_v63 = vsel %vm619_vm1, %v2749_v2, 0.0 }
0x1ac8   : > { %2754 = vadd.xlane.f32.xlu0 %v2753_v63 }
0x1b4d   : > { %v2752_v33 = vpop.xlane.xlu0 %2751 }
0x1b4e   : > { %v2756_v1 = vmul.f32 0.03125, %v2752_v33 }
0x1b50   : > { %v2758_v44 = vadd.f32 1e-05, %v2756_v1 }
0x1b51   : > { %v2755_v3 = vpop.xlane.xlu0 %2754 }
0x1b52   : > { %3419 = vrsqrt.f32 %v2758_v44  ;;  %v2757_v35 = vmul.f32 0.03125, %v2755_v3 }
0x1b54   : > { %v2759_v4 = vadd.f32 1e-05, %v2757_v35 }
0x1b56   : > { %3421 = vrsqrt.f32 %v2759_v4 }
0x1b5f   : > { %v3420_v5 = vpop.eup %3419 }
0x1b60   : > { %v2762_v10 = vmul.f32 %v3420_v5, %v2746_v58 }
0x1b62   : > { %v2770_v12 = vmul.f32 %v3023_v7, %v2762_v10 }
0x1b63   : > { %v3422_v13 = vpop.eup %3421 }
0x1b64   : > { %v2778_v11 = vadd.f32 %v3024_v8, %v2770_v12  ;;  %v2763_v14 = vmul.f32 %v3422_v13, %v2747_v62 }
0x1b66   : > { %v2780_v23 = vmul.f32 %v2778_v11, %v3562_v6  ;;  %v2771_v18 = vmul.f32 %v3023_v7, %v2763_v14 }
0x1b68   : > { %v2784_v39 = vadd.f32 %v2782_v17, %v2780_v23  ;;  %v2779_v16 = vadd.f32 %v3024_v8, %v2771_v18 }
0x1b6a   : > { %2786 = vst.msk [vmem:[%s555_s19] sm:$0xff] %vm619_vm1, %v2784_v39  ;;  %v2781_v19 = vmul.f32 %v2779_v16, %v3564_v9 }
0x1b6c   : > { %v2785_v24 = vadd.f32 %v2783_v26, %v2781_v19 }
0x1b6e   : > { %2787 = vst.msk [vmem:[%s555_s19 + $0x8] sm:$0xff] %vm619_vm1, %v2785_v24 }
0x1b6f PF: > { %s26_s21 = sadd.s32 1, %s3429_s21  }
0x1b70   : > { %p23_p4 = scmp.ge.s32.totalorder %s26_s21, 4  }
0x1b72   :  { %25 = sbr.rel (!%p23_p4) target bundleno = 2 (0x2), region = 132 }

// kernel: forward.3
= control target key start
LH: loop header
LB: loop body
LE: loop exit
PB: predicated region body
PF: predicated region fallthrough
CT: control target
= control target key end

     0   :  { %s5397_s0 = inlined_call_operand.vmem [shape: f32[2,16,32], index: 0, kind: input, shape index: {}]   ;;  %s5398_s1 = inlined_call_operand.vmem [shape: f32[2,1,16], index: 1, kind: input, shape index: {}]   ;;  %s5399_s2 = inlined_call_operand.vmem [shape: f32[2,16,1], index: 2, kind: input, shape index: {}]   ;;  %s5400_s3 = inlined_call_operand.vmem [shape: bf16[3,96,32], index: 3, kind: input, shape index: {}]   ;;  %s5401_s4 = inlined_call_operand.vmem [shape: f32[3,1,32], index: 4, kind: input, shape index: {}]   ;;  %s5402_s5 = inlined_call_operand.vmem [shape: f32[3,1,32], index: 5, kind: input, shape index: {}]   ;;  %s5403_s6 = inlined_call_operand.vmem [shape: f32[3,1,32], index: 6, kind: input, shape index: {}]   ;;  %s5404_s7 = inlined_call_operand.vmem [shape: bf16[3,96,32], index: 7, kind: input, shape index: {}]   ;;  %s5405_s8 = inlined_call_operand.vmem [shape: f32[3,1,32], index: 8, kind: input, shape index: {}]   ;;  %s5406_s9 = inlined_call_operand.vmem [shape: f32[3,1,32], index: 9, kind: input, shape index: {}]   ;;  %s5407_s10 = inlined_call_operand.vmem [shape: f32[3,1,32], index: 10, kind: input, shape index: {}]   ;;  %s5408_s11 = inlined_call_operand.vmem [shape: bf16[1,32], index: 11, kind: input, shape index: {}]   ;;  %s5409_s12 = inlined_call_operand.<no memory space> [shape: f32[1,1], index: 12, kind: input, shape index: {}]   ;;  %s5410_s13 = inlined_call_operand.vmem [shape: f32[2,1,32], index: 13, kind: input, shape index: {}]   ;;  %s5411_s14 = inlined_call_operand.vmem [shape: f32[2,1,1], index: 14, kind: input, shape index: {}]   ;;  %s5412_s15 = inlined_call_operand.vmem [shape: f32[1,16], index: 15, kind: input, shape index: {}]   ;;  %s5413_s16 = inlined_call_operand.vmem [shape: f32[1,16], index: 16, kind: input, shape index: {}]   ;;  %s5414_s17 = inlined_call_operand.vmem [shape: f32[16,32], index: 17, kind: input, shape index: {}]   ;;  %s5415_s18 = inlined_call_operand.vmem [shape: f32[1,16], index: 18, kind: input, shape index: {}]   ;;  %s5416_s19 = inlined_call_operand.vmem [shape: f32[1,16], index: 19, kind: input, shape index: {}]   ;;  %s5417_s20 = inlined_call_operand.vmem [shape: f32[16,32], index: 20, kind: input, shape index: {}]   ;;  %s5418_s21 = inlined_call_operand.vmem [shape: f32[24,40], index: 21, kind: input, shape index: {}]   ;;  %s5419_s22 = inlined_call_operand.vmem [shape: bf16[96,8], index: 22, kind: input, shape index: {}]   ;;  %s5420_s23 = inlined_call_operand.vmem [shape: f32[1,8], index: 23, kind: input, shape index: {}]   ;;  %s5421_s24 = inlined_call_operand.vmem [shape: f32[2,24,8], index: 24, kind: output, shape index: {0}]   ;;  %s5422_s25 = inlined_call_operand.vmem [shape: f32[2,16,1], index: 25, kind: output, shape index: {1}]   ;;  %s5423_s26 = inlined_call_operand.vmem [shape: f32[2,16,1], index: 26, kind: output, shape index: {2}]   ;;  %s5424_s27 = inlined_call_operand.vmem [shape: f32[2,1,40], index: 27, kind: output, shape index: {3}]  }
   0x1   :  { %5442 = sst [smem:[#allocation5_spill]] %s5397_s0  ;;  %v33_v0 = vstv %s5409_s12 }
   0x2   :  { %5443 = sst [smem:[#allocation6_spill]] %s5398_s1  ;;  %34 = vst [vmem:[#allocation2] sm:$0x1] %v33_v0 }
   0x3   :  { %5444 = sst [smem:[#allocation7_spill]] %s5399_s2 }
   0x4   :  { %5445 = sst [smem:[#allocation8_spill]] %s5400_s3 }
   0x5   :  { %5446 = sst [smem:[#allocation9_spill]] %s5401_s4 }
   0x6   :  { %5447 = sst [smem:[#allocation10_spill]] %s5402_s5 }
   0x7   :  { %5448 = sst [smem:[#allocation11_spill]] %s5403_s6 }
   0x8   :  { %5449 = sst [smem:[#allocation12_spill]] %s5404_s7 }
   0x9   :  { %5450 = sst [smem:[#allocation13_spill]] %s5405_s8  ;;  %s4773_s8 = smov 0  }
   0xa   :  { %5451 = sst [smem:[#allocation14_spill]] %s5406_s9 }
   0xb   :  { %5452 = sst [smem:[#allocation15_spill]] %s5407_s10 }
   0xc   :  { %5453 = sst [smem:[#allocation16_spill]] %s5408_s11 }
   0xd   :  { %5454 = sst [smem:[#allocation17_spill]] %s5415_s18 }
   0xe   :  { %5455 = sst [smem:[#allocation18_spill]] %s5416_s19 }
   0xf   :  { %5456 = sst [smem:[#allocation19_spill]] %s5418_s21 }
  0x10   :  { %5457 = sst [smem:[#allocation20_spill]] %s5419_s22 }
  0x11   :  { %5458 = sst [smem:[#allocation21_spill]] %s5420_s23 }
  0x12   :  { %5459 = sst [smem:[#allocation22_spill]] %s5421_s24 }
  0x13   :  { %5460 = sst [smem:[#allocation23_spill]] %s5424_s27 }
  0x14 LB: > { %5461 = sst [smem:[#allocation3_spill]] %s4622_s8  ;;  %s3843_s30 = sadd.s32 4294967295, %s4622_s8   ;;  %s4622_s8 = sphi %s4773_s8, %s40_s8  }
  0x15   : > { %p3847_p0 = scmp.ge.s32.totalorder %s4622_s8, 1  ;;  %p764_p1 = scmp.lt.s32.totalorder %s4622_s8, 3 }
  0x17   : > { %p765_p2 = pnand %p3847_p0, %p764_p1 }
  0x19   : > { %768 = sbr.rel (%p765_p2) target bundleno = 6337 (0x18c1), region = 116 }
  0x1e   : > { %p857_p3 = scmp.lt.s32.totalorder %s3843_s30, 1  ;;  %v894_v1 = vlaneseq  ;;  %v4624_v2 = vmov 0.0   ;;  %vm926_vm0 = vcmask 130048   ;;  %s5463_s28 = sld [smem:[#allocation5_spill]]  ;;  %vm4626_vm5 = vmmov 0  }
  0x1f   : > { %4198 = vmatprep.subr.bf16.mxu0 %v4624_v2  ;;  %s5433_s10 = smov 32   ;;  %s5464_s6 = sld [smem:[#allocation8_spill]]  ;;  %4210 = vmatprep.mubr.msk.bf16.mxu0 %vm4626_vm5, %v4624_v2  ;;  %vm1105_vm6 = vcmask 261120   ;;  %vm1108_vm7 = vcmask 523264   ;;  %vm1154_vm8 = vcmask 785408   ;;  %vm3661_vm12 = vcmask 7168  }
  0x20   : > { %s5487_s30 = smov (!%p857_p3, %s3843_s30), 1  ;;  %v4784_v3 = vshrl.u32 %v894_v1, 7  ;;  %v4786_v4 = vand.u32 127, %v894_v1  ;;  %s5435_s11 = smov 64  }
  0x21   : > { %5462 = sst [smem:[#allocation4_spill]] %s5487_s30  ;;  %s4789_s12 = sshll.u32 %s5487_s30, 4 }
  0x22   : > { %v4792_v5 = vadd.s32 1, %v4786_v4  ;;  %v4795_v6 = vadd.s32 8, %v4784_v3  ;;  %v4798_v7 = vadd.s32 4294967295, %v4786_v4  ;;  %s5465_s7 = sld [smem:[#allocation9_spill]]  ;;  %s5469_s8 = smov 64   ;;  %vm1627_vm10 = vcmp.le.s32.totalorder %v4784_v3, %v4786_v4 }
  0x23   : > { %s5466_s5 = sld [smem:[#allocation10_spill]]  ;;  %s879_s21 = scalar_lea.vmem %s5422_s25, %s4789_s12 }
  0x24   : > { %s4804_s0 = scalar_lea.vmem %s5463_s28, %s4789_s12  ;;  %vm900_vm1 = vcmp.eq.s32.totalorder %v4784_v3, %v4792_v5  ;;  %vm901_vm2 = vcmp.eq.s32.totalorder %v4795_v6, %v4792_v5  ;;  %vm907_vm3 = vcmp.eq.s32.totalorder %v4784_v3, %v4798_v7  ;;  %vm908_vm4 = vcmp.eq.s32.totalorder %v4795_v6, %v4798_v7  ;;  %s5467_s1 = sld [smem:[#allocation11_spill]] }
  0x25   : > { %v890_v8 = vld [vmem:[%s4804_s0 + $0x8] sm:$0xff]  ;;  %v889_v9 = vld [vmem:[%s4804_s0] sm:$0xff]  ;;  %v4817_v10 = vsel %vm900_vm1, 1.0, %v4624_v2  ;;  %v4820_v11 = vsel %vm901_vm2, 1.0, %v4624_v2  ;;  %v4823_v12 = vsel %vm907_vm3, 1.0, %v4624_v2  ;;  %v4826_v13 = vsel %vm908_vm4, 1.0, %v4624_v2  ;;  %s884_s22 = scalar_lea.vmem %s5423_s26, %s4789_s12 }
  0x26   : > { %4184 = vmatprep.subr.mxu1 %v890_v8  ;;  %4188 = vmatprep.mubr.msk.f32.mxu1 %vm926_vm0, %v4817_v10  ;;  %v4484_v14 = vpack.i.bf16 %v890_v8, %v889_v9  ;;  %v4546_v15 = vld [vmem:[%s5464_s6 + $0x28] sm:$0xff]   ;;  %v4547_v16 = vld [vmem:[%s5464_s6 + $0x20] sm:$0xff]   ;;  %v4548_v17 = vld [vmem:[%s5464_s6 + $0x18] sm:$0xff]   ;;  %s5468_s4 = sld [smem:[#allocation12_spill]]  ;;  %vm1628_vm9 = vcmp.le.s32.totalorder %v4795_v6, %v4786_v4  ;;  %s5474_s28 = smov 32  }
  0x27   : > { %4185 = vmatpush3.msra.mxu1 %v890_v8  ;;  %4199 = vmatpush3.bf16.msra.mxu0 %v4546_v15  ;;  %v4549_v18 = vld [vmem:[%s5464_s6 + $0x10] sm:$0xff]   ;;  %v4550_v19 = vld [vmem:[%s5464_s6 + $0x8] sm:$0xff]   ;;  %v4551_v20 = vld [vmem:[%s5464_s6] sm:$0xff]   ;;  %s5472_s29 = sld [smem:[#allocation15_spill]] }
  0x28   : > { %4186 = vmatprep.subr.mxu1 %v889_v9  ;;  %4485 = vrot.lane.b32.xlu0 %v4484_v14, %s5433_s10  ;;  %v3866_v38 = vld [vmem:[%s5465_s7] ss:$0 sm:$0xff]  ;;  %s5473_s2 = sld [smem:[#allocation16_spill]] }
  0x29   : > { %4187 = vmatpush3.msra.mxu1 %v889_v9  ;;  %4200 = vmatprep.subr.bf16.mxu0 %v4624_v2  ;;  %v3874_v1 = vld [vmem:[%s5466_s5] ss:$0 sm:$0xff]  ;;  %s5475_s24 = sld [smem:[#allocation6_spill]] }
  0x2a   : > { %4189 = vmatmul.mubr.msk.f32.vlgmr.msra.gmra.mxu1 %vm926_vm0, %v4820_v11  ;;  %4191 = vmatprep.subr.mxu1 %v890_v8  ;;  %s5483_s23 = sld [smem:[#allocation21_spill]] }
  0x2b   : > { %4192 = vmatpush3.msra.mxu1 %v890_v8  ;;  %4195 = vmatprep.mubr.msk.f32.mxu1 %vm926_vm0, %v4823_v12  ;;  %s5484_s19 = sld [smem:[#allocation22_spill]] }
  0x2c   : > { %4193 = vmatprep.subr.mxu1 %v889_v9  ;;  %4201 = vmatpush3.bf16.msra.mxu0 %v4547_v16 }
  0x2d   : > { %4194 = vmatpush3.msra.mxu1 %v889_v9  ;;  %4202 = vmatprep.subr.bf16.mxu0 %v4624_v2  ;;  %v3875_v9 = vld [vmem:[%s5467_s1] ss:$0 sm:$0xff] }
  0x2e   : > { %4196 = vmatmul.mubr.msk.f32.vlgmr.msra.gmra.mxu1 %vm926_vm0, %v4826_v13 }
  0x2f   : > { %4218 = vmatprep.mubr.msk.f32.mxu1 %vm926_vm0, %v4817_v10  ;;  %s864_s3 = scalar_lea.vmem %s5475_s24, %s5487_s30  ;;  %s5476_s24 = sld [smem:[#allocation7_spill]] }
  0x30   : > { %4203 = vmatpush3.bf16.msra.mxu0 %v4548_v17 }
  0x31   : > { %4204 = vmatprep.subr.bf16.mxu0 %v4624_v2 }
  0x34   : > { %4205 = vmatpush3.bf16.msra.mxu0 %v4549_v18 }
  0x35   : > { %4206 = vmatprep.subr.bf16.mxu0 %v4624_v2 }
  0x38   : > { %4207 = vmatpush3.bf16.msra.mxu0 %v4550_v19 }
  0x39   : > { %4208 = vmatprep.subr.bf16.mxu0 %v4624_v2 }
  0x3c   : > { %4209 = vmatpush3.bf16.msra.mxu0 %v4551_v20 }
  0x3d   : > { %4244 = vmatprep.subr.bf16.mxu0 %v4624_v2 }
  0x9a   : > { %v4486_v26 = vpop.permute.xlu0 %4485 }
  0x9b   : > { %v4488_v27 = vunpack.i.h.bf16 %v4486_v26  ;;  %v4487_v28 = vunpack.i.l.bf16 %v4486_v26  ;;  %v4557_v26 = vld [vmem:[%s5468_s4] sm:$0xff]  }
  0xea   : > { %v4190_v21 = vpop.f32.mrf.mxu1 }
  0xeb   : > { %v1107_v32 = vsel %vm1105_vm6, %v4190_v21, %v4488_v27  ;;  %v4552_v21 = vld [vmem:[%s5468_s4 + $0x28] sm:$0xff]  }
  0xec   : > { %v999_v22 = vpop.f32.mrf.mxu1 }
  0xed   : > { %v1106_v33 = vsel %vm1105_vm6, %v999_v22, %v4487_v28  ;;  %v4553_v22 = vld [vmem:[%s5468_s4 + $0x20] sm:$0xff]  }
  0xee   : > { %v4197_v23 = vpop.f32.mrf.mxu1 }
  0xf0   : > { %v1080_v24 = vpop.f32.mrf.mxu1 }
  0xf1   : > { %v4489_v25 = vpack.i.bf16 %v4197_v23, %v1080_v24  ;;  %v4554_v23 = vld [vmem:[%s5468_s4 + $0x18] sm:$0xff]   ;;  %v4555_v24 = vld [vmem:[%s5468_s4 + $0x10] sm:$0xff]  }
  0xf3   : > { %4490 = vrot.lane.b32.xlu0 %v4489_v25, %s5435_s11  ;;  %v4556_v25 = vld [vmem:[%s5468_s4 + $0x8] sm:$0xff]   ;;  %s5470_s11 = sld [smem:[#allocation13_spill]] }
 0x165   : > { %v4491_v29 = vpop.permute.xlu0 %4490 }
 0x166   : > { %v4493_v30 = vunpack.i.h.bf16 %v4491_v29  ;;  %v4492_v31 = vunpack.i.l.bf16 %v4491_v29 }
 0x168   : > { %v1110_v34 = vsel %vm1108_vm7, %v1107_v32, %v4493_v30  ;;  %v1109_v35 = vsel %vm1108_vm7, %v1106_v33, %v4492_v31 }
 0x169   : > { %v4870_v36 = vpack.c.bf16 %v1110_v34, %v1109_v35 }
 0x16b   : > { %4211 = vmatmul.mubr.msk.bf16.vlgmr.msra.gmra.mxu0 %vm1154_vm8, %v4870_v36 }
 0x16c   : > { %4246 = vmatprep.mubr.msk.bf16.mxu0 %vm4626_vm5, %v4624_v2 }
 0x22b   : > { %v1192_v37 = vpop.f32.mrf.mxu0 }
 0x22c   : > { %v1193_v41 = vadd.f32 %v3866_v38, %v1192_v37 }
 0x22d   : > { %v4212_v39 = vpop.f32.mrf.mxu0 }
 0x22e   : > { %v1199_v45 = vmax.f32 %v1193_v41, 0.0 }
 0x22f   : > { %v1195_v40 = vpop.f32.mrf.mxu0 }
 0x230   : > { %v1196_v42 = vadd.f32 %v3866_v38, %v1195_v40  ;;  %v1203_v47 = vsel %vm1105_vm6, %v1199_v45, 0.0 }
 0x231   : > { %v4213_v43 = vpop.f32.mrf.mxu0 }
 0x232   : > { %v1200_v44 = vmax.f32 %v1196_v42, 0.0  ;;  %v4558_v43 = vld [vmem:[%s5464_s6 + $0x58] sm:$0xff]  }
 0x234   : > { %v1206_v46 = vsel %vm1105_vm6, %v1200_v44, 0.0 }
 0x235   : > { %1207 = vadd.xlane.f32.xlu1 %v1206_v46  ;;  %v4560_v46 = vld [vmem:[%s5464_s6 + $0x48] sm:$0xff]  }
 0x239   : > { %1204 = vadd.xlane.f32.xlu1 %v1203_v47  ;;  %v4561_v47 = vld [vmem:[%s5464_s6 + $0x40] sm:$0xff]  }
 0x2be   : > { %v1208_v48 = vpop.xlane.xlu1 %1207 }
 0x2bf   : > { %v1211_v49 = vmul.f32 0.03125, %v1208_v48  ;;  %v4562_v48 = vld [vmem:[%s5464_s6 + $0x38] sm:$0xff]  }
 0x2c1   : > { %v1213_v50 = vsub.f32 %v1200_v44, %v1211_v49  ;;  %v4563_v49 = vld [vmem:[%s5464_s6 + $0x30] sm:$0xff]  }
 0x2c2   : > { %v1205_v51 = vpop.xlane.xlu1 %1204 }
 0x2c3   : > { %v1210_v52 = vmul.f32 0.03125, %v1205_v51  ;;  %v1215_v53 = vmul.f32 %v1213_v50, %v1213_v50 }
 0x2c5   : > { %v1212_v54 = vsub.f32 %v1199_v45, %v1210_v52  ;;  %v1219_v55 = vsel %vm1105_vm6, %v1215_v53, 0.0  ;;  %v4559_v45 = vld [vmem:[%s5464_s6 + $0x50] sm:$0xff]  }
 0x2c6   : > { %1220 = vadd.xlane.f32.xlu0 %v1219_v55 }
 0x2c7   : > { %v1214_v56 = vmul.f32 %v1212_v54, %v1212_v54 }
 0x2c9   : > { %v1216_v57 = vsel %vm1105_vm6, %v1214_v56, 0.0 }
 0x2ca   : > { %1217 = vadd.xlane.f32.xlu1 %v1216_v57 }
 0x34f   : > { %v1221_v58 = vpop.xlane.xlu0 %1220 }
 0x350   : > { %v1223_v59 = vmul.f32 0.03125, %v1221_v58 }
 0x352   : > { %v1225_v60 = vadd.f32 1e-05, %v1223_v59 }
 0x353   : > { %v1218_v61 = vpop.xlane.xlu1 %1217 }
 0x354   : > { %4588 = vrsqrt.f32 %v1225_v60  ;;  %v1222_v62 = vmul.f32 0.03125, %v1218_v61 }
 0x356   : > { %v1224_v63 = vadd.f32 1e-05, %v1222_v62 }
 0x358   : > { %4590 = vrsqrt.f32 %v1224_v63 }
 0x361   : > { %v4589_v0 = vpop.eup %4588 }
 0x362   : > { %v1229_v8 = vmul.f32 %v4589_v0, %v1213_v50  ;;  %v3880_v50 = vld [vmem:[%s5470_s11] ss:$0 sm:$0xff] }
 0x364   : > { %v1237_v14 = vmul.f32 %v3874_v1, %v1229_v8 }
 0x365   : > { %v4591_v15 = vpop.eup %4590 }
 0x366   : > { %v1228_v16 = vmul.f32 %v4591_v15, %v1212_v54  ;;  %v1245_v17 = vadd.f32 %v3875_v9, %v1237_v14 }
 0x368   : > { %4214 = vmatprep.subr.mxu1 %v1245_v17  ;;  %v1236_v18 = vmul.f32 %v3874_v1, %v1228_v16  ;;  %v3910_v16 = vld [vmem:[%s5465_s7 + $0x1] ss:$0 sm:$0xff] }
 0x369   : > { %4215 = vmatpush3.msra.mxu1 %v1245_v17 }
 0x36a   : > { %v1244_v19 = vadd.f32 %v3875_v9, %v1236_v18 }
 0x36c   : > { %4216 = vmatprep.subr.mxu1 %v1244_v19  ;;  %v4494_v20 = vpack.i.bf16 %v1245_v17, %v1244_v19 }
 0x36d   : > { %4217 = vmatpush3.msra.mxu1 %v1244_v19 }
 0x36e   : > { %4495 = vrot.lane.b32.xlu1 %v4494_v20, %s5433_s10  ;;  %4219 = vmatmul.mubr.msk.f32.vlgmr.msra.gmra.mxu1 %vm926_vm0, %v4820_v11  ;;  %s5471_s10 = sld [smem:[#allocation14_spill]] }
 0x36f   : > { %4221 = vmatprep.subr.mxu1 %v1245_v17  ;;  %4225 = vmatprep.mubr.msk.f32.mxu1 %vm926_vm0, %v4823_v12 }
 0x370   : > { %4222 = vmatpush3.msra.mxu1 %v1245_v17 }
 0x371   : > { %4223 = vmatprep.subr.mxu1 %v1244_v19 }
 0x372   : > { %4224 = vmatpush3.msra.mxu1 %v1244_v19 }
 0x373   : > { %4226 = vmatmul.mubr.msk.f32.vlgmr.msra.gmra.mxu1 %vm926_vm0, %v4826_v13  ;;  %4228 = vmatprep.subr.bf16.mxu1 %v4624_v2 }
 0x374   : > { %4240 = vmatprep.mubr.msk.bf16.mxu1 %vm4626_vm5, %v4624_v2  ;;  %4229 = vmatpush3.bf16.msra.mxu1 %v4552_v21 }
 0x375   : > { %4230 = vmatprep.subr.bf16.mxu1 %v4624_v2 }
 0x378   : > { %4231 = vmatpush3.bf16.msra.mxu1 %v4553_v22 }
 0x379   : > { %4232 = vmatprep.subr.bf16.mxu1 %v4624_v2 }
 0x37c   : > { %4233 = vmatpush3.bf16.msra.mxu1 %v4554_v23 }
 0x37d   : > { %4234 = vmatprep.subr.bf16.mxu1 %v4624_v2 }
 0x380   : > { %4235 = vmatpush3.bf16.msra.mxu1 %v4555_v24 }
 0x381   : > { %4236 = vmatprep.subr.bf16.mxu1 %v4624_v2 }
 0x384   : > { %4237 = vmatpush3.bf16.msra.mxu1 %v4556_v25 }
 0x385   : > { %4238 = vmatprep.subr.bf16.mxu1 %v4624_v2 }
 0x388   : > { %4239 = vmatpush3.bf16.msra.mxu1 %v4557_v26 }
 0x389   : > { %4257 = vmatprep.subr.bf16.mxu1 %v4624_v2 }
 0x3e0   : > { %v4496_v32 = vpop.permute.xlu1 %4495 }
 0x3e1   : > { %v4498_v33 = vunpack.i.h.bf16 %v4496_v32  ;;  %v4497_v34 = vunpack.i.l.bf16 %v4496_v32 }
 0x42e   : > { %v4220_v27 = vpop.f32.mrf.mxu1 }
 0x42f   : > { %v1426_v39 = vsel %vm1105_vm6, %v4220_v27, %v4498_v33  ;;  %v1564_v27 = vld [vmem:[#allocation2] sm:$0x1] }
 0x430   : > { %v1325_v28 = vpop.f32.mrf.mxu1 }
 0x431   : > { %v1425_v40 = vsel %vm1105_vm6, %v1325_v28, %v4497_v34  ;;  %v4628_v28 = vmov 0  }
 0x432   : > { %4504 = vset.pattern.permute.xlu0 %v4628_v28  ;;  %4515 = vset.pattern.permute.xlu1 %v4628_v28 }
 0x433   : > { %v4227_v29 = vpop.f32.mrf.mxu1 }
 0x435   : > { %v1400_v30 = vpop.f32.mrf.mxu1 }
 0x436   : > { %v4499_v31 = vpack.i.bf16 %v4227_v29, %v1400_v30 }
 0x438   : > { %4500 = vrot.lane.b32.xlu1 %v4499_v31, %s5469_s8 }
 0x4aa   : > { %v4501_v35 = vpop.permute.xlu1 %4500 }
 0x4ab   : > { %v4503_v37 = vunpack.i.h.bf16 %v4501_v35  ;;  %v4502_v38 = vunpack.i.l.bf16 %v4501_v35 }
 0x4ad   : > { %v1428_v41 = vsel %vm1108_vm7, %v1426_v39, %v4503_v37  ;;  %v1427_v42 = vsel %vm1108_vm7, %v1425_v40, %v4502_v38 }
 0x4ae   : > { %v1429_v44 = vpack.c.bf16 %v1428_v41, %v1427_v42 }
 0x4b0   : > { %4241 = vmatmul.mubr.msk.bf16.vlgmr.msra.gmra.mxu1 %vm1154_vm8, %v1429_v44 }
 0x4b1   : > { %4258 = vmatpush3.bf16.msra.mxu1 %v4558_v43  ;;  %4269 = vmatprep.mubr.msk.bf16.mxu1 %vm4626_vm5, %v4624_v2 }
 0x4b2   : > { %4259 = vmatprep.subr.bf16.mxu1 %v4624_v2 }
 0x4b5   : > { %4260 = vmatpush3.bf16.msra.mxu1 %v4559_v45 }
 0x4b6   : > { %4261 = vmatprep.subr.bf16.mxu1 %v4624_v2 }
 0x4b9   : > { %4262 = vmatpush3.bf16.msra.mxu1 %v4560_v46 }
 0x4ba   : > { %4263 = vmatprep.subr.bf16.mxu1 %v4624_v2 }
 0x4bd   : > { %4264 = vmatpush3.bf16.msra.mxu1 %v4561_v47 }
 0x4be   : > { %4265 = vmatprep.subr.bf16.mxu1 %v4624_v2 }
 0x4c1   : > { %4266 = vmatpush3.bf16.msra.mxu1 %v4562_v48  ;;  %v3888_v48 = vld [vmem:[%s5471_s10] ss:$0 sm:$0xff] }
 0x4c2   : > { %4267 = vmatprep.subr.bf16.mxu1 %v4624_v2 }
 0x4c5   : > { %4268 = vmatpush3.bf16.msra.mxu1 %v4563_v49 }
 0x4c8   : > { %4270 = vmatmul.mubr.msk.bf16.vlgmr.msra.gmra.mxu1 %vm1154_vm8, %v4870_v36 }
 0x570   : > { %v1509_v51 = vpop.f32.mrf.mxu1 }
 0x571   : > { %v1510_v52 = vadd.f32 %v3880_v50, %v1509_v51 }
 0x572   : > { %v4242_v53 = vpop.f32.mrf.mxu1 }
 0x573   : > { %v1516_v54 = vmax.f32 %v1510_v52, 0.0  ;;  %v3889_v52 = vld [vmem:[%s5472_s29] ss:$0 sm:$0xff] }
 0x574   : > { %v1512_v55 = vpop.f32.mrf.mxu1 }
 0x575   : > { %v1513_v56 = vadd.f32 %v3880_v50, %v1512_v55  ;;  %v1520_v57 = vsel %vm1105_vm6, %v1516_v54, 0.0 }
 0x576   : > { %1521 = vadd.xlane.f32.xlu1 %v1520_v57  ;;  %v4243_v58 = vpop.f32.mrf.mxu1 }
 0x577   : > { %v1517_v59 = vmax.f32 %v1513_v56, 0.0  ;;  %v1562_v58 = vld [vmem:[%s5473_s2] sm:$0x1]  ;;  %s5478_s2 = sld [smem:[#allocation18_spill]] }
 0x579   : > { %v1523_v60 = vsel %vm1105_vm6, %v1517_v59, 0.0 }
 0x57a   : > { %1524 = vadd.xlane.f32.xlu0 %v1523_v60 }
 0x588   : > { %v1798_v61 = vpop.f32.mrf.mxu1 }
 0x589   : > { %v1799_v21 = vadd.f32 %v3910_v16, %v1798_v61 }
 0x58a   : > { %v4271_v36 = vpop.f32.mrf.mxu1 }
 0x58b   : > { %v1805_v24 = vmax.f32 %v1799_v21, 0.0 }
 0x58c   : > { %v1801_v62 = vpop.f32.mrf.mxu1 }
 0x58d   : > { %v1802_v17 = vadd.f32 %v3910_v16, %v1801_v62  ;;  %v1811_v26 = vsel %vm1105_vm6, %v1805_v24, 0.0 }
 0x58e   : > { %v4272_v63 = vpop.f32.mrf.mxu1 }
 0x58f   : > { %v1806_v22 = vmax.f32 %v1802_v17, 0.0 }
 0x591   : > { %v1814_v25 = vsel %vm1105_vm6, %v1806_v22, 0.0 }
 0x5ff   : > { %v1522_v0 = vpop.xlane.xlu1 %1521 }
 0x600   : > { %v1526_v1 = vmul.f32 0.03125, %v1522_v0 }
 0x602   : > { %v1528_v8 = vsub.f32 %v1516_v54, %v1526_v1 }
 0x603   : > { %v1525_v9 = vpop.xlane.xlu0 %1524 }
 0x604   : > { %v1527_v14 = vmul.f32 0.03125, %v1525_v9  ;;  %v1530_v15 = vmul.f32 %v1528_v8, %v1528_v8 }
 0x606   : > { %v1529_v18 = vsub.f32 %v1517_v59, %v1527_v14  ;;  %v1532_v19 = vsel %vm1105_vm6, %v1530_v15, 0.0  ;;  %v4629_v59 = vmov 1.0   ;;  %v3921_v14 = vld [vmem:[%s5467_s1 + $0x1] ss:$0 sm:$0xff] }
 0x607   : > { %1533 = vadd.xlane.f32.xlu0 %v1532_v19 }
 0x608   : > { %v1531_v20 = vmul.f32 %v1529_v18, %v1529_v18 }
 0x60a   : > { %v1535_v23 = vsel %vm1105_vm6, %v1531_v20, 0.0 }
 0x60b   : > { %1536 = vadd.xlane.f32.xlu0 %v1535_v23 }
 0x60f   : > { %1815 = vadd.xlane.f32.xlu0 %v1814_v25  ;;  %v891_v25 = vld [vmem:[%s864_s3] sm:$0x1]  ;;  %s869_s3 = scalar_lea.vmem %s5476_s24, %s4789_s12 }
 0x613   : > { %1812 = vadd.xlane.f32.xlu0 %v1811_v26 }
 0x629   : > { %1567 = vperm.xlu0 %4504, %v1564_v27  }
 0x690   : > { %v1534_v29 = vpop.xlane.xlu0 %1533 }
 0x691   : > { %v1538_v30 = vmul.f32 0.03125, %v1534_v29 }
 0x693   : > { %v1540_v31 = vadd.f32 1e-05, %v1538_v30 }
 0x694   : > { %v1537_v32 = vpop.xlane.xlu0 %1536 }
 0x695   : > { %4592 = vrsqrt.f32 %v1540_v31  ;;  %v1539_v33 = vmul.f32 0.03125, %v1537_v32 }
 0x697   : > { %v1541_v34 = vadd.f32 1e-05, %v1539_v33 }
 0x698   : > { %v1816_v35 = vpop.xlane.xlu0 %1815 }
 0x699   : > { %4594 = vrsqrt.f32 %v1541_v34  ;;  %v1818_v37 = vmul.f32 0.03125, %v1816_v35 }
 0x69b   : > { %v1820_v38 = vsub.f32 %v1806_v22, %v1818_v37  ;;  %v4997_v22 = vsub.s32 0, %v4784_v3 }
 0x69c   : > { %v1813_v39 = vpop.xlane.xlu0 %1812 }
 0x69d   : > { %v1817_v40 = vmul.f32 0.03125, %v1813_v39  ;;  %v1822_v41 = vmul.f32 %v1820_v38, %v1820_v38 }
 0x69f   : > { %v1819_v42 = vsub.f32 %v1805_v24, %v1817_v40  ;;  %v1826_v43 = vsel %vm1105_vm6, %v1822_v41, 0.0 }
 0x6a0   : > { %1827 = vadd.xlane.f32.xlu1 %v1826_v43 }
 0x6a1   : > { %v1821_v44 = vmul.f32 %v1819_v42, %v1819_v42 }
 0x6a2   : > { %v4593_v45 = vpop.eup %4592 }
 0x6a3   : > { %v1823_v46 = vsel %vm1105_vm6, %v1821_v44, 0.0  ;;  %v1544_v47 = vmul.f32 %v4593_v45, %v1528_v8  ;;  %v3920_v8 = vld [vmem:[%s5466_s5 + $0x1] ss:$0 sm:$0xff]  ;;  %v4564_v45 = vld [vmem:[%s5468_s4 + $0x58] sm:$0xff]  }
 0x6a4   : > { %1824 = vadd.xlane.f32.xlu1 %v1823_v46  ;;  %v1568_v23 = vpop.permute.xlu0 %1567  ;;  %v4565_v46 = vld [vmem:[%s5468_s4 + $0x50] sm:$0xff]  }
 0x6a5   : > { %v1552_v51 = vmul.f32 %v3888_v48, %v1544_v47  ;;  %v1573_v24 = vrot.slane %v1568_v23, %v4997_v22  ;;  %v4566_v47 = vld [vmem:[%s5468_s4 + $0x48] sm:$0xff]  }
 0x6a6   : > { %v4595_v49 = vpop.eup %4594 }
 0x6a7   : > { %v1545_v50 = vmul.f32 %v4595_v49, %v1529_v18  ;;  %v1560_v54 = vadd.f32 %v3889_v52, %v1552_v51  ;;  %v4568_v49 = vld [vmem:[%s5468_s4 + $0x38] sm:$0xff]   ;;  %v4569_v51 = vld [vmem:[%s5468_s4 + $0x30] sm:$0xff]  }
 0x6a9   : > { %v1553_v53 = vmul.f32 %v3888_v48, %v1545_v50  ;;  %v4567_v48 = vld [vmem:[%s5468_s4 + $0x40] sm:$0xff]  }
 0x6ab   : > { %v1561_v55 = vadd.f32 %v3889_v52, %v1553_v53 }
 0x6ad   : > { %v1563_v56 = vpack.c.bf16 %v1561_v55, %v1560_v54 }
 0x6af   : > { %v1578_v57 = vsel %vm1105_vm6, %v1563_v56, 0 }
 0x6b0   : > { %4245 = vmatpush3.bf16.xpose.msra.mxu0 %v1578_v57 }
 0x6b1   : > { %4250 = vmatprep.subr.mxu0 %v4624_v2 }
 0x6b7   : > { %4247 = vmatmul.mubr.msk.bf16.vlgmr.msra.gmra.mxu0 %vm1105_vm6, %v1562_v58 }
 0x6b8   : > { %4254 = vmatprep.mubr.msk.f32.mxu0 %vm4626_vm5, %v4624_v2  ;;  %4251 = vmatpush3.msk.msra.mxu0 %vm1628_vm9, %v4629_v59 }
 0x6b9   : > { %4252 = vmatprep.subr.mxu0 %v4624_v2 }
 0x6ba   : > { %4253 = vmatpush3.msk.msra.mxu0 %vm1627_vm10, %v4629_v59 }
 0x729   : > { %v1828_v60 = vpop.xlane.xlu1 %1827 }
 0x72a   : > { %v1830_v61 = vmul.f32 0.03125, %v1828_v60 }
 0x72c   : > { %v1832_v36 = vadd.f32 1e-05, %v1830_v61 }
 0x72d   : > { %v1825_v62 = vpop.xlane.xlu1 %1824 }
 0x72e   : > { %4596 = vrsqrt.f32 %v1832_v36  ;;  %v1829_v63 = vmul.f32 0.03125, %v1825_v62 }
 0x730   : > { %v1831_v0 = vadd.f32 1e-05, %v1829_v63 }
 0x732   : > { %4598 = vrsqrt.f32 %v1831_v0 }
 0x73b   : > { %v4597_v1 = vpop.eup %4596 }
 0x73c   : > { %v1836_v9 = vmul.f32 %v4597_v1, %v1820_v38 }
 0x73e   : > { %v1844_v15 = vmul.f32 %v3920_v8, %v1836_v9 }
 0x73f   : > { %v4599_v16 = vpop.eup %4598 }
 0x740   : > { %v1835_v17 = vmul.f32 %v4599_v16, %v1819_v42  ;;  %v1852_v18 = vadd.f32 %v3921_v14, %v1844_v15 }
 0x742   : > { %v1843_v19 = vmul.f32 %v3920_v8, %v1835_v17  ;;  %4273 = vmatprep.subr.mxu0 %v1852_v18 }
 0x744   : > { %v1851_v20 = vadd.f32 %v3921_v14, %v1843_v19  ;;  %v3939_v14 = vld [vmem:[%s5470_s11 + $0x1] ss:$0 sm:$0xff] }
 0x746   : > { %v4505_v21 = vpack.i.bf16 %v1852_v18, %v1851_v20 }
 0x748   : > { %4506 = vrot.lane.b32.xlu1 %v4505_v21, %s5474_s28 }
 0x777   : > { %v1614_v26 = vpop.f32.mrf.mxu0 }
 0x778   : > { %v1615_v27 = vadd.f32 %v1614_v26, %v1573_v24 }
 0x779   : > { %v4248_v28 = vpop.f32.mrf.mxu0 }
 0x77a   : > { %v1620_v29 = vmul.f32 %v1615_v27, %v891_v25 }
 0x77b   : > { %v1617_v30 = vpop.f32.mrf.mxu0 }
 0x77c   : > { %v1621_v31 = vmul.f32 1.442695, %v1620_v29 }
 0x77d   : > { %v4249_v32 = vpop.f32.mrf.mxu0 }
 0x77e   : > { %4600 = vpow2.f32 %v1621_v31 }
 0x78b   : > { %v4601_v33 = vpop.eup %4600 }
 0x78c   : > { %v3891_v34 = vadd.f32 -1.0, %v4601_v33 }
 0x78e   : > { %v4464_v35 = vcvt.f32.s32 %v3891_v34  ;;  %v4462_v38 = vand.u32 2147483647, %v3891_v34  ;;  %v4467_v40 = vand.u32 2147483648, %v3891_v34 }
 0x790   : > { %v4465_v37 = vcvt.s32.f32 %v4464_v35  ;;  %vm4463_vm11 = vcmp.lt.f32.partialorder %v4462_v38, 8388608.0 }
 0x792   : > { %v4466_v39 = vand.u32 2147483647, %v4465_v37 }
 0x794   : > { %v4468_v41 = vor.u32 %v4467_v40, %v4466_v39 }
 0x796   : > { %v4469_v42 = vsel %vm4463_vm11, %v4468_v41, %v3891_v34 }
 0x797   : > { %v1625_v43 = vmax.f32 %v4469_v42, 0.0 }
 0x799   : > { %v5004_v44 = vmul.f32 %v1625_v43, %v891_v25 }
 0x79b   : > { %4255 = vmatmul.mubr.msk.f32.vlgmr.msra.gmra.mxu0 %vm926_vm0, %v5004_v44 }
 0x79c   : > { %4274 = vmatpush3.msra.mxu0 %v1852_v18  ;;  %4277 = vmatprep.mubr.msk.f32.mxu0 %vm926_vm0, %v4817_v10 }
 0x79d   : > { %4275 = vmatprep.subr.mxu0 %v1851_v20 }
 0x79e   : > { %4276 = vmatpush3.msra.mxu0 %v1851_v20 }
 0x79f   : > { %4280 = vmatprep.subr.mxu0 %v1852_v18  ;;  %4278 = vmatmul.mubr.msk.f32.vlgmr.msra.gmra.mxu0 %vm926_vm0, %v4820_v11 }
 0x7a0   : > { %4281 = vmatpush3.msra.mxu0 %v1852_v18  ;;  %4284 = vmatprep.mubr.msk.f32.mxu0 %vm926_vm0, %v4823_v12 }
 0x7a1   : > { %4282 = vmatprep.subr.mxu0 %v1851_v20 }
 0x7a2   : > { %4283 = vmatpush3.msra.mxu0 %v1851_v20 }
 0x7a3   : > { %4285 = vmatmul.mubr.msk.f32.vlgmr.msra.gmra.mxu0 %vm926_vm0, %v4826_v13  ;;  %4287 = vmatprep.subr.bf16.mxu0 %v4624_v2 }
 0x7a4   : > { %4299 = vmatprep.mubr.msk.bf16.mxu0 %vm4626_vm5, %v4624_v2  ;;  %4288 = vmatpush3.bf16.msra.mxu0 %v4564_v45  ;;  %v3949_v45 = vld [vmem:[%s5471_s10 + $0x1] ss:$0 sm:$0xff] }
 0x7a5   : > { %4289 = vmatprep.subr.bf16.mxu0 %v4624_v2 }
 0x7a8   : > { %4290 = vmatpush3.bf16.msra.mxu0 %v4565_v46 }
 0x7a9   : > { %4291 = vmatprep.subr.bf16.mxu0 %v4624_v2 }
 0x7ac   : > { %4292 = vmatpush3.bf16.msra.mxu0 %v4566_v47  ;;  %v3950_v47 = vld [vmem:[%s5472_s29 + $0x1] ss:$0 sm:$0xff] }
 0x7ad   : > { %4293 = vmatprep.subr.bf16.mxu0 %v4624_v2 }
 0x7b0   : > { %4294 = vmatpush3.bf16.msra.mxu0 %v4567_v48 }
 0x7b1   : > { %4295 = vmatprep.subr.bf16.mxu0 %v4624_v2 }
 0x7b4   : > { %4296 = vmatpush3.bf16.msra.mxu0 %v4568_v49 }
 0x7b5   : > { %4297 = vmatprep.subr.bf16.mxu0 %v4624_v2 }
 0x7b8   : > { %4298 = vmatpush3.bf16.msra.mxu0 %v4569_v51  ;;  %v3951_v51 = vld [vmem:[%s5410_s13] ss:$0 sm:$0xff] }
 0x7b9   : > { %4324 = vmatprep.subr.bf16.mxu0 %v4624_v2 }
 0x7ba   : > { %v4507_v58 = vpop.permute.xlu1 %4506 }
 0x7bb   : > { %v4509_v59 = vunpack.i.h.bf16 %v4507_v58  ;;  %v4508_v60 = vunpack.i.l.bf16 %v4507_v58 }
 0x85b   : > { %v5039_v50 = vpop.f32.mrf.mxu0 }
 0x85d   : > { %v4256_v52 = vpop.f32.mrf.mxu0 }
 0x85f   : > { %v4279_v53 = vpop.f32.mrf.mxu0 }
 0x860   : > { %v2035_v63 = vsel %vm1105_vm6, %v4279_v53, %v4509_v59 }
 0x861   : > { %v1934_v54 = vpop.f32.mrf.mxu0 }
 0x862   : > { %v2034_v0 = vsel %vm1105_vm6, %v1934_v54, %v4508_v60  ;;  %v3952_v60 = vld [vmem:[%s5411_s14] ss:$0 sm:$0xff] }
 0x863   : > { %v4286_v55 = vpop.f32.mrf.mxu0 }
 0x865   : > { %v2009_v56 = vpop.f32.mrf.mxu0 }
 0x866   : > { %v4510_v57 = vpack.i.bf16 %v4286_v55, %v2009_v56 }
 0x868   : > { %4511 = vrot.lane.b32.xlu1 %v4510_v57, %s5469_s8 }
 0x8da   : > { %v4512_v61 = vpop.permute.xlu1 %4511 }
 0x8db   : > { %v4514_v36 = vunpack.i.h.bf16 %v4512_v61  ;;  %v4513_v62 = vunpack.i.l.bf16 %v4512_v61  ;;  %v5078_v61 = vld [vmem:[%s869_s3] sm:$0xff] }
 0x8dd   : > { %v2037_v1 = vsel %vm1108_vm7, %v2035_v63, %v4514_v36  ;;  %v2036_v8 = vsel %vm1108_vm7, %v2034_v0, %v4513_v62  ;;  %v2232_v63 = vld [vmem:[%s5414_s17 + $0x8] sm:$0xff] }
 0x8de   : > { %v2038_v9 = vpack.c.bf16 %v2037_v1, %v2036_v8  ;;  %4303 = vmatprep.subr.mxu1 %v2232_v63  ;;  %v5088_v1 = vld [vmem:[%s869_s3 + $0x8] sm:$0xff]  ;;  %s5480_s3 = sld [smem:[#allocation20_spill]] }
 0x8df   : > { %4304 = vmatpush3.msra.mxu1 %v2232_v63 }
 0x8e0   : > { %4300 = vmatmul.mubr.msk.bf16.vlgmr.msra.gmra.mxu0 %vm1154_vm8, %v2038_v9 }
 0x8e1   : > { %4336 = vmatprep.mubr.msk.bf16.mxu0 %vm4626_vm5, %v4624_v2 }
 0x9a0   : > { %v2118_v15 = vpop.f32.mrf.mxu0 }
 0x9a1   : > { %v2119_v16 = vadd.f32 %v3939_v14, %v2118_v15 }
 0x9a2   : > { %v4301_v17 = vpop.f32.mrf.mxu0 }
 0x9a3   : > { %v2125_v18 = vmax.f32 %v2119_v16, 0.0  ;;  %v3953_v16 = vld [vmem:[%s5412_s15] ss:$0 sm:$0xff] }
 0x9a4   : > { %v2121_v19 = vpop.f32.mrf.mxu0  ;;  %v3954_v17 = vld [vmem:[%s5413_s16] ss:$0 sm:$0xff] }
 0x9a5   : > { %v2122_v20 = vadd.f32 %v3939_v14, %v2121_v19  ;;  %v2131_v21 = vsel %vm1105_vm6, %v2125_v18, 0.0  ;;  %v2231_v14 = vld [vmem:[%s5414_s17] sm:$0xff] }
 0x9a6   : > { %2132 = vadd.xlane.f32.xlu1 %v2131_v21  ;;  %v4302_v23 = vpop.f32.mrf.mxu0  ;;  %4305 = vmatprep.subr.mxu1 %v2231_v14 }
 0x9a7   : > { %v2126_v24 = vmax.f32 %v2122_v20, 0.0  ;;  %4306 = vmatpush3.msra.mxu1 %v2231_v14 }
 0x9a9   : > { %v2134_v25 = vsel %vm1105_vm6, %v2126_v24, 0.0 }
 0x9aa   : > { %2135 = vadd.xlane.f32.xlu0 %v2134_v25 }
 0xa2f   : > { %v2133_v26 = vpop.xlane.xlu1 %2132 }
 0xa30   : > { %v2137_v27 = vmul.f32 0.03125, %v2133_v26 }
 0xa32   : > { %v2139_v28 = vsub.f32 %v2125_v18, %v2137_v27  ;;  %v4615_v27 = vld [vmem:[%s4804_s0] sm:$0xff] }
 0xa33   : > { %v2136_v29 = vpop.xlane.xlu0 %2135 }
 0xa34   : > { %v2138_v30 = vmul.f32 0.03125, %v2136_v29  ;;  %v2141_v31 = vmul.f32 %v2139_v28, %v2139_v28 }
 0xa36   : > { %v2140_v32 = vsub.f32 %v2126_v24, %v2138_v30  ;;  %v2143_v33 = vsel %vm1105_vm6, %v2141_v31, 0.0  ;;  %v4614_v24 = vld [vmem:[%s4804_s0 + $0x8] sm:$0xff]  ;;  %v4571_v31 = vld [vmem:[%s5464_s6 + $0x80] sm:$0xff]  }
 0xa37   : > { %2144 = vadd.xlane.f32.xlu0 %v2143_v33  ;;  %v4570_v30 = vld [vmem:[%s5464_s6 + $0x88] sm:$0xff]   ;;  %v4573_v33 = vld [vmem:[%s5464_s6 + $0x70] sm:$0xff]  }
 0xa38   : > { %v2142_v34 = vmul.f32 %v2140_v32, %v2140_v32  ;;  %4325 = vmatpush3.bf16.msra.mxu0 %v4570_v30 }
 0xa39   : > { %4326 = vmatprep.subr.bf16.mxu0 %v4624_v2 }
 0xa3a   : > { %v2146_v35 = vsel %vm1105_vm6, %v2142_v34, 0.0  ;;  %v4574_v34 = vld [vmem:[%s5464_s6 + $0x68] sm:$0xff]  }
 0xa3b   : > { %2147 = vadd.xlane.f32.xlu1 %v2146_v35  ;;  %v4575_v35 = vld [vmem:[%s5464_s6 + $0x60] sm:$0xff]  }
 0xa3c   : > { %4327 = vmatpush3.bf16.msra.mxu0 %v4571_v31 }
 0xa3d   : > { %4328 = vmatprep.subr.bf16.mxu0 %v4624_v2 }
 0xac0   : > { %v2145_v37 = vpop.xlane.xlu0 %2144 }
 0xac1   : > { %v2149_v38 = vmul.f32 0.03125, %v2145_v37 }
 0xac3   : > { %v2151_v39 = vadd.f32 1e-05, %v2149_v38 }
 0xac4   : > { %v2148_v40 = vpop.xlane.xlu1 %2147 }
 0xac5   : > { %4602 = vrsqrt.f32 %v2151_v39  ;;  %v2150_v41 = vmul.f32 0.03125, %v2148_v40 }
 0xac7   : > { %v2152_v42 = vadd.f32 1e-05, %v2150_v41 }
 0xac9   : > { %4604 = vrsqrt.f32 %v2152_v42 }
 0xad2   : > { %v4603_v43 = vpop.eup %4602 }
 0xad3   : > { %v2155_v46 = vmul.f32 %v4603_v43, %v2139_v28 }
 0xad5   : > { %v2163_v48 = vmul.f32 %v3949_v45, %v2155_v46 }
 0xad6   : > { %v4605_v49 = vpop.eup %4604 }
 0xad7   : > { %v2171_v52 = vadd.f32 %v3950_v47, %v2163_v48  ;;  %v2156_v53 = vmul.f32 %v4605_v49, %v2140_v32  ;;  %v4572_v32 = vld [vmem:[%s5464_s6 + $0x78] sm:$0xff]  }
 0xad8   : > { %4329 = vmatpush3.bf16.msra.mxu0 %v4572_v32 }
 0xad9   : > { %v2180_v54 = vmul.f32 %v3951_v51, %v2171_v52  ;;  %v2164_v55 = vmul.f32 %v3949_v45, %v2156_v53  ;;  %4330 = vmatprep.subr.bf16.mxu0 %v4624_v2 }
 0xadb   : > { %v2182_v56 = vsel %vm1105_vm6, %v2180_v54, 0.0  ;;  %v2172_v57 = vadd.f32 %v3950_v47, %v2164_v55  ;;  %v3974_v55 = vld [vmem:[%s5465_s7 + $0x2] ss:$0 sm:$0xff] }
 0xadc   : > { %2183 = vadd.xlane.f32.xlu0 %v2182_v56  ;;  %4331 = vmatpush3.bf16.msra.mxu0 %v4573_v33  ;;  %v3984_v33 = vld [vmem:[%s5466_s5 + $0x2] ss:$0 sm:$0xff] }
 0xadd   : > { %v2181_v58 = vmul.f32 %v3951_v51, %v2172_v57  ;;  %4332 = vmatprep.subr.bf16.mxu0 %v4624_v2 }
 0xadf   : > { %v2185_v59 = vsel %vm1105_vm6, %v2181_v58, 0.0 }
 0xae0   : > { %2186 = vadd.xlane.f32.xlu1 %v2185_v59  ;;  %4333 = vmatpush3.bf16.msra.mxu0 %v4574_v34 }
 0xae1   : > { %4334 = vmatprep.subr.bf16.mxu0 %v4624_v2 }
 0xae4   : > { %4335 = vmatpush3.bf16.msra.mxu0 %v4575_v35  ;;  %v3985_v35 = vld [vmem:[%s5467_s1 + $0x2] ss:$0 sm:$0xff] }
 0xb65   : > { %v2184_v36 = vpop.xlane.xlu0 %2183 }
 0xb66   : > { %v2195_v62 = vadd.f32 %v3952_v60, %v2184_v36 }
 0xb68   : > { %v2197_v0 = vmul.f32 %v2195_v62, %v5078_v61 }
 0xb69   : > { %v2187_v8 = vpop.xlane.xlu1 %2186 }
 0xb6a   : > { %3662 = vst.msk [vmem:[%s879_s21] sm:$0xff] %vm3661_vm12, %v2197_v0  ;;  %v2196_v9 = vadd.f32 %v3952_v60, %v2187_v8  ;;  %2202 = vperm.xlu0 %4504, %v2197_v0  }
 0xb6c   : > { %v2198_v15 = vmul.f32 %v2196_v9, %v5088_v1 }
 0xb6e   : > { %3663 = vst.msk [vmem:[%s879_s21 + $0x8] sm:$0xff] %vm3661_vm12, %v2198_v15  ;;  %2207 = vperm.xlu1 %4515, %v2198_v15   ;;  %s5477_s21 = sld [smem:[#allocation17_spill]] }
 0xbe5   : > { %v2203_v18 = vpop.permute.xlu0 %2202 }
 0xbe6   : > { %vm2216_vm13 = vcmp.gt.f32.partialorder %v2203_v18, %v3953_v16  ;;  %vm2225_vm14 = vcmp.le.f32.partialorder %v2203_v18, %v3954_v17 }
 0xbe7   : > { %vm2227_vm15 = vmand %vm2216_vm13, %vm2225_vm14 }
 0xbe8   : > { %v2229_v19 = vsel %vm2227_vm15, 1.0, %v4624_v2 }
 0xbe9   : > { %v2208_v20 = vpop.permute.xlu1 %2207  ;;  %4307 = vmatprep.mubr.msk.f32.mxu1 %vm926_vm0, %v2229_v19 }
 0xbea   : > { %vm2217_vm1 = vcmp.gt.f32.partialorder %v2208_v20, %v3953_v16  ;;  %vm2226_vm2 = vcmp.le.f32.partialorder %v2208_v20, %v3954_v17 }
 0xbeb   : > { %vm2228_vm3 = vmand %vm2217_vm1, %vm2226_vm2 }
 0xbec   : > { %v2230_v21 = vsel %vm2228_vm3, 1.0, %v4624_v2 }
 0xbed   : > { %4308 = vmatmul.mubr.msk.f32.vlgmr.msra.gmra.mxu1 %vm926_vm0, %v2230_v21 }
 0xbee   : > { %4314 = vmatprep.mubr.msk.f32.mxu1 %vm926_vm0, %v4817_v10 }
 0xcad   : > { %v4309_v23 = vpop.f32.mrf.mxu1 }
 0xcae   : > { %v5109_v25 = vadd.f32 %v4614_v24, %v4309_v23 }
 0xcaf   : > { %v2305_v26 = vpop.f32.mrf.mxu1 }
 0xcb0   : > { %v5112_v28 = vadd.f32 %v4615_v27, %v2305_v26  ;;  %4310 = vmatprep.subr.mxu1 %v5109_v25 }
 0xcb1   : > { %4311 = vmatpush3.msra.mxu1 %v5109_v25 }
 0xcb2   : > { %4312 = vmatprep.subr.mxu1 %v5112_v28  ;;  %v4516_v29 = vpack.i.bf16 %v5109_v25, %v5112_v28 }
 0xcb3   : > { %4313 = vmatpush3.msra.mxu1 %v5112_v28 }
 0xcb4   : > { %4517 = vrot.lane.b32.xlu1 %v4516_v29, %s5474_s28  ;;  %4315 = vmatmul.mubr.msk.f32.vlgmr.msra.gmra.mxu1 %vm926_vm0, %v4820_v11 }
 0xcb5   : > { %4317 = vmatprep.subr.mxu1 %v5109_v25  ;;  %4321 = vmatprep.mubr.msk.f32.mxu1 %vm926_vm0, %v4823_v12 }
 0xcb6   : > { %4318 = vmatpush3.msra.mxu1 %v5109_v25 }
 0xcb7   : > { %4319 = vmatprep.subr.mxu1 %v5112_v28 }
 0xcb8   : > { %4320 = vmatpush3.msra.mxu1 %v5112_v28 }
 0xcb9   : > { %4322 = vmatmul.mubr.msk.f32.vlgmr.msra.gmra.mxu1 %vm926_vm0, %v4826_v13 }
 0xcba   : > { %4344 = vmatprep.mubr.msk.f32.mxu1 %vm926_vm0, %v4817_v10 }
 0xd26   : > { %v4518_v42 = vpop.permute.xlu1 %4517 }
 0xd27   : > { %v4520_v43 = vunpack.i.h.bf16 %v4518_v42  ;;  %v4519_v45 = vunpack.i.l.bf16 %v4518_v42 }
 0xd74   : > { %v4316_v37 = vpop.f32.mrf.mxu1 }
 0xd75   : > { %v2498_v49 = vsel %vm1105_vm6, %v4316_v37, %v4520_v43 }
 0xd76   : > { %v2397_v38 = vpop.f32.mrf.mxu1 }
 0xd77   : > { %v2497_v51 = vsel %vm1105_vm6, %v2397_v38, %v4519_v45  ;;  %v4576_v45 = vld [vmem:[%s5468_s4 + $0x88] sm:$0xff]  }
 0xd79   : > { %v4323_v39 = vpop.f32.mrf.mxu1 }
 0xd7b   : > { %v2472_v40 = vpop.f32.mrf.mxu1 }
 0xd7c   : > { %v4521_v41 = vpack.i.bf16 %v4323_v39, %v2472_v40 }
 0xd7e   : > { %4522 = vrot.lane.b32.xlu1 %v4521_v41, %s5469_s8 }
 0xdf0   : > { %v4523_v46 = vpop.permute.xlu1 %4522 }
 0xdf1   : > { %v4525_v47 = vunpack.i.h.bf16 %v4523_v46  ;;  %v4524_v48 = vunpack.i.l.bf16 %v4523_v46  ;;  %v4577_v46 = vld [vmem:[%s5468_s4 + $0x80] sm:$0xff]  }
 0xdf3   : > { %v2500_v52 = vsel %vm1108_vm7, %v2498_v49, %v4525_v47  ;;  %v2499_v53 = vsel %vm1108_vm7, %v2497_v51, %v4524_v48  ;;  %v4578_v47 = vld [vmem:[%s5468_s4 + $0x78] sm:$0xff]   ;;  %v4579_v48 = vld [vmem:[%s5468_s4 + $0x70] sm:$0xff]   ;;  %v4580_v49 = vld [vmem:[%s5468_s4 + $0x68] sm:$0xff]  }
 0xdf4   : > { %v2501_v54 = vpack.c.bf16 %v2500_v52, %v2499_v53  ;;  %v4581_v51 = vld [vmem:[%s5468_s4 + $0x60] sm:$0xff]  }
 0xdf6   : > { %4337 = vmatmul.mubr.msk.bf16.vlgmr.msra.gmra.mxu0 %vm1154_vm8, %v2501_v54 }
 0xeb6   : > { %v2581_v56 = vpop.f32.mrf.mxu0 }
 0xeb7   : > { %v2582_v57 = vadd.f32 %v3974_v55, %v2581_v56 }
 0xeb8   : > { %v4338_v58 = vpop.f32.mrf.mxu0 }
 0xeb9   : > { %v2588_v59 = vmax.f32 %v2582_v57, 0.0 }
 0xeba   : > { %v2584_v60 = vpop.f32.mrf.mxu0 }
 0xebb   : > { %v2585_v36 = vadd.f32 %v3974_v55, %v2584_v60  ;;  %v2594_v62 = vsel %vm1105_vm6, %v2588_v59, 0.0 }
 0xebc   : > { %2595 = vadd.xlane.f32.xlu1 %v2594_v62  ;;  %v4339_v63 = vpop.f32.mrf.mxu0 }
 0xebd   : > { %v2589_v0 = vmax.f32 %v2585_v36, 0.0 }
 0xebf   : > { %v2597_v8 = vsel %vm1105_vm6, %v2589_v0, 0.0 }
 0xec0   : > { %2598 = vadd.xlane.f32.xlu0 %v2597_v8 }
 0xf45   : > { %v2596_v9 = vpop.xlane.xlu1 %2595 }
 0xf46   : > { %v2600_v14 = vmul.f32 0.03125, %v2596_v9 }
 0xf48   : > { %v2602_v17 = vsub.f32 %v2588_v59, %v2600_v14 }
 0xf49   : > { %v2599_v15 = vpop.xlane.xlu0 %2598 }
 0xf4a   : > { %v2601_v16 = vmul.f32 0.03125, %v2599_v15  ;;  %v2604_v21 = vmul.f32 %v2602_v17, %v2602_v17  ;;  %v4003_v15 = vld [vmem:[%s5470_s11 + $0x2] ss:$0 sm:$0xff] }
 0xf4c   : > { %v2603_v18 = vsub.f32 %v2589_v0, %v2601_v16  ;;  %v2606_v23 = vsel %vm1105_vm6, %v2604_v21, 0.0 }
 0xf4e   : > { %v2605_v19 = vmul.f32 %v2603_v18, %v2603_v18 }
 0xf50   : > { %v2609_v20 = vsel %vm1105_vm6, %v2605_v19, 0.0 }
 0xf51   : > { %2610 = vadd.xlane.f32.xlu0 %v2609_v20 }
 0xf55   : > { %2607 = vadd.xlane.f32.xlu0 %v2606_v23 }
 0xfda   : > { %v2611_v24 = vpop.xlane.xlu0 %2610 }
 0xfdb   : > { %v2613_v26 = vmul.f32 0.03125, %v2611_v24 }
 0xfdd   : > { %v2615_v27 = vadd.f32 1e-05, %v2613_v26 }
 0xfde   : > { %v2608_v29 = vpop.xlane.xlu0 %2607 }
 0xfdf   : > { %4606 = vrsqrt.f32 %v2615_v27  ;;  %v2612_v30 = vmul.f32 0.03125, %v2608_v29 }
 0xfe1   : > { %v2614_v31 = vadd.f32 1e-05, %v2612_v30 }
 0xfe3   : > { %4608 = vrsqrt.f32 %v2614_v31 }
 0xfec   : > { %v4607_v32 = vpop.eup %4606 }
 0xfed   : > { %v2619_v34 = vmul.f32 %v4607_v32, %v2603_v18 }
 0xfef   : > { %v2627_v37 = vmul.f32 %v3984_v33, %v2619_v34 }
 0xff0   : > { %v4609_v38 = vpop.eup %4608 }
 0xff1   : > { %v2618_v39 = vmul.f32 %v4609_v38, %v2602_v17  ;;  %v2635_v40 = vadd.f32 %v3985_v35, %v2627_v37 }
 0xff3   : > { %4340 = vmatprep.subr.mxu1 %v2635_v40  ;;  %v2626_v41 = vmul.f32 %v3984_v33, %v2618_v39 }
 0xff4   : > { %4341 = vmatpush3.msra.mxu1 %v2635_v40 }
 0xff5   : > { %v2634_v42 = vadd.f32 %v3985_v35, %v2626_v41 }
 0xff7   : > { %4342 = vmatprep.subr.mxu1 %v2634_v42  ;;  %v4526_v43 = vpack.i.bf16 %v2635_v40, %v2634_v42 }
 0xff8   : > { %4343 = vmatpush3.msra.mxu1 %v2634_v42 }
 0xff9   : > { %4527 = vrot.lane.b32.xlu0 %v4526_v43, %s5474_s28  ;;  %4345 = vmatmul.mubr.msk.f32.vlgmr.msra.gmra.mxu1 %vm926_vm0, %v4820_v11 }
 0xffa   : > { %4347 = vmatprep.subr.mxu1 %v2635_v40  ;;  %4351 = vmatprep.mubr.msk.f32.mxu1 %vm926_vm0, %v4823_v12 }
 0xffb   : > { %4348 = vmatpush3.msra.mxu1 %v2635_v40 }
 0xffc   : > { %4349 = vmatprep.subr.mxu1 %v2634_v42 }
 0xffd   : > { %4350 = vmatpush3.msra.mxu1 %v2634_v42 }
 0xffe   : > { %4352 = vmatmul.mubr.msk.f32.vlgmr.msra.gmra.mxu1 %vm926_vm0, %v4826_v13  ;;  %4354 = vmatprep.subr.bf16.mxu1 %v4624_v2 }
 0xfff   : > { %4366 = vmatprep.mubr.msk.bf16.mxu1 %vm4626_vm5, %v4624_v2  ;;  %4355 = vmatpush3.bf16.msra.mxu1 %v4576_v45 }
0x1000   : > { %4356 = vmatprep.subr.bf16.mxu1 %v4624_v2 }
0x1003   : > { %4357 = vmatpush3.bf16.msra.mxu1 %v4577_v46 }
0x1004   : > { %4358 = vmatprep.subr.bf16.mxu1 %v4624_v2 }
0x1007   : > { %4359 = vmatpush3.bf16.msra.mxu1 %v4578_v47 }
0x1008   : > { %4360 = vmatprep.subr.bf16.mxu1 %v4624_v2 }
0x100b   : > { %4361 = vmatpush3.bf16.msra.mxu1 %v4579_v48  ;;  %v4013_v48 = vld [vmem:[%s5471_s10 + $0x2] ss:$0 sm:$0xff] }
0x100c   : > { %4362 = vmatprep.subr.bf16.mxu1 %v4624_v2 }
0x100f   : > { %4363 = vmatpush3.bf16.msra.mxu1 %v4580_v49 }
0x1010   : > { %4364 = vmatprep.subr.bf16.mxu1 %v4624_v2 }
0x1013   : > { %4365 = vmatpush3.bf16.msra.mxu1 %v4581_v51  ;;  %v4014_v51 = vld [vmem:[%s5472_s29 + $0x2] ss:$0 sm:$0xff] }
0x1014   : > { %4415 = vmatprep.subr.mxu1 %v4624_v2 }
0x106b   : > { %v4528_v57 = vpop.permute.xlu0 %4527 }
0x106c   : > { %v4530_v58 = vunpack.i.h.bf16 %v4528_v57  ;;  %v4529_v59 = vunpack.i.l.bf16 %v4528_v57 }
0x10b9   : > { %v4346_v52 = vpop.f32.mrf.mxu1 }
0x10ba   : > { %v2818_v63 = vsel %vm1105_vm6, %v4346_v52, %v4530_v58 }
0x10bb   : > { %v2717_v53 = vpop.f32.mrf.mxu1 }
0x10bc   : > { %v2817_v0 = vsel %vm1105_vm6, %v2717_v53, %v4529_v59 }
0x10be   : > { %v4353_v54 = vpop.f32.mrf.mxu1 }
0x10c0   : > { %v2792_v55 = vpop.f32.mrf.mxu1 }
0x10c1   : > { %v4531_v56 = vpack.i.bf16 %v4353_v54, %v2792_v55  ;;  %v4016_v54 = vld [vmem:[%s5410_s13 + $0x1] ss:$0 sm:$0xff] }
0x10c3   : > { %4532 = vrot.lane.b32.xlu1 %v4531_v56, %s5469_s8 }
0x1135   : > { %v4533_v60 = vpop.permute.xlu1 %4532 }
0x1136   : > { %v4535_v36 = vunpack.i.h.bf16 %v4533_v60  ;;  %v4534_v62 = vunpack.i.l.bf16 %v4533_v60 }
0x1138   : > { %v2820_v8 = vsel %vm1108_vm7, %v2818_v63, %v4535_v36  ;;  %v2819_v9 = vsel %vm1108_vm7, %v2817_v0, %v4534_v62  ;;  %v4018_v63 = vld [vmem:[%s5411_s14 + $0x1] ss:$0 sm:$0xff] }
0x1139   : > { %v2821_v14 = vpack.c.bf16 %v2820_v8, %v2819_v9  ;;  %v3017_v9 = vld [vmem:[%s5417_s20 + $0x8] sm:$0xff] }
0x113a   : > { %4370 = vmatprep.subr.mxu0 %v3017_v9 }
0x113b   : > { %4367 = vmatmul.mubr.msk.bf16.vlgmr.msra.gmra.mxu1 %vm1154_vm8, %v2821_v14  ;;  %4371 = vmatpush3.msra.mxu0 %v3017_v9 }
0x113c   : > { %4421 = vmatprep.mubr.msk.f32.mxu1 %vm4626_vm5, %v4624_v2 }
0x11fb   : > { %v2901_v16 = vpop.f32.mrf.mxu1 }
0x11fc   : > { %v2902_v17 = vadd.f32 %v4003_v15, %v2901_v16 }
0x11fd   : > { %v4368_v18 = vpop.f32.mrf.mxu1 }
0x11fe   : > { %v2908_v19 = vmax.f32 %v2902_v17, 0.0  ;;  %v3016_v17 = vld [vmem:[%s5417_s20] sm:$0xff] }
0x11ff   : > { %v2904_v20 = vpop.f32.mrf.mxu1  ;;  %4372 = vmatprep.subr.mxu0 %v3016_v17 }
0x1200   : > { %v2905_v21 = vadd.f32 %v4003_v15, %v2904_v20  ;;  %v2914_v23 = vsel %vm1105_vm6, %v2908_v19, 0.0  ;;  %4373 = vmatpush3.msra.mxu0 %v3016_v17 }
0x1201   : > { %2915 = vadd.xlane.f32.xlu1 %v2914_v23  ;;  %v4369_v24 = vpop.f32.mrf.mxu1  ;;  %4377 = vmatprep.subr.mxu0 %v4624_v2 }
0x1202   : > { %v2909_v26 = vmax.f32 %v2905_v21, 0.0  ;;  %v1706_v24 = vsub.f32 %v5039_v50, %v5004_v44 }
0x1204   : > { %v2917_v27 = vsel %vm1105_vm6, %v2909_v26, 0.0 }
0x1205   : > { %2918 = vadd.xlane.f32.xlu0 %v2917_v27  ;;  %v3121_v27 = vrot.slane %v5039_v50, %v4997_v22 }
0x128a   : > { %v2916_v29 = vpop.xlane.xlu1 %2915 }
0x128b   : > { %v2920_v30 = vmul.f32 0.03125, %v2916_v29  ;;  %v3104_v29 = vcvt.s32.f32 %v4784_v3 }
0x128d   : > { %v2922_v31 = vsub.f32 %v2908_v19, %v2920_v30  ;;  %v4020_v19 = vld [vmem:[%s5478_s2] ss:$0 sm:$0xff]  ;;  %vm3122_vm15 = vcmp.lt.f32.partialorder %v3104_v29, %v3121_v27 }
0x128e   : > { %v2919_v32 = vpop.xlane.xlu0 %2918 }
0x128f   : > { %v2921_v33 = vmul.f32 0.03125, %v2919_v32  ;;  %v2924_v34 = vmul.f32 %v2922_v31, %v2922_v31  ;;  %v3105_v32 = vcvt.s32.f32 %v4795_v6 }
0x1291   : > { %v2923_v35 = vsub.f32 %v2909_v26, %v2921_v33  ;;  %v2926_v37 = vsel %vm1105_vm6, %v2924_v34, 0.0  ;;  %v3112_v26 = vrot.slane %v1706_v24, %v4997_v22  ;;  %v5274_v33 = vadd.s32 16, %v4784_v3 }
0x1292   : > { %2927 = vadd.xlane.f32.xlu0 %v2926_v37  ;;  %vm3123_vm3 = vcmp.lt.f32.partialorder %v3105_v32, %v3121_v27  ;;  %v3103_v37 = vadd.s32 32, %v4784_v3 }
0x1293   : > { %v2925_v38 = vmul.f32 %v2923_v35, %v2923_v35  ;;  %vm3113_vm14 = vcmp.ge.f32.partialorder %v3104_v29, %v3112_v26  ;;  %vm3114_vm2 = vcmp.ge.f32.partialorder %v3105_v32, %v3112_v26  ;;  %v3106_v50 = vcvt.s32.f32 %v5274_v33 }
0x1294   : > { %vm3127_vm1 = vmand %vm3113_vm14, %vm3122_vm15 }
0x1295   : > { %v2929_v39 = vsel %vm1105_vm6, %v2925_v38, 0.0  ;;  %v3132_v22 = vsel %vm3127_vm1, 1.0, %v4624_v2 }
0x1296   : > { %2930 = vadd.xlane.f32.xlu1 %v2929_v39  ;;  %v3108_v39 = vcvt.s32.f32 %v3103_v37 }
0x1298   : > { %vm3117_vm15 = vcmp.ge.f32.partialorder %v3108_v39, %v3112_v26  ;;  %vm3126_vm1 = vcmp.lt.f32.partialorder %v3108_v39, %v3121_v27 }
0x131b   : > { %v2928_v40 = vpop.xlane.xlu0 %2927 }
0x131c   : > { %v2932_v41 = vmul.f32 0.03125, %v2928_v40 }
0x131e   : > { %v2934_v42 = vadd.f32 1e-05, %v2932_v41 }
0x131f   : > { %v2931_v43 = vpop.xlane.xlu1 %2930 }
0x1320   : > { %4610 = vrsqrt.f32 %v2934_v42  ;;  %v2933_v45 = vmul.f32 0.03125, %v2931_v43 }
0x1322   : > { %v2935_v46 = vadd.f32 1e-05, %v2933_v45 }
0x1324   : > { %4612 = vrsqrt.f32 %v2935_v46 }
0x132d   : > { %v4611_v47 = vpop.eup %4610 }
0x132e   : > { %v2938_v49 = vmul.f32 %v4611_v47, %v2922_v31 }
0x1330   : > { %v2946_v52 = vmul.f32 %v4013_v48, %v2938_v49 }
0x1331   : > { %v4613_v53 = vpop.eup %4612 }
0x1332   : > { %v2954_v55 = vadd.f32 %v4014_v51, %v2946_v52  ;;  %v2939_v56 = vmul.f32 %v4613_v53, %v2923_v35 }
0x1334   : > { %v2964_v57 = vmul.f32 %v4016_v54, %v2954_v55  ;;  %v2947_v58 = vmul.f32 %v4013_v48, %v2939_v56 }
0x1336   : > { %v2966_v59 = vsel %vm1105_vm6, %v2964_v57, 0.0  ;;  %v2955_v60 = vadd.f32 %v4014_v51, %v2947_v58 }
0x1337   : > { %2967 = vadd.xlane.f32.xlu0 %v2966_v59 }
0x1338   : > { %v2965_v36 = vmul.f32 %v4016_v54, %v2955_v60 }
0x133a   : > { %v2969_v62 = vsel %vm1105_vm6, %v2965_v36, 0.0 }
0x133b   : > { %2970 = vadd.xlane.f32.xlu1 %v2969_v62 }
0x13c0   : > { %v2968_v0 = vpop.xlane.xlu0 %2967 }
0x13c1   : > { %v2980_v8 = vadd.f32 %v4018_v63, %v2968_v0  ;;  %v4587_v0 = vld [vmem:[%s5480_s3] sm:$0xff]  }
0x13c3   : > { %v2982_v14 = vmul.f32 %v2980_v8, %v5078_v61  ;;  %v4019_v61 = vld [vmem:[%s5477_s21] ss:$0 sm:$0xff]  ;;  %s5482_s21 = sld [smem:[#allocation23_spill]] }
0x13c4   : > { %v2971_v15 = vpop.xlane.xlu1 %2970 }
0x13c5   : > { %3664 = vst.msk [vmem:[%s884_s22] sm:$0xff] %vm3661_vm12, %v2982_v14  ;;  %v2981_v16 = vadd.f32 %v4018_v63, %v2971_v15  ;;  %2987 = vperm.xlu0 %4504, %v2982_v14   ;;  %v4586_v63 = vld [vmem:[%s5480_s3 + $0x8] sm:$0xff]  }
0x13c7   : > { %v2983_v18 = vmul.f32 %v2981_v16, %v5088_v1 }
0x13c9   : > { %3665 = vst.msk [vmem:[%s884_s22 + $0x8] sm:$0xff] %vm3661_vm12, %v2983_v18  ;;  %2992 = vperm.xlu1 %4515, %v2983_v18   ;;  %s5479_s22 = sld [smem:[#allocation19_spill]] }
0x13cf   : > { %v3242_v53 = vld [vmem:[%s5479_s22] sm:$0xff]  ;;  %v3243_v54 = vld [vmem:[%s5479_s22 + $0x8] sm:$0xff]  ;;  %v3244_v55 = vld [vmem:[%s5479_s22 + $0x10] sm:$0xff] }
0x1440   : > { %v2988_v20 = vpop.permute.xlu0 %2987 }
0x1441   : > { %vm3001_vm4 = vcmp.gt.f32.partialorder %v2988_v20, %v4019_v61  ;;  %vm3010_vm9 = vcmp.le.f32.partialorder %v2988_v20, %v4020_v19 }
0x1442   : > { %vm3012_vm10 = vmand %vm3001_vm4, %vm3010_vm9  ;;  %vm3115_vm9 = vcmp.ge.f32.partialorder %v3106_v50, %v3112_v26 }
0x1443   : > { %v3014_v1 = vsel %vm3012_vm10, 1.0, %v4624_v2  ;;  %vm3128_vm4 = vmand %vm3114_vm2, %vm3123_vm3  ;;  %vm3124_vm10 = vcmp.lt.f32.partialorder %v3106_v50, %v3121_v27  ;;  %vm3354_vm3 = vcmask 195584  }
0x1444   : > { %v2993_v21 = vpop.permute.xlu1 %2992  ;;  %4374 = vmatprep.mubr.msk.f32.mxu0 %vm926_vm0, %v3014_v1  ;;  %v3133_v6 = vsel %vm3128_vm4, 1.0, %v4624_v2  ;;  %vm3131_vm2 = vmand %vm3117_vm15, %vm3126_vm1  ;;  %vm3335_vm4 = vcmp.eq.s32.totalorder %v5274_v33, %v4792_v5  ;;  %v4582_v5 = vld [vmem:[%s5480_s3 + $0x28] sm:$0xff]  }
0x1445   : > { %vm3002_vm11 = vcmp.gt.f32.partialorder %v2993_v21, %v4019_v61  ;;  %vm3011_vm12 = vcmp.le.f32.partialorder %v2993_v21, %v4020_v19  ;;  %v3136_v40 = vsel %vm3131_vm2, 1.0, %v4624_v2 }
0x1446   : > { %vm3013_vm13 = vmand %vm3002_vm11, %vm3011_vm12 }
0x1447   : > { %v3015_v23 = vsel %vm3013_vm13, 1.0, %v4624_v2  ;;  %vm3129_vm11 = vmand %vm3115_vm9, %vm3124_vm10  ;;  %vm3338_vm9 = vcmp.eq.s32.totalorder %v5274_v33, %v4798_v7  ;;  %v4583_v7 = vld [vmem:[%s5480_s3 + $0x20] sm:$0xff]  }
0x1448   : > { %4375 = vmatmul.mubr.msk.f32.vlgmr.msra.gmra.mxu0 %vm926_vm0, %v3015_v23  ;;  %v3134_v38 = vsel %vm3129_vm11, 1.0, %v4624_v2 }
0x1449   : > { %4381 = vmatprep.mubr.msk.f32.mxu0 %vm4626_vm5, %v4624_v2 }
0x1508   : > { %v4376_v30 = vpop.f32.mrf.mxu0 }
0x1509   : > { %v3100_v31 = vadd.f32 %v4376_v30, %v5109_v25  ;;  %v3102_v25 = vadd.s32 24, %v4784_v3 }
0x150a   : > { %v3090_v34 = vpop.f32.mrf.mxu0 }
0x150b   : > { %v3099_v35 = vadd.f32 %v3090_v34, %v5112_v28  ;;  %4378 = vmatpush3.msra.mxu0 %v3100_v31  ;;  %v3107_v28 = vcvt.s32.f32 %v3102_v25 }
0x150c   : > { %4379 = vmatprep.subr.mxu0 %v4624_v2 }
0x150d   : > { %4380 = vmatpush3.msra.mxu0 %v3099_v35  ;;  %vm3116_vm12 = vcmp.ge.f32.partialorder %v3107_v28, %v3112_v26  ;;  %vm3125_vm13 = vcmp.lt.f32.partialorder %v3107_v28, %v3121_v27 }
0x150e   : > { %4382 = vmatmul.mubr.msk.f32.vlgmr.msra.gmra.mxu0 %vm926_vm0, %v3132_v22  ;;  %4396 = vmatprep.subr.mxu0 %v4624_v2  ;;  %vm3130_vm14 = vmand %vm3116_vm12, %vm3125_vm13 }
0x150f   : > { %4384 = vmatprep.mubr.msk.f32.mxu0 %vm4626_vm5, %v4624_v2  ;;  %v3135_v3 = vsel %vm3130_vm14, 1.0, %v4624_v2 }
0x1512   : > { %4385 = vmatmul.mubr.msk.f32.gmra.mxu0 %vm926_vm0, %v3133_v6 }
0x1513   : > { %4387 = vmatprep.mubr.msk.f32.mxu0 %vm4626_vm5, %v4624_v2 }
0x1516   : > { %4388 = vmatmul.mubr.msk.f32.gmra.mxu0 %vm926_vm0, %v3134_v38  ;;  %v3666_v38 = vcvt.s32.f32 %v4786_v4 }
0x1517   : > { %4390 = vmatprep.mubr.msk.f32.mxu0 %vm4626_vm5, %v4624_v2 }
0x151a   : > { %4391 = vmatmul.mubr.msk.f32.gmra.mxu0 %vm926_vm0, %v3135_v3 }
0x151b   : > { %4393 = vmatprep.mubr.msk.f32.mxu0 %vm4626_vm5, %v4624_v2 }
0x151e   : > { %4394 = vmatmul.mubr.msk.f32.gmra.mxu0 %vm926_vm0, %v3136_v40  ;;  %vm3245_vm0 = vcmask 326656  }
0x151f   : > { %4406 = vmatprep.mubr.msk.f32.mxu0 %vm4626_vm5, %v4624_v2 }
0x15ce   : > { %v3218_v41 = vpop.f32.mrf.mxu0 }
0x15d0   : > { %v4383_v42 = vpop.f32.mrf.mxu0 }
0x15d2   : > { %v3223_v43 = vpop.f32.mrf.mxu0 }
0x15d4   : > { %v4386_v45 = vpop.f32.mrf.mxu0 }
0x15d6   : > { %v3228_v46 = vpop.f32.mrf.mxu0 }
0x15d8   : > { %v4389_v47 = vpop.f32.mrf.mxu0 }
0x15da   : > { %v3233_v48 = vpop.f32.mrf.mxu0 }
0x15dc   : > { %v4392_v49 = vpop.f32.mrf.mxu0 }
0x15de   : > { %v3238_v51 = vpop.f32.mrf.mxu0 }
0x15df   : > { %4397 = vmatpush3.msra.mxu0 %v3238_v51 }
0x15e0   : > { %v4395_v52 = vpop.f32.mrf.mxu0  ;;  %4398 = vmatprep.subr.mxu0 %v4624_v2 }
0x15e1   : > { %4399 = vmatpush3.msra.mxu0 %v3233_v48 }
0x15e2   : > { %4400 = vmatprep.subr.mxu0 %v4624_v2 }
0x15e3   : > { %4401 = vmatpush3.msra.mxu0 %v3228_v46 }
0x15e4   : > { %4402 = vmatprep.subr.mxu0 %v4624_v2 }
0x15e5   : > { %4403 = vmatpush3.msra.mxu0 %v3223_v43 }
0x15e6   : > { %4404 = vmatprep.subr.mxu0 %v4624_v2 }
0x15e7   : > { %4405 = vmatpush3.msra.mxu0 %v3218_v41  ;;  %v4039_v41 = vld [vmem:[%s5483_s23] ss:$0 sm:$0xff] }
0x15e8   : > { %4407 = vmatmul.mubr.msk.f32.vlgmr.msra.gmra.mxu0 %vm3245_vm0, %v3242_v53  ;;  %4430 = vmatprep.subr.mxu0 %v4624_v2 }
0x15e9   : > { %4409 = vmatprep.mubr.msk.f32.mxu0 %vm4626_vm5, %v4624_v2 }
0x15ec   : > { %4410 = vmatmul.mubr.msk.f32.gmra.mxu0 %vm3245_vm0, %v3243_v54 }
0x15ed   : > { %4412 = vmatprep.mubr.msk.f32.mxu0 %vm4626_vm5, %v4624_v2 }
0x15f0   : > { %4413 = vmatmul.mubr.msk.f32.gmra.mxu0 %vm3245_vm0, %v3244_v55 }
0x15f1   : > { %4436 = vmatprep.mubr.msk.f32.mxu0 %vm4626_vm5, %v4624_v2 }
0x16a8   : > { %v3321_v56 = vpop.f32.mrf.mxu0 }
0x16aa   : > { %v4408_v57 = vpop.f32.mrf.mxu0 }
0x16ac   : > { %v3326_v58 = vpop.f32.mrf.mxu0 }
0x16ad   : > { %v4536_v59 = vpack.i.bf16 %v3326_v58, %v3321_v56 }
0x16ae   : > { %v4411_v60 = vpop.f32.mrf.mxu0 }
0x16af   : > { %4537 = vrot.lane.b32.xlu1 %v4536_v59, %s5474_s28 }
0x16b0   : > { %v3331_v36 = vpop.f32.mrf.mxu0 }
0x16b1   : > { %4416 = vmatpush3.msra.mxu1 %v3331_v36  ;;  %4431 = vmatpush3.msra.mxu0 %v3331_v36 }
0x16b2   : > { %4417 = vmatprep.subr.mxu1 %v4624_v2  ;;  %4432 = vmatprep.subr.mxu0 %v4624_v2  ;;  %v4414_v62 = vpop.f32.mrf.mxu0 }
0x16b3   : > { %4418 = vmatpush3.msra.mxu1 %v3326_v58  ;;  %4433 = vmatpush3.msra.mxu0 %v3326_v58 }
0x16b4   : > { %4419 = vmatprep.subr.mxu1 %v4624_v2  ;;  %4434 = vmatprep.subr.mxu0 %v4624_v2 }
0x16b5   : > { %3536 = vrot.lane.b32.xlu1 %v3331_v36, %s5474_s28  ;;  %4420 = vmatpush3.msra.mxu1 %v3321_v56  ;;  %s5481_s28 = sld [smem:[#allocation4_spill]] }
0x16b6   : > { %4435 = vmatpush3.msra.mxu0 %v3321_v56  ;;  %4422 = vmatmul.mubr.msk.f32.vlgmr.msra.gmra.mxu1 %vm3354_vm3, %v4817_v10  ;;  %v4031_v10 = vsel %vm3335_vm4, 1.0, %v4624_v2 }
0x16b7   : > { %4437 = vmatmul.mubr.msk.f32.vlgmr.msra.gmra.mxu0 %vm3354_vm3, %v4823_v12  ;;  %4424 = vmatprep.mubr.msk.f32.mxu1 %vm4626_vm5, %v4624_v2  ;;  %v4032_v12 = vsel %vm3338_vm9, 1.0, %v4624_v2 }
0x16b8   : > { %4439 = vmatprep.mubr.msk.f32.mxu0 %vm4626_vm5, %v4624_v2  ;;  %4445 = vmatprep.subr.bf16.mxu1 %v4582_v5 }
0x16b9   : > { %4446 = vmatpush3.bf16.msra.mxu1 %v4582_v5 }
0x16ba   : > { %4425 = vmatmul.mubr.msk.f32.gmra.mxu1 %vm3354_vm3, %v4820_v11  ;;  %4447 = vmatprep.subr.bf16.mxu1 %v4583_v7  ;;  %v4584_v11 = vld [vmem:[%s5480_s3 + $0x18] sm:$0xff]  }
0x16bb   : > { %4440 = vmatmul.mubr.msk.f32.gmra.mxu0 %vm3354_vm3, %v4826_v13  ;;  %4427 = vmatprep.mubr.msk.f32.mxu1 %vm4626_vm5, %v4624_v2  ;;  %v4585_v13 = vld [vmem:[%s5480_s3 + $0x10] sm:$0xff]   ;;  %s887_s0 = scalar_lea.vmem %s5482_s21, %s5481_s28  ;;  %s4461_s9 = smul.u32 24, %s5481_s28 }
0x16bc   : > { %4442 = vmatprep.mubr.msk.f32.mxu0 %vm4626_vm5, %v4624_v2  ;;  %vm3667_vm5 = vcmask 122880  }
0x16bd   : > { %4448 = vmatpush3.bf16.msra.mxu1 %v4583_v7  ;;  %v3668_v24 = vsel %vm3667_vm5, %v5004_v44, 0.0  ;;  %s874_s24 = scalar_lea.vmem %s5484_s19, %s4461_s9 }
0x16be   : > { %4428 = vmatmul.mubr.msk.f32.gmra.mxu1 %vm3354_vm3, %v4031_v10  ;;  %4449 = vmatprep.subr.bf16.mxu1 %v4584_v11 }
0x16bf   : > { %4443 = vmatmul.mubr.msk.f32.gmra.mxu0 %vm3354_vm3, %v4032_v12 }
0x16c1   : > { %4450 = vmatpush3.bf16.msra.mxu1 %v4584_v11 }
0x16c2   : > { %4451 = vmatprep.subr.bf16.mxu1 %v4585_v13 }
0x16c5   : > { %4452 = vmatpush3.bf16.msra.mxu1 %v4585_v13 }
0x16c6   : > { %4453 = vmatprep.subr.bf16.mxu1 %v4586_v63 }
0x16c9   : > { %4454 = vmatpush3.bf16.msra.mxu1 %v4586_v63 }
0x16ca   : > { %4455 = vmatprep.subr.bf16.mxu1 %v4587_v0 }
0x16cd   : > { %4456 = vmatpush3.bf16.msra.mxu1 %v4587_v0 }
0x1721   : > { %v4538_v26 = vpop.permute.xlu1 %4537 }
0x1722   : > { %v4540_v29 = vunpack.i.h.bf16 %v4538_v26  ;;  %v4539_v30 = vunpack.i.l.bf16 %v4538_v26 }
0x1727   : > { %v3537_v27 = vpop.permute.xlu1 %3536 }
0x1776   : > { %v3428_v8 = vpop.f32.mrf.mxu1 }
0x1777   : > { %v3515_v9 = vpop.f32.mrf.mxu0  ;;  %v3553_v34 = vsel %vm1105_vm6, %v3428_v8, %v4539_v30 }
0x1778   : > { %v4423_v14 = vpop.f32.mrf.mxu1 }
0x1779   : > { %v4438_v15 = vpop.f32.mrf.mxu0 }
0x177a   : > { %v3433_v16 = vpop.f32.mrf.mxu1 }
0x177b   : > { %v3520_v17 = vpop.f32.mrf.mxu0  ;;  %v3554_v35 = vsel %vm1105_vm6, %v3433_v16, %v4540_v29 }
0x177c   : > { %v4541_v18 = vpack.i.bf16 %v3520_v17, %v3515_v9  ;;  %v4426_v61 = vpop.f32.mrf.mxu1 }
0x177d   : > { %v4441_v19 = vpop.f32.mrf.mxu0 }
0x177e   : > { %4542 = vrot.lane.b32.xlu0 %v4541_v18, %s5469_s8  ;;  %v3438_v20 = vpop.f32.mrf.mxu1 }
0x177f   : > { %v3525_v1 = vpop.f32.mrf.mxu0  ;;  %v3555_v22 = vsel %vm1105_vm6, %v3438_v20, %v3537_v27  ;;  %vm3674_vm6 = vcmask 319488  }
0x1780   : > { %3548 = vrot.lane.b32.xlu1 %v3525_v1, %s5469_s8  ;;  %v4429_v21 = vpop.f32.mrf.mxu1 }
0x1781   : > { %v4444_v23 = vpop.f32.mrf.mxu0 }
0x179d   : > { %3669 = vadd.xlane.f32.xlu0 %v3668_v24 }
0x17f0   : > { %v4543_v31 = vpop.permute.xlu0 %4542 }
0x17f1   : > { %v4545_v32 = vunpack.i.h.bf16 %v4543_v31  ;;  %v4544_v33 = vunpack.i.l.bf16 %v4543_v31 }
0x17f2   : > { %v3549_v50 = vpop.permute.xlu1 %3548 }
0x17f3   : > { %v3557_v25 = vsel %vm1108_vm7, %v3554_v35, %v4545_v32  ;;  %v3556_v44 = vsel %vm1108_vm7, %v3553_v34, %v4544_v33  ;;  %v3558_v6 = vsel %vm1108_vm7, %v3555_v22, %v3549_v50  ;;  %vm3657_vm7 = vcmask 64512  }
0x17f4   : > { %v3559_v28 = vpack.c.bf16 %v3557_v25, %v3556_v44  ;;  %v3560_v37 = vpack.c.bf16 %v3558_v6, %v3558_v6 }
0x17f6   : > { %4457 = vmatprep.mubr.msk.bf16.mxu1 %vm1154_vm8, %v3559_v28 }
0x17f7   : > { %4458 = vmatmul.mubr.msk.bf16.vlgmr.msra.gmra.mxu1 %vm1154_vm8, %v3560_v37 }
0x1826   : > { %v3670_v39 = vpop.xlane.xlu0 %3669 }
0x1827   : > { %v3671_v3 = vmin.f32 %v3670_v39, 40.0 }
0x1829   : > { %vm3672_vm10 = vcmp.lt.f32.partialorder %v3666_v38, %v3671_v3 }
0x182a   : > { %v3673_v40 = vsel %vm3672_vm10, 1.0, %v4624_v2 }
0x182b   : > { %3675 = vst.msk [vmem:[%s887_s0] sm:$0x1] %vm3674_vm6, %v3673_v40 }
0x18b7   : > { %v4459_v4 = vpop.f32.mrf.mxu1 }
0x18b8   : > { %v3652_v42 = vadd.f32 %v4459_v4, %v4039_v41 }
0x18b9   : > { %v3643_v43 = vpop.f32.mrf.mxu1 }
0x18ba   : > { %3660 = vst.msk [vmem:[%s874_s24 + $0x10] sm:$0xff] %vm3657_vm7, %v3652_v42  ;;  %v3644_v45 = vadd.f32 %v4039_v41, %v3643_v43 }
0x18bb   : > { %v4460_v46 = vpop.f32.mrf.mxu1 }
0x18bc   : > { %3658 = vst.msk [vmem:[%s874_s24] sm:$0xff] %vm3657_vm7, %v3644_v45 }
0x18bd   : > { %v3646_v47 = vpop.f32.mrf.mxu1 }
0x18be   : > { %v3647_v2 = vadd.f32 %v4039_v41, %v3646_v47 }
0x18c0   : > { %3659 = vst.msk [vmem:[%s874_s24 + $0x8] sm:$0xff] %vm3657_vm7, %v3647_v2 }
0x18c1 PF: > { %s5485_s28 = sld [smem:[#allocation3_spill]] }
0x18c7   : > { %s40_s8 = sadd.s32 1, %s5485_s28  }
0x18c8   : > { %p37_p4 = scmp.ge.s32.totalorder %s40_s8, 4  }
0x18ca   :  { %39 = sbr.rel (!%p37_p4) target bundleno = 20 (0x14), region = 206 }

</bundles_post_ra>
